<compile_context>
chip_gen: v7x
topology: tpu7x:2x2x1
jax: 0.10.0
libtpu: 0.0.40
codegen_flags: <defaults>
</compile_context>

<pallas_src>
import math
from functools import partial

import jax
import jax.numpy as jnp
from jax import lax
from jax.experimental import pallas as pl
from jax.experimental.pallas import tpu as pltpu


def _round_up(x, m):
    return (x + m - 1) // m * m


def _pick_vmem_limit():
    # v5e/v6e: 128 MiB physical VMEM, v7x: 64 MiB -> size the scoped request
    # to the chip instead of a one-size-fits-v7x constant.
    try:
        cap = int(pltpu.get_tpu_info().vmem_capacity_bytes)
        return int(min(max(cap - (16 << 20), 32 << 20), 96 << 20))
    except Exception:
        return 32 << 20


_VMEM_LIMIT = _pick_vmem_limit()


# ---------------------------------------------------------------------------
# Fused [LayerNorm] -> bf16 matmul -> +bias -> [GELU] -> [+residual] kernel
# ---------------------------------------------------------------------------

def _fused_matmul_kernel(*refs, act, has_ln, has_res):
    idx = 0
    x_ref = refs[idx]; idx += 1
    w_ref = refs[idx]; idx += 1
    b_ref = refs[idx]; idx += 1
    if has_ln:
        g_ref = refs[idx]; idx += 1
        be_ref = refs[idx]; idx += 1
    if has_res:
        r_ref = refs[idx]; idx += 1
    o_ref = refs[idx]

    x = x_ref[...]
    if has_ln:
        # One-pass statistics: E[x], E[x^2]; rows independent so tiling is safe.
        mu = jnp.mean(x, axis=-1, keepdims=True)
        m2 = jnp.mean(x * x, axis=-1, keepdims=True)
        var = m2 - mu * mu
        x = (x - mu) * lax.rsqrt(var + 1e-5) * g_ref[...] + be_ref[...]

    # MXU peak path: bf16 inputs, f32 accumulation.
    acc = jnp.dot(x.astype(jnp.bfloat16), w_ref[...],
                  preferred_element_type=jnp.float32)
    acc = acc + b_ref[...]
    if act == "gelu":
        # TODO(synk): HF WavLM uses exact erf GELU; tanh approx kept here.
        c = 0.7978845608028654
        acc = 0.5 * acc * (1.0 + jnp.tanh(c * (acc + 0.044715 * acc * acc * acc)))
    if has_res:
        acc = acc + r_ref[...]
    o_ref[...] = acc


def fused_matmul(x, w, b, *, act=None, ln=None, residual=None, tm_max=512):
    """x:(M,K) @ w:(K,N) bf16 + b:(1,N); optional fused LayerNorm prologue
    (gamma,beta (1,K)), GELU epilogue, residual (M,N).  M-tiled parallel grid
    with at least 2 steps so both v7x TensorCores are used."""
    M, K = x.shape
    _, N = w.shape

    M8 = _round_up(M, 8)
    TM = min(tm_max, max(8, _round_up(pl.cdiv(M8, 2), 8)))
    Mp = _round_up(M8, TM)
    if Mp != M:
        # TODO(synk): in-kernel tail masking would avoid this host-side pad at
        # ragged sizes; the demo shapes are exact multiples so it never fires.
        x = jnp.pad(x, ((0, Mp - M), (0, 0)))
        if residual is not None:
            residual = jnp.pad(residual, ((0, Mp - M), (0, 0)))

    in_specs = [
        pl.BlockSpec((TM, K), lambda i: (i, 0)),
        pl.BlockSpec((K, N), lambda i: (0, 0)),
        pl.BlockSpec((1, N), lambda i: (0, 0)),
    ]
    args = [x, w, b]
    if ln is not None:
        gamma, beta = ln
        in_specs += [pl.BlockSpec((1, K), lambda i: (0, 0)),
                     pl.BlockSpec((1, K), lambda i: (0, 0))]
        args += [gamma, beta]
    if residual is not None:
        in_specs.append(pl.BlockSpec((TM, N), lambda i: (i, 0)))
        args.append(residual)

    out = pl.pallas_call(
        partial(_fused_matmul_kernel, act=act,
                has_ln=ln is not None, has_res=residual is not None),
        out_shape=jax.ShapeDtypeStruct((Mp, N), jnp.float32),
        grid=(Mp // TM,),
        in_specs=in_specs,
        out_specs=pl.BlockSpec((TM, N), lambda i: (i, 0)),
        compiler_params=pltpu.CompilerParams(
            dimension_semantics=("parallel",),
            vmem_limit_bytes=_VMEM_LIMIT),
    )(*args)
    return out[:M] if Mp != M else out


# ---------------------------------------------------------------------------
# Self-attention: gridded over (batch, head), q/k/v sliced straight out of the
# (M, 3*hidden) qkv activation via column BlockSpecs; output written back in
# (M, hidden) layout so the wo matmul consumes it with no host transpose.
# TODO(synk): production sequence lengths need a flash-style KV-tiled kernel.
# ---------------------------------------------------------------------------

def _attention_kernel(q_ref, k_ref, v_ref, o_ref, *, scale):
    q = q_ref[...].astype(jnp.bfloat16)
    k = k_ref[...].astype(jnp.bfloat16)
    s = jnp.dot(q, k.T, preferred_element_type=jnp.float32) * scale
    m = jnp.max(s, axis=-1, keepdims=True)
    p = jnp.exp(s - m)
    inv = pl.reciprocal(jnp.sum(p, axis=-1, keepdims=True), approx=True)
    p = (p * inv).astype(jnp.bfloat16)
    o_ref[...] = jnp.dot(p, v_ref[...].astype(jnp.bfloat16),
                         preferred_element_type=jnp.float32)


def attention(qkv, *, bx, nf, hidden, heads):
    hd = hidden // heads
    scale = 1.0 / math.sqrt(hd)
    q_spec = pl.BlockSpec((nf, hd), lambda b, h: (b, h))
    k_spec = pl.BlockSpec((nf, hd), lambda b, h: (b, heads + h))
    v_spec = pl.BlockSpec((nf, hd), lambda b, h: (b, 2 * heads + h))
    out_spec = pl.BlockSpec((nf, hd), lambda b, h: (b, h))
    return pl.pallas_call(
        partial(_attention_kernel, scale=scale),
        out_shape=jax.ShapeDtypeStruct((bx * nf, hidden), jnp.float32),
        grid=(bx, heads),
        in_specs=[q_spec, k_spec, v_spec],
        out_specs=out_spec,
        compiler_params=pltpu.CompilerParams(
            dimension_semantics=("parallel", "parallel"),
            vmem_limit_bytes=_VMEM_LIMIT),
    )(qkv, qkv, qkv)


# ---------------------------------------------------------------------------
# L1 partial sum between the wav half (rows [0, half)) and the y_rec half
# (rows [half, 2*half)) of one hidden-state matrix, without stacking/copying.
# Per-step: lane-dense (1, D) VMEM accumulator (VPU adds + one sublane
# reduce); scalar collapse only on the last grid step.
# ---------------------------------------------------------------------------

def _l1_sum_kernel(r_ref, g_ref, o_ref, acc_ref):
    @pl.when(pl.program_id(0) == 0)
    def _init():
        acc_ref[...] = jnp.zeros_like(acc_ref)

    d = jnp.abs(r_ref[...] - g_ref[...])
    acc_ref[...] += jnp.sum(d, axis=0, keepdims=True)

    @pl.when(pl.program_id(0) == pl.num_programs(0) - 1)
    def _fin():
        o_ref[...] = jnp.sum(acc_ref[...]).reshape(1, 1)


def l1_half_sum(h, half, *, tr=1024):
    """sum |h[:half] - h[half:]| for h of shape (2*half, D)."""
    D = h.shape[-1]
    assert half % 8 == 0 and D % 128 == 0
    TR = min(tr, half)
    while half % TR != 0:
        TR -= 8
    nblk = half // TR
    out = pl.pallas_call(
        _l1_sum_kernel,
        out_shape=jax.ShapeDtypeStruct((1, 1), jnp.float32),
        grid=(nblk,),
        in_specs=[pl.BlockSpec((TR, D), lambda i: (i, 0)),
                  pl.BlockSpec((TR, D), lambda i: (i + nblk, 0))],
        out_specs=pl.BlockSpec((1, 1), lambda i: (0, 0)),
        scratch_shapes=[pltpu.VMEM((1, D), jnp.float32)],
        compiler_params=pltpu.CompilerParams(
            # Sequential grid: the VMEM accumulator must not race across cores.
            dimension_semantics=("arbitrary",),
            vmem_limit_bytes=_VMEM_LIMIT),
    )(h, h)
    return out[0, 0]


# ---------------------------------------------------------------------------
# Resampling (model_sr -> 16 kHz) folded into the frame feature projection
# ---------------------------------------------------------------------------

def _halfband_fir(taps):
    """Hann-windowed sinc lowpass at half Nyquist (anti-alias for 2x decimation).
    TODO(synk): torchaudio Resample uses a kaiser/sinc polyphase filter for
    arbitrary ratios; only the integer 2x ratio is implemented here."""
    n = jnp.arange(taps, dtype=jnp.float32) - (taps - 1) / 2.0
    h = 0.5 * jnp.sinc(0.5 * n)
    win = 0.5 * (1.0 + jnp.cos(jnp.pi * n / ((taps - 1) / 2.0)))
    h = h * win
    return h / jnp.sum(h)


def _decimation_matrix(frame_out, taps, w_pad):
    """(w_pad, frame_out) matrix so that  window_32k @ dec == 16 kHz frame samples."""
    h = _halfband_fir(taps)
    j = jnp.arange(frame_out)
    k = jnp.arange(taps)
    rows = 2 * j[None, :] + k[:, None]                      # (taps, frame_out)
    cols = jnp.broadcast_to(j[None, :], rows.shape)
    vals = jnp.broadcast_to(h[:, None], rows.shape)
    return jnp.zeros((w_pad, frame_out), jnp.float32).at[rows, cols].add(vals)


def _frame_32k(x32, frame_out, taps):
    """Overlapping windows of the model_sr audio, hop = 2*frame_out, window
    padded to a lane-dense multiple of 128 (extra columns have zero weight).
    TODO(synk): the ~1.5x window-overlap gather could move in-kernel for very
    long production audio."""
    B, T = x32.shape
    pad = (taps - 1) // 2
    hop = 2 * frame_out
    W = hop + taps - 1
    Wp = _round_up(W, 128)
    nf = T // hop
    xp = jnp.pad(x32, ((0, 0), (pad, pad + (Wp - W))))
    idx = jnp.arange(nf)[:, None] * hop + jnp.arange(Wp)[None, :]
    frames = xp[:, idx]                                     # (B, nf, Wp)
    return frames.reshape(B * nf, Wp), nf, Wp


# ---------------------------------------------------------------------------
# Synthetic WavLM-style encoder + WavLMLoss forward
# ---------------------------------------------------------------------------

def _wavlm_loss_forward(params, wav, y_rec, *, frame, taps, hidden, heads):
    B = wav.shape[0]
    # One batched encoder pass over [wav ; y_rec]; the wav half is the
    # torch.no_grad() path (forward value identical; only backward differs).
    x = jnp.concatenate([wav, y_rec[:, 0, :]], axis=0).astype(jnp.float32)
    bx = 2 * B

    frames, nf, _ = _frame_32k(x, frame, taps)
    assert nf % 8 == 0
    half = B * nf

    # resample + feature projection in one lane-dense matmul (w_front = dec @ proj)
    h = fused_matmul(frames, params["w_front"], params["b_front"])
    total = l1_half_sum(h, half)
    n_states = 1

    for lp in params["layers"]:
        qkv = fused_matmul(h, lp["wqkv"], lp["bqkv"], ln=(lp["ln1_g"], lp["ln1_b"]))
        a = attention(qkv, bx=bx, nf=nf, hidden=hidden, heads=heads)
        h = fused_matmul(a, lp["wo"], lp["bo"], residual=h)
        f = fused_matmul(h, lp["w1"], lp["b1"], act="gelu",
                         ln=(lp["ln2_g"], lp["ln2_b"]))
        h = fused_matmul(f, lp["w2"], lp["b2"], residual=h)
        total = total + l1_half_sum(h, half)
        n_states += 1

    count = n_states * half * hidden
    return total / count


class WavLMLossPallas:
    """Pallas TPU port of WavLMLoss with a deterministic synthetic WavLM stand-in.
    TODO(synk): pretrained HF WavLM weights cannot be loaded offline; this uses a
    small frame-projection + pre-LN transformer encoder with fixed random weights."""

    def __init__(self, model_sr=32000, slm_sr=16000, hidden=256, layers=4,
                 heads=2, ffn=512, frame=128, taps=129, seed=42):
        assert model_sr == 2 * slm_sr, "only 2x decimation implemented"
        assert hidden % heads == 0 and (hidden // heads) % 128 == 0
        self.frame, self.taps, self.hidden, self.heads = frame, taps, hidden, heads

        key = jax.random.PRNGKey(seed)
        k_front, *k_layers = jax.random.split(key, layers + 1)
        s = 0.02
        bf16 = jnp.bfloat16

        hop = 2 * frame
        W = hop + taps - 1
        Wp = _round_up(W, 128)
        dec = _decimation_matrix(frame, taps, Wp)                 # (Wp, frame)
        wproj = s * jax.random.normal(k_front, (frame, hidden), jnp.float32)
        params = {
            # resample folded into the projection: one (Wp, hidden) bf16 matrix
            "w_front": (dec @ wproj).astype(bf16),
            "b_front": jnp.zeros((1, hidden), jnp.float32),
            "layers": [],
        }
        for kl in k_layers:
            k1, k2, k3, k4 = jax.random.split(kl, 4)
            params["layers"].append({
                "wqkv": (s * jax.random.normal(k1, (hidden, 3 * hidden))).astype(bf16),
                "bqkv": jnp.zeros((1, 3 * hidden), jnp.float32),
                "wo":   (s * jax.random.normal(k2, (hidden, hidden))).astype(bf16),
                "bo":   jnp.zeros((1, hidden), jnp.float32),
                "w1":   (s * jax.random.normal(k3, (hidden, ffn))).astype(bf16),
                "b1":   jnp.zeros((1, ffn), jnp.float32),
                "w2":   (s * jax.random.normal(k4, (ffn, hidden))).astype(bf16),
                "b2":   jnp.zeros((1, hidden), jnp.float32),
                "ln1_g": jnp.ones((1, hidden), jnp.float32),
                "ln1_b": jnp.zeros((1, hidden), jnp.float32),
                "ln2_g": jnp.ones((1, hidden), jnp.float32),
                "ln2_b": jnp.zeros((1, hidden), jnp.float32),
            })
        self.params = params
        self._fwd = jax.jit(partial(_wavlm_loss_forward, frame=frame, taps=taps,
                                    hidden=hidden, heads=heads))

    def __call__(self, wav, y_rec):
        # wav: (B, T) at model_sr, y_rec: (B, 1, T) at model_sr (matches the spec)
        return self._fwd(self.params, wav, y_rec)


# ---------------------------------------------------------------------------

if __name__ == "__main__":
    B = 2
    model_sr, slm_sr = 32000, 16000
    frame = 128                  # 16 kHz samples per feature frame
    n_frames = 16
    T = n_frames * 2 * frame     # 4096 samples at 32 kHz -> 2048 at 16 kHz -> 16 frames

    key = jax.random.PRNGKey(0)
    k1, k2 = jax.random.split(key)
    wav = 0.5 * jax.random.normal(k1, (B, T), jnp.float32)
    y_rec = 0.5 * jax.random.normal(k2, (B, 1, T), jnp.float32)

    loss_mod = WavLMLossPallas(model_sr=model_sr, slm_sr=slm_sr, frame=frame)
    loss = loss_mod(wav, y_rec)
    loss = jax.block_until_ready(loss)
    assert loss.shape == () and bool(jnp.isfinite(loss))
    print("KERNEL_OK")
</pallas_src>

<mosaic_0001>
module attributes {stable_mosaic.version = 11 : i64} {
  func.func private @main(%arg0: i32) attributes {dimension_semantics = [#tpu.dimension_semantics<core_parallel>], iteration_bounds = array<i64: 2>, tpu.core_type = #tpu.core_type<sc_scalar_subcore>, window_params = []} {
    return
  }
}

module attributes {stable_mosaic.version = 11 : i64} {
  func.func private @main(%arg0: i32) attributes {dimension_semantics = [#tpu.dimension_semantics<core_parallel>], iteration_bounds = array<i64: 2>, tpu.core_type = #tpu.core_type<sc_scalar_subcore>, window_params = []} {
    return
  }
}

module attributes {stable_mosaic.version = 11 : i64} {
  func.func @_fused_matmul_kernel(%arg0: i32, %arg1: memref<32x384xf32, #tpu.memory_space<vmem>>, %arg2: memref<384x256xbf16, #tpu.memory_space<vmem>>, %arg3: memref<1x256xf32, #tpu.memory_space<vmem>>, %arg4: memref<32x256xf32, #tpu.memory_space<vmem>>) attributes {dimension_semantics = [#tpu.dimension_semantics<parallel>], iteration_bounds = array<i64: 2>, scalar_prefetch = 0 : i64, scratch_operands = 0 : i64, tpu.core_type = #tpu.core_type<tc>, window_params = [{transform_indices = @transform_0, window_bounds = array<i64: 32, 384>}, {pipeline_mode = #tpu.pipeline_mode<synchronous>, transform_indices = @transform_1, window_bounds = array<i64: 384, 256>}, {pipeline_mode = #tpu.pipeline_mode<synchronous>, transform_indices = @transform_2, window_bounds = array<i64: 1, 256>}, {transform_indices = @transform_3, window_bounds = array<i64: 32, 256>}]} {
    %c0 = arith.constant 0 : index
    %c0_0 = arith.constant 0 : index
    %0 = vector.load %arg1[%c0, %c0_0] : memref<32x384xf32, #tpu.memory_space<vmem>>, vector<32x384xf32>
    %1 = arith.truncf %0 : vector<32x384xf32> to vector<32x384xbf16>
    %c0_1 = arith.constant 0 : index
    %c0_2 = arith.constant 0 : index
    %2 = vector.load %arg2[%c0_1, %c0_2] : memref<384x256xbf16, #tpu.memory_space<vmem>>, vector<384x256xbf16>
    %cst = arith.constant dense<0.000000e+00> : vector<32x256xf32>
    %3 = tpu.matmul %1, %2, %cst {dimension_numbers = #tpu.dot_dimension_numbers<[1], [0], [0], [1], [0, 0, 1, 1], [], []>} : vector<32x384xbf16>, vector<384x256xbf16>, vector<32x256xf32> -> vector<32x256xf32>
    %c0_3 = arith.constant 0 : index
    %c0_4 = arith.constant 0 : index
    %4 = vector.load %arg3[%c0_3, %c0_4] : memref<1x256xf32, #tpu.memory_space<vmem>>, vector<1x256xf32>
    %5 = vector.broadcast %4 : vector<1x256xf32> to vector<32x256xf32>
    %6 = arith.addf %3, %5 : vector<32x256xf32>
    %c0_5 = arith.constant 0 : index
    %c0_6 = arith.constant 0 : index
    %7 = vector.load %arg4[%c0_5, %c0_6] : memref<32x256xf32, #tpu.memory_space<vmem>>, vector<32x256xf32>
    tpu.vector_store %arg4[%c0_5, %c0_6], %6 {strides = array<i32>} : memref<32x256xf32, #tpu.memory_space<vmem>>, vector<32x256xf32>,
    return
  }
  func.func @transform_0(%arg0: i32) -> (i32, i32) {
    %c0_i32 = arith.constant 0 : i32
    %c0_i32_0 = arith.constant 0 : i32
    return %arg0, %c0_i32 : i32, i32
  }
  func.func @transform_1(%arg0: i32) -> (i32, i32) {
    %c0_i32 = arith.constant 0 : i32
    %c0_i32_0 = arith.constant 0 : i32
    %c0_i32_1 = arith.constant 0 : i32
    return %c0_i32, %c0_i32_0 : i32, i32
  }
  func.func @transform_2(%arg0: i32) -> (i32, i32) {
    %c0_i32 = arith.constant 0 : i32
    %c0_i32_0 = arith.constant 0 : i32
    %c0_i32_1 = arith.constant 0 : i32
    return %c0_i32, %c0_i32_0 : i32, i32
  }
  func.func @transform_3(%arg0: i32) -> (i32, i32) {
    %c0_i32 = arith.constant 0 : i32
    %c0_i32_0 = arith.constant 0 : i32
    return %arg0, %c0_i32 : i32, i32
  }
}

module attributes {stable_mosaic.version = 11 : i64} {
  func.func @_fused_matmul_kernel(%arg0: i32, %arg1: memref<32x256xf32, #tpu.memory_space<vmem>>, %arg2: memref<256x768xbf16, #tpu.memory_space<vmem>>, %arg3: memref<1x768xf32, #tpu.memory_space<vmem>>, %arg4: memref<1x256xf32, #tpu.memory_space<vmem>>, %arg5: memref<1x256xf32, #tpu.memory_space<vmem>>, %arg6: memref<32x768xf32, #tpu.memory_space<vmem>>) attributes {dimension_semantics = [#tpu.dimension_semantics<parallel>], iteration_bounds = array<i64: 2>, scalar_prefetch = 0 : i64, scratch_operands = 0 : i64, tpu.core_type = #tpu.core_type<tc>, window_params = [{transform_indices = @transform_0, window_bounds = array<i64: 32, 256>}, {pipeline_mode = #tpu.pipeline_mode<synchronous>, transform_indices = @transform_1, window_bounds = array<i64: 256, 768>}, {pipeline_mode = #tpu.pipeline_mode<synchronous>, transform_indices = @transform_2, window_bounds = array<i64: 1, 768>}, {pipeline_mode = #tpu.pipeline_mode<synchronous>, transform_indices = @transform_3, window_bounds = array<i64: 1, 256>}, {pipeline_mode = #tpu.pipeline_mode<synchronous>, transform_indices = @transform_4, window_bounds = array<i64: 1, 256>}, {transform_indices = @transform_5, window_bounds = array<i64: 32, 768>}]} {
    %c0 = arith.constant 0 : index
    %c0_0 = arith.constant 0 : index
    %0 = vector.load %arg1[%c0, %c0_0] : memref<32x256xf32, #tpu.memory_space<vmem>>, vector<32x256xf32>
    %cst = arith.constant dense<0.000000e+00> : vector<32xf32>
    %1 = vector.multi_reduction <add>, %0, %cst [1] : vector<32x256xf32> to vector<32xf32>
    %2 = vector.shape_cast %1 : vector<32xf32> to vector<32x1xf32>
    %cst_1 = arith.constant 2.560000e+02 : f32
    %3 = vector.broadcast %cst_1 : f32 to vector<32x1xf32>
    %4 = arith.divf %2, %3 : vector<32x1xf32>
    %5 = arith.mulf %0, %0 : vector<32x256xf32>
    %cst_2 = arith.constant dense<0.000000e+00> : vector<32xf32>
    %6 = vector.multi_reduction <add>, %5, %cst_2 [1] : vector<32x256xf32> to vector<32xf32>
    %7 = vector.shape_cast %6 : vector<32xf32> to vector<32x1xf32>
    %cst_3 = arith.constant 2.560000e+02 : f32
    %8 = vector.broadcast %cst_3 : f32 to vector<32x1xf32>
    %9 = arith.divf %7, %8 : vector<32x1xf32>
    %10 = arith.mulf %4, %4 : vector<32x1xf32>
    %11 = arith.subf %9, %10 : vector<32x1xf32>
    %12 = vector.broadcast %4 : vector<32x1xf32> to vector<32x256xf32>
    %13 = arith.subf %0, %12 : vector<32x256xf32>
    %cst_4 = arith.constant 9.99999974E-6 : f32
    %14 = vector.broadcast %cst_4 : f32 to vector<32x1xf32>
    %15 = arith.addf %11, %14 : vector<32x1xf32>
    %16 = math.rsqrt %15 : vector<32x1xf32>
    %17 = vector.broadcast %16 : vector<32x1xf32> to vector<32x256xf32>
    %18 = arith.mulf %13, %17 : vector<32x256xf32>
    %c0_5 = arith.constant 0 : index
    %c0_6 = arith.constant 0 : index
    %19 = vector.load %arg4[%c0_5, %c0_6] : memref<1x256xf32, #tpu.memory_space<vmem>>, vector<1x256xf32>
    %20 = vector.broadcast %19 : vector<1x256xf32> to vector<32x256xf32>
    %21 = arith.mulf %18, %20 : vector<32x256xf32>
    %c0_7 = arith.constant 0 : index
    %c0_8 = arith.constant 0 : index
    %22 = vector.load %arg5[%c0_7, %c0_8] : memref<1x256xf32, #tpu.memory_space<vmem>>, vector<1x256xf32>
    %23 = vector.broadcast %22 : vector<1x256xf32> to vector<32x256xf32>
    %24 = arith.addf %21, %23 : vector<32x256xf32>
    %25 = arith.truncf %24 : vector<32x256xf32> to vector<32x256xbf16>
    %c0_9 = arith.constant 0 : index
    %c0_10 = arith.constant 0 : index
    %26 = vector.load %arg2[%c0_9, %c0_10] : memref<256x768xbf16, #tpu.memory_space<vmem>>, vector<256x768xbf16>
    %cst_11 = arith.constant dense<0.000000e+00> : vector<32x768xf32>
    %27 = tpu.matmul %25, %26, %cst_11 {dimension_numbers = #tpu.dot_dimension_numbers<[1], [0], [0], [1], [0, 0, 1, 1], [], []>} : vector<32x256xbf16>, vector<256x768xbf16>, vector<32x768xf32> -> vector<32x768xf32>
    %c0_12 = arith.constant 0 : index
    %c0_13 = arith.constant 0 : index
    %28 = vector.load %arg3[%c0_12, %c0_13] : memref<1x768xf32, #tpu.memory_space<vmem>>, vector<1x768xf32>
    %29 = vector.broadcast %28 : vector<1x768xf32> to vector<32x768xf32>
    %30 = arith.addf %27, %29 : vector<32x768xf32>
    %c0_14 = arith.constant 0 : index
    %c0_15 = arith.constant 0 : index
    %31 = vector.load %arg6[%c0_14, %c0_15] : memref<32x768xf32, #tpu.memory_space<vmem>>, vector<32x768xf32>
    tpu.vector_store %arg6[%c0_14, %c0_15], %30 {strides = array<i32>} : memref<32x768xf32, #tpu.memory_space<vmem>>, vector<32x768xf32>,
    return
  }
  func.func @transform_0(%arg0: i32) -> (i32, i32) {
    %c0_i32 = arith.constant 0 : i32
    %c0_i32_0 = arith.constant 0 : i32
    return %arg0, %c0_i32 : i32, i32
  }
  func.func @transform_1(%arg0: i32) -> (i32, i32) {
    %c0_i32 = arith.constant 0 : i32
    %c0_i32_0 = arith.constant 0 : i32
    %c0_i32_1 = arith.constant 0 : i32
    return %c0_i32, %c0_i32_0 : i32, i32
  }
  func.func @transform_2(%arg0: i32) -> (i32, i32) {
    %c0_i32 = arith.constant 0 : i32
    %c0_i32_0 = arith.constant 0 : i32
    %c0_i32_1 = arith.constant 0 : i32
    return %c0_i32, %c0_i32_0 : i32, i32
  }
  func.func @transform_3(%arg0: i32) -> (i32, i32) {
    %c0_i32 = arith.constant 0 : i32
    %c0_i32_0 = arith.constant 0 : i32
    %c0_i32_1 = arith.constant 0 : i32
    return %c0_i32, %c0_i32_0 : i32, i32
  }
  func.func @transform_4(%arg0: i32) -> (i32, i32) {
    %c0_i32 = arith.constant 0 : i32
    %c0_i32_0 = arith.constant 0 : i32
    %c0_i32_1 = arith.constant 0 : i32
    return %c0_i32, %c0_i32_0 : i32, i32
  }
  func.func @transform_5(%arg0: i32) -> (i32, i32) {
    %c0_i32 = arith.constant 0 : i32
    %c0_i32_0 = arith.constant 0 : i32
    return %arg0, %c0_i32 : i32, i32
  }
}

module attributes {stable_mosaic.version = 11 : i64} {
  func.func @_l1_sum_kernel(%arg0: i32, %arg1: memref<32x256xf32, #tpu.memory_space<vmem>>, %arg2: memref<32x256xf32, #tpu.memory_space<vmem>>, %arg3: memref<1x1xf32, #tpu.memory_space<vmem>>, %arg4: memref<1x256xf32, #tpu.memory_space<vmem>>) attributes {dimension_semantics = [#tpu.dimension_semantics<arbitrary>], iteration_bounds = array<i64: 1>, scalar_prefetch = 0 : i64, scratch_operands = 1 : i64, tpu.core_type = #tpu.core_type<tc>, window_params = [{transform_indices = @transform_0, window_bounds = array<i64: 32, 256>}, {transform_indices = @transform_1, window_bounds = array<i64: 32, 256>}, {pipeline_mode = #tpu.pipeline_mode<synchronous>, transform_indices = @transform_2, window_bounds = array<i64: 1, 1>}]} {
    %c0_i32 = arith.constant 0 : i32
    %0 = arith.cmpi eq, %arg0, %c0_i32 : i32
    %1 = arith.extui %0 : i1 to i32
    %c0_i32_0 = arith.constant 0 : i32
    %2 = arith.cmpi ne, %1, %c0_i32_0 : i32
    scf.if %2 {
      %cst_10 = arith.constant 0.000000e+00 : f32
      %15 = vector.broadcast %cst_10 : f32 to vector<1x256xf32>
      %c0_11 = arith.constant 0 : index
      %c0_12 = arith.constant 0 : index
      %16 = vector.load %arg4[%c0_11, %c0_12] : memref<1x256xf32, #tpu.memory_space<vmem>>, vector<1x256xf32>
      tpu.vector_store %arg4[%c0_11, %c0_12], %15 {strides = array<i32>} : memref<1x256xf32, #tpu.memory_space<vmem>>, vector<1x256xf32>,
    } else {
    }
    %c0 = arith.constant 0 : index
    %c0_1 = arith.constant 0 : index
    %3 = vector.load %arg1[%c0, %c0_1] : memref<32x256xf32, #tpu.memory_space<vmem>>, vector<32x256xf32>
    %c0_2 = arith.constant 0 : index
    %c0_3 = arith.constant 0 : index
    %4 = vector.load %arg2[%c0_2, %c0_3] : memref<32x256xf32, #tpu.memory_space<vmem>>, vector<32x256xf32>
    %5 = arith.subf %3, %4 : vector<32x256xf32>
    %6 = math.absf %5 : vector<32x256xf32>
    %c0_4 = arith.constant 0 : index
    %c0_5 = arith.constant 0 : index
    %7 = vector.load %arg4[%c0_4, %c0_5] : memref<1x256xf32, #tpu.memory_space<vmem>>, vector<1x256xf32>
    %cst = arith.constant dense<0.000000e+00> : vector<256xf32>
    %8 = vector.multi_reduction <add>, %6, %cst [0] : vector<32x256xf32> to vector<256xf32>
    %9 = vector.shape_cast %8 : vector<256xf32> to vector<1x256xf32>
    %10 = arith.addf %7, %9 : vector<1x256xf32>
    %c0_6 = arith.constant 0 : index
    %c0_7 = arith.constant 0 : index
    %11 = vector.load %arg4[%c0_6, %c0_7] : memref<1x256xf32, #tpu.memory_space<vmem>>, vector<1x256xf32>
    tpu.vector_store %arg4[%c0_6, %c0_7], %10 {strides = array<i32>} : memref<1x256xf32, #tpu.memory_space<vmem>>, vector<1x256xf32>,
    %c0_i32_8 = arith.constant 0 : i32
    %12 = arith.cmpi eq, %arg0, %c0_i32_8 : i32
    %13 = arith.extui %12 : i1 to i32
    %c0_i32_9 = arith.constant 0 : i32
    %14 = arith.cmpi ne, %13, %c0_i32_9 : i32
    scf.if %14 {
      %c0_10 = arith.constant 0 : index
      %c0_11 = arith.constant 0 : index
      %15 = vector.load %arg4[%c0_10, %c0_11] : memref<1x256xf32, #tpu.memory_space<vmem>>, vector<1x256xf32>
      %16 = vector.shape_cast %15 : vector<1x256xf32> to vector<1x1x256xf32>
      %cst_12 = arith.constant dense<0.000000e+00> : vector<1xf32>
      %17 = vector.multi_reduction <add>, %16, %cst_12 [1, 2] : vector<1x1x256xf32> to vector<1xf32>
      %18 = vector.shape_cast %17 : vector<1xf32> to vector<1x1x1xf32>
      %19 = vector.extract %18[0, 0, 0] : f32 from vector<1x1x1xf32>
      %20 = vector.broadcast %19 : f32 to vector<1x1xf32>
      %c0_13 = arith.constant 0 : index
      %c0_14 = arith.constant 0 : index
      %21 = vector.load %arg3[%c0_13, %c0_14] : memref<1x1xf32, #tpu.memory_space<vmem>>, vector<1x1xf32>
      tpu.vector_store %arg3[%c0_13, %c0_14], %20 {strides = array<i32>} : memref<1x1xf32, #tpu.memory_space<vmem>>, vector<1x1xf32>,
    } else {
    }
    return
  }
  func.func @transform_0(%arg0: i32) -> (i32, i32) {
    %c0_i32 = arith.constant 0 : i32
    %c0_i32_0 = arith.constant 0 : i32
    return %arg0, %c0_i32 : i32, i32
  }
  func.func @transform_1(%arg0: i32) -> (i32, i32) {
    %c1_i32 = arith.constant 1 : i32
    %0 = arith.addi %arg0, %c1_i32 : i32
    %c0_i32 = arith.constant 0 : i32
    %c0_i32_0 = arith.constant 0 : i32
    return %0, %c0_i32 : i32, i32
  }
  func.func @transform_2(%arg0: i32) -> (i32, i32) {
    %c0_i32 = arith.constant 0 : i32
    %c0_i32_0 = arith.constant 0 : i32
    %c0_i32_1 = arith.constant 0 : i32
    return %c0_i32, %c0_i32_0 : i32, i32
  }
}

module attributes {stable_mosaic.version = 11 : i64} {
  func.func @_attention_kernel(%arg0: i32, %arg1: i32, %arg2: memref<16x128xf32, #tpu.memory_space<vmem>>, %arg3: memref<16x128xf32, #tpu.memory_space<vmem>>, %arg4: memref<16x128xf32, #tpu.memory_space<vmem>>, %arg5: memref<16x128xf32, #tpu.memory_space<vmem>>) attributes {dimension_semantics = [#tpu.dimension_semantics<parallel>, #tpu.dimension_semantics<parallel>], iteration_bounds = array<i64: 4, 2>, scalar_prefetch = 0 : i64, scratch_operands = 0 : i64, tpu.core_type = #tpu.core_type<tc>, window_params = [{transform_indices = @transform_0, window_bounds = array<i64: 16, 128>}, {transform_indices = @transform_1, window_bounds = array<i64: 16, 128>}, {transform_indices = @transform_2, window_bounds = array<i64: 16, 128>}, {transform_indices = @transform_3, window_bounds = array<i64: 16, 128>}]} {
    %c0 = arith.constant 0 : index
    %c0_0 = arith.constant 0 : index
    %0 = vector.load %arg2[%c0, %c0_0] : memref<16x128xf32, #tpu.memory_space<vmem>>, vector<16x128xf32>
    %1 = arith.truncf %0 : vector<16x128xf32> to vector<16x128xbf16>
    %c0_1 = arith.constant 0 : index
    %c0_2 = arith.constant 0 : index
    %2 = vector.load %arg3[%c0_1, %c0_2] : memref<16x128xf32, #tpu.memory_space<vmem>>, vector<16x128xf32>
    %3 = arith.truncf %2 : vector<16x128xf32> to vector<16x128xbf16>
    %4 = tpu.transpose %3, [1, 0] : vector<16x128xbf16> -> vector<128x16xbf16>
    %cst = arith.constant dense<0.000000e+00> : vector<16x16xf32>
    %5 = tpu.matmul %1, %4, %cst {dimension_numbers = #tpu.dot_dimension_numbers<[1], [0], [0], [1], [0, 0, 1, 1], [], []>} : vector<16x128xbf16>, vector<128x16xbf16>, vector<16x16xf32> -> vector<16x16xf32>
    %cst_3 = arith.constant 0.0883883461 : f32
    %6 = vector.broadcast %cst_3 : f32 to vector<16x16xf32>
    %7 = arith.mulf %5, %6 : vector<16x16xf32>
    %cst_4 = arith.constant dense<0xFF800000> : vector<16xf32>
    %8 = vector.multi_reduction <maximumf>, %7, %cst_4 [1] : vector<16x16xf32> to vector<16xf32>
    %9 = vector.shape_cast %8 : vector<16xf32> to vector<16x1xf32>
    %10 = vector.broadcast %9 : vector<16x1xf32> to vector<16x16xf32>
    %11 = arith.subf %7, %10 : vector<16x16xf32>
    %12 = math.exp %11 : vector<16x16xf32>
    %cst_5 = arith.constant dense<0.000000e+00> : vector<16xf32>
    %13 = vector.multi_reduction <add>, %12, %cst_5 [1] : vector<16x16xf32> to vector<16xf32>
    %14 = vector.shape_cast %13 : vector<16xf32> to vector<16x1xf32>
    %15 = tpu.reciprocal %14 {approx = true} : vector<16x1xf32> -> vector<16x1xf32>
    %16 = vector.broadcast %15 : vector<16x1xf32> to vector<16x16xf32>
    %17 = arith.mulf %12, %16 : vector<16x16xf32>
    %18 = arith.truncf %17 : vector<16x16xf32> to vector<16x16xbf16>
    %c0_6 = arith.constant 0 : index
    %c0_7 = arith.constant 0 : index
    %19 = vector.load %arg4[%c0_6, %c0_7] : memref<16x128xf32, #tpu.memory_space<vmem>>, vector<16x128xf32>
    %20 = arith.truncf %19 : vector<16x128xf32> to vector<16x128xbf16>
    %cst_8 = arith.constant dense<0.000000e+00> : vector<16x128xf32>
    %21 = tpu.matmul %18, %20, %cst_8 {dimension_numbers = #tpu.dot_dimension_numbers<[1], [0], [0], [1], [0, 0, 1, 1], [], []>} : vector<16x16xbf16>, vector<16x128xbf16>, vector<16x128xf32> -> vector<16x128xf32>
    %c0_9 = arith.constant 0 : index
    %c0_10 = arith.constant 0 : index
    %22 = vector.load %arg5[%c0_9, %c0_10] : memref<16x128xf32, #tpu.memory_space<vmem>>, vector<16x128xf32>
    tpu.vector_store %arg5[%c0_9, %c0_10], %21 {strides = array<i32>} : memref<16x128xf32, #tpu.memory_space<vmem>>, vector<16x128xf32>,
    return
  }
  func.func @transform_0(%arg0: i32, %arg1: i32) -> (i32, i32) {
    %c0_i32 = arith.constant 0 : i32
    return %arg0, %arg1 : i32, i32
  }
  func.func @transform_1(%arg0: i32, %arg1: i32) -> (i32, i32) {
    %c2_i32 = arith.constant 2 : i32
    %0 = arith.addi %c2_i32, %arg1 : i32
    %c0_i32 = arith.constant 0 : i32
    return %arg0, %0 : i32, i32
  }
  func.func @transform_2(%arg0: i32, %arg1: i32) -> (i32, i32) {
    %c4_i32 = arith.constant 4 : i32
    %0 = arith.addi %c4_i32, %arg1 : i32
    %c0_i32 = arith.constant 0 : i32
    return %arg0, %0 : i32, i32
  }
  func.func @transform_3(%arg0: i32, %arg1: i32) -> (i32, i32) {
    %c0_i32 = arith.constant 0 : i32
    return %arg0, %arg1 : i32, i32
  }
}

module attributes {stable_mosaic.version = 11 : i64} {
  func.func @_fused_matmul_kernel(%arg0: i32, %arg1: memref<32x256xf32, #tpu.memory_space<vmem>>, %arg2: memref<256x256xbf16, #tpu.memory_space<vmem>>, %arg3: memref<1x256xf32, #tpu.memory_space<vmem>>, %arg4: memref<32x256xf32, #tpu.memory_space<vmem>>, %arg5: memref<32x256xf32, #tpu.memory_space<vmem>>) attributes {dimension_semantics = [#tpu.dimension_semantics<parallel>], iteration_bounds = array<i64: 2>, scalar_prefetch = 0 : i64, scratch_operands = 0 : i64, tpu.core_type = #tpu.core_type<tc>, window_params = [{transform_indices = @transform_0, window_bounds = array<i64: 32, 256>}, {pipeline_mode = #tpu.pipeline_mode<synchronous>, transform_indices = @transform_1, window_bounds = array<i64: 256, 256>}, {pipeline_mode = #tpu.pipeline_mode<synchronous>, transform_indices = @transform_2, window_bounds = array<i64: 1, 256>}, {transform_indices = @transform_3, window_bounds = array<i64: 32, 256>}, {transform_indices = @transform_4, window_bounds = array<i64: 32, 256>}]} {
    %c0 = arith.constant 0 : index
    %c0_0 = arith.constant 0 : index
    %0 = vector.load %arg1[%c0, %c0_0] : memref<32x256xf32, #tpu.memory_space<vmem>>, vector<32x256xf32>
    %1 = arith.truncf %0 : vector<32x256xf32> to vector<32x256xbf16>
    %c0_1 = arith.constant 0 : index
    %c0_2 = arith.constant 0 : index
    %2 = vector.load %arg2[%c0_1, %c0_2] : memref<256x256xbf16, #tpu.memory_space<vmem>>, vector<256x256xbf16>
    %cst = arith.constant dense<0.000000e+00> : vector<32x256xf32>
    %3 = tpu.matmul %1, %2, %cst {dimension_numbers = #tpu.dot_dimension_numbers<[1], [0], [0], [1], [0, 0, 1, 1], [], []>} : vector<32x256xbf16>, vector<256x256xbf16>, vector<32x256xf32> -> vector<32x256xf32>
    %c0_3 = arith.constant 0 : index
    %c0_4 = arith.constant 0 : index
    %4 = vector.load %arg3[%c0_3, %c0_4] : memref<1x256xf32, #tpu.memory_space<vmem>>, vector<1x256xf32>
    %5 = vector.broadcast %4 : vector<1x256xf32> to vector<32x256xf32>
    %6 = arith.addf %3, %5 : vector<32x256xf32>
    %c0_5 = arith.constant 0 : index
    %c0_6 = arith.constant 0 : index
    %7 = vector.load %arg4[%c0_5, %c0_6] : memref<32x256xf32, #tpu.memory_space<vmem>>, vector<32x256xf32>
    %8 = arith.addf %6, %7 : vector<32x256xf32>
    %c0_7 = arith.constant 0 : index
    %c0_8 = arith.constant 0 : index
    %9 = vector.load %arg5[%c0_7, %c0_8] : memref<32x256xf32, #tpu.memory_space<vmem>>, vector<32x256xf32>
    tpu.vector_store %arg5[%c0_7, %c0_8], %8 {strides = array<i32>} : memref<32x256xf32, #tpu.memory_space<vmem>>, vector<32x256xf32>,
    return
  }
  func.func @transform_0(%arg0: i32) -> (i32, i32) {
    %c0_i32 = arith.constant 0 : i32
    %c0_i32_0 = arith.constant 0 : i32
    return %arg0, %c0_i32 : i32, i32
  }
  func.func @transform_1(%arg0: i32) -> (i32, i32) {
    %c0_i32 = arith.constant 0 : i32
    %c0_i32_0 = arith.constant 0 : i32
    %c0_i32_1 = arith.constant 0 : i32
    return %c0_i32, %c0_i32_0 : i32, i32
  }
  func.func @transform_2(%arg0: i32) -> (i32, i32) {
    %c0_i32 = arith.constant 0 : i32
    %c0_i32_0 = arith.constant 0 : i32
    %c0_i32_1 = arith.constant 0 : i32
    return %c0_i32, %c0_i32_0 : i32, i32
  }
  func.func @transform_3(%arg0: i32) -> (i32, i32) {
    %c0_i32 = arith.constant 0 : i32
    %c0_i32_0 = arith.constant 0 : i32
    return %arg0, %c0_i32 : i32, i32
  }
  func.func @transform_4(%arg0: i32) -> (i32, i32) {
    %c0_i32 = arith.constant 0 : i32
    %c0_i32_0 = arith.constant 0 : i32
    return %arg0, %c0_i32 : i32, i32
  }
}

module attributes {stable_mosaic.version = 11 : i64} {
  func.func @_fused_matmul_kernel(%arg0: i32, %arg1: memref<32x256xf32, #tpu.memory_space<vmem>>, %arg2: memref<256x512xbf16, #tpu.memory_space<vmem>>, %arg3: memref<1x512xf32, #tpu.memory_space<vmem>>, %arg4: memref<1x256xf32, #tpu.memory_space<vmem>>, %arg5: memref<1x256xf32, #tpu.memory_space<vmem>>, %arg6: memref<32x512xf32, #tpu.memory_space<vmem>>) attributes {dimension_semantics = [#tpu.dimension_semantics<parallel>], iteration_bounds = array<i64: 2>, scalar_prefetch = 0 : i64, scratch_operands = 0 : i64, tpu.core_type = #tpu.core_type<tc>, window_params = [{transform_indices = @transform_0, window_bounds = array<i64: 32, 256>}, {pipeline_mode = #tpu.pipeline_mode<synchronous>, transform_indices = @transform_1, window_bounds = array<i64: 256, 512>}, {pipeline_mode = #tpu.pipeline_mode<synchronous>, transform_indices = @transform_2, window_bounds = array<i64: 1, 512>}, {pipeline_mode = #tpu.pipeline_mode<synchronous>, transform_indices = @transform_3, window_bounds = array<i64: 1, 256>}, {pipeline_mode = #tpu.pipeline_mode<synchronous>, transform_indices = @transform_4, window_bounds = array<i64: 1, 256>}, {transform_indices = @transform_5, window_bounds = array<i64: 32, 512>}]} {
    %c0 = arith.constant 0 : index
    %c0_0 = arith.constant 0 : index
    %0 = vector.load %arg1[%c0, %c0_0] : memref<32x256xf32, #tpu.memory_space<vmem>>, vector<32x256xf32>
    %cst = arith.constant dense<0.000000e+00> : vector<32xf32>
    %1 = vector.multi_reduction <add>, %0, %cst [1] : vector<32x256xf32> to vector<32xf32>
    %2 = vector.shape_cast %1 : vector<32xf32> to vector<32x1xf32>
    %cst_1 = arith.constant 2.560000e+02 : f32
    %3 = vector.broadcast %cst_1 : f32 to vector<32x1xf32>
    %4 = arith.divf %2, %3 : vector<32x1xf32>
    %5 = arith.mulf %0, %0 : vector<32x256xf32>
    %cst_2 = arith.constant dense<0.000000e+00> : vector<32xf32>
    %6 = vector.multi_reduction <add>, %5, %cst_2 [1] : vector<32x256xf32> to vector<32xf32>
    %7 = vector.shape_cast %6 : vector<32xf32> to vector<32x1xf32>
    %cst_3 = arith.constant 2.560000e+02 : f32
    %8 = vector.broadcast %cst_3 : f32 to vector<32x1xf32>
    %9 = arith.divf %7, %8 : vector<32x1xf32>
    %10 = arith.mulf %4, %4 : vector<32x1xf32>
    %11 = arith.subf %9, %10 : vector<32x1xf32>
    %12 = vector.broadcast %4 : vector<32x1xf32> to vector<32x256xf32>
    %13 = arith.subf %0, %12 : vector<32x256xf32>
    %cst_4 = arith.constant 9.99999974E-6 : f32
    %14 = vector.broadcast %cst_4 : f32 to vector<32x1xf32>
    %15 = arith.addf %11, %14 : vector<32x1xf32>
    %16 = math.rsqrt %15 : vector<32x1xf32>
    %17 = vector.broadcast %16 : vector<32x1xf32> to vector<32x256xf32>
    %18 = arith.mulf %13, %17 : vector<32x256xf32>
    %c0_5 = arith.constant 0 : index
    %c0_6 = arith.constant 0 : index
    %19 = vector.load %arg4[%c0_5, %c0_6] : memref<1x256xf32, #tpu.memory_space<vmem>>, vector<1x256xf32>
    %20 = vector.broadcast %19 : vector<1x256xf32> to vector<32x256xf32>
    %21 = arith.mulf %18, %20 : vector<32x256xf32>
    %c0_7 = arith.constant 0 : index
    %c0_8 = arith.constant 0 : index
    %22 = vector.load %arg5[%c0_7, %c0_8] : memref<1x256xf32, #tpu.memory_space<vmem>>, vector<1x256xf32>
    %23 = vector.broadcast %22 : vector<1x256xf32> to vector<32x256xf32>
    %24 = arith.addf %21, %23 : vector<32x256xf32>
    %25 = arith.truncf %24 : vector<32x256xf32> to vector<32x256xbf16>
    %c0_9 = arith.constant 0 : index
    %c0_10 = arith.constant 0 : index
    %26 = vector.load %arg2[%c0_9, %c0_10] : memref<256x512xbf16, #tpu.memory_space<vmem>>, vector<256x512xbf16>
    %cst_11 = arith.constant dense<0.000000e+00> : vector<32x512xf32>
    %27 = tpu.matmul %25, %26, %cst_11 {dimension_numbers = #tpu.dot_dimension_numbers<[1], [0], [0], [1], [0, 0, 1, 1], [], []>} : vector<32x256xbf16>, vector<256x512xbf16>, vector<32x512xf32> -> vector<32x512xf32>
    %c0_12 = arith.constant 0 : index
    %c0_13 = arith.constant 0 : index
    %28 = vector.load %arg3[%c0_12, %c0_13] : memref<1x512xf32, #tpu.memory_space<vmem>>, vector<1x512xf32>
    %29 = vector.broadcast %28 : vector<1x512xf32> to vector<32x512xf32>
    %30 = arith.addf %27, %29 : vector<32x512xf32>
    %cst_14 = arith.constant 5.000000e-01 : f32
    %31 = vector.broadcast %cst_14 : f32 to vector<32x512xf32>
    %32 = arith.mulf %31, %30 : vector<32x512xf32>
    %cst_15 = arith.constant 4.471500e-02 : f32
    %33 = vector.broadcast %cst_15 : f32 to vector<32x512xf32>
    %34 = arith.mulf %33, %30 : vector<32x512xf32>
    %35 = arith.mulf %34, %30 : vector<32x512xf32>
    %36 = arith.mulf %35, %30 : vector<32x512xf32>
    %37 = arith.addf %30, %36 : vector<32x512xf32>
    %cst_16 = arith.constant 0.797884583 : f32
    %38 = vector.broadcast %cst_16 : f32 to vector<32x512xf32>
    %39 = arith.mulf %38, %37 : vector<32x512xf32>
    %40 = math.tanh %39 : vector<32x512xf32>
    %cst_17 = arith.constant 1.000000e+00 : f32
    %41 = vector.broadcast %cst_17 : f32 to vector<32x512xf32>
    %42 = arith.addf %41, %40 : vector<32x512xf32>
    %43 = arith.mulf %32, %42 : vector<32x512xf32>
    %c0_18 = arith.constant 0 : index
    %c0_19 = arith.constant 0 : index
    %44 = vector.load %arg6[%c0_18, %c0_19] : memref<32x512xf32, #tpu.memory_space<vmem>>, vector<32x512xf32>
    tpu.vector_store %arg6[%c0_18, %c0_19], %43 {strides = array<i32>} : memref<32x512xf32, #tpu.memory_space<vmem>>, vector<32x512xf32>,
    return
  }
  func.func @transform_0(%arg0: i32) -> (i32, i32) {
    %c0_i32 = arith.constant 0 : i32
    %c0_i32_0 = arith.constant 0 : i32
    return %arg0, %c0_i32 : i32, i32
  }
  func.func @transform_1(%arg0: i32) -> (i32, i32) {
    %c0_i32 = arith.constant 0 : i32
    %c0_i32_0 = arith.constant 0 : i32
    %c0_i32_1 = arith.constant 0 : i32
    return %c0_i32, %c0_i32_0 : i32, i32
  }
  func.func @transform_2(%arg0: i32) -> (i32, i32) {
    %c0_i32 = arith.constant 0 : i32
    %c0_i32_0 = arith.constant 0 : i32
    %c0_i32_1 = arith.constant 0 : i32
    return %c0_i32, %c0_i32_0 : i32, i32
  }
  func.func @transform_3(%arg0: i32) -> (i32, i32) {
    %c0_i32 = arith.constant 0 : i32
    %c0_i32_0 = arith.constant 0 : i32
    %c0_i32_1 = arith.constant 0 : i32
    return %c0_i32, %c0_i32_0 : i32, i32
  }
  func.func @transform_4(%arg0: i32) -> (i32, i32) {
    %c0_i32 = arith.constant 0 : i32
    %c0_i32_0 = arith.constant 0 : i32
    %c0_i32_1 = arith.constant 0 : i32
    return %c0_i32, %c0_i32_0 : i32, i32
  }
  func.func @transform_5(%arg0: i32) -> (i32, i32) {
    %c0_i32 = arith.constant 0 : i32
    %c0_i32_0 = arith.constant 0 : i32
    return %arg0, %c0_i32 : i32, i32
  }
}

module attributes {stable_mosaic.version = 11 : i64} {
  func.func @_fused_matmul_kernel(%arg0: i32, %arg1: memref<32x512xf32, #tpu.memory_space<vmem>>, %arg2: memref<512x256xbf16, #tpu.memory_space<vmem>>, %arg3: memref<1x256xf32, #tpu.memory_space<vmem>>, %arg4: memref<32x256xf32, #tpu.memory_space<vmem>>, %arg5: memref<32x256xf32, #tpu.memory_space<vmem>>) attributes {dimension_semantics = [#tpu.dimension_semantics<parallel>], iteration_bounds = array<i64: 2>, scalar_prefetch = 0 : i64, scratch_operands = 0 : i64, tpu.core_type = #tpu.core_type<tc>, window_params = [{transform_indices = @transform_0, window_bounds = array<i64: 32, 512>}, {pipeline_mode = #tpu.pipeline_mode<synchronous>, transform_indices = @transform_1, window_bounds = array<i64: 512, 256>}, {pipeline_mode = #tpu.pipeline_mode<synchronous>, transform_indices = @transform_2, window_bounds = array<i64: 1, 256>}, {transform_indices = @transform_3, window_bounds = array<i64: 32, 256>}, {transform_indices = @transform_4, window_bounds = array<i64: 32, 256>}]} {
    %c0 = arith.constant 0 : index
    %c0_0 = arith.constant 0 : index
    %0 = vector.load %arg1[%c0, %c0_0] : memref<32x512xf32, #tpu.memory_space<vmem>>, vector<32x512xf32>
    %1 = arith.truncf %0 : vector<32x512xf32> to vector<32x512xbf16>
    %c0_1 = arith.constant 0 : index
    %c0_2 = arith.constant 0 : index
    %2 = vector.load %arg2[%c0_1, %c0_2] : memref<512x256xbf16, #tpu.memory_space<vmem>>, vector<512x256xbf16>
    %cst = arith.constant dense<0.000000e+00> : vector<32x256xf32>
    %3 = tpu.matmul %1, %2, %cst {dimension_numbers = #tpu.dot_dimension_numbers<[1], [0], [0], [1], [0, 0, 1, 1], [], []>} : vector<32x512xbf16>, vector<512x256xbf16>, vector<32x256xf32> -> vector<32x256xf32>
    %c0_3 = arith.constant 0 : index
    %c0_4 = arith.constant 0 : index
    %4 = vector.load %arg3[%c0_3, %c0_4] : memref<1x256xf32, #tpu.memory_space<vmem>>, vector<1x256xf32>
    %5 = vector.broadcast %4 : vector<1x256xf32> to vector<32x256xf32>
    %6 = arith.addf %3, %5 : vector<32x256xf32>
    %c0_5 = arith.constant 0 : index
    %c0_6 = arith.constant 0 : index
    %7 = vector.load %arg4[%c0_5, %c0_6] : memref<32x256xf32, #tpu.memory_space<vmem>>, vector<32x256xf32>
    %8 = arith.addf %6, %7 : vector<32x256xf32>
    %c0_7 = arith.constant 0 : index
    %c0_8 = arith.constant 0 : index
    %9 = vector.load %arg5[%c0_7, %c0_8] : memref<32x256xf32, #tpu.memory_space<vmem>>, vector<32x256xf32>
    tpu.vector_store %arg5[%c0_7, %c0_8], %8 {strides = array<i32>} : memref<32x256xf32, #tpu.memory_space<vmem>>, vector<32x256xf32>,
    return
  }
  func.func @transform_0(%arg0: i32) -> (i32, i32) {
    %c0_i32 = arith.constant 0 : i32
    %c0_i32_0 = arith.constant 0 : i32
    return %arg0, %c0_i32 : i32, i32
  }
  func.func @transform_1(%arg0: i32) -> (i32, i32) {
    %c0_i32 = arith.constant 0 : i32
    %c0_i32_0 = arith.constant 0 : i32
    %c0_i32_1 = arith.constant 0 : i32
    return %c0_i32, %c0_i32_0 : i32, i32
  }
  func.func @transform_2(%arg0: i32) -> (i32, i32) {
    %c0_i32 = arith.constant 0 : i32
    %c0_i32_0 = arith.constant 0 : i32
    %c0_i32_1 = arith.constant 0 : i32
    return %c0_i32, %c0_i32_0 : i32, i32
  }
  func.func @transform_3(%arg0: i32) -> (i32, i32) {
    %c0_i32 = arith.constant 0 : i32
    %c0_i32_0 = arith.constant 0 : i32
    return %arg0, %c0_i32 : i32, i32
  }
  func.func @transform_4(%arg0: i32) -> (i32, i32) {
    %c0_i32 = arith.constant 0 : i32
    %c0_i32_0 = arith.constant 0 : i32
    return %arg0, %c0_i32 : i32, i32
  }
}

</mosaic_0001>

<bundles_post_ra>
// kernel: _wavlm_loss_forward.26
= control target key start
LH: loop header
LB: loop body
LE: loop exit
PB: predicated region body
PF: predicated region fallthrough
CT: control target
= control target key end

     0   :  { %s858_s12 = smov 0   ;;  %s1042_s0 = inlined_call_operand.vmem [shape: f32[64,384], index: 0, kind: input, shape index: {}]   ;;  %s1043_s1 = inlined_call_operand.vmem [shape: bf16[384,256], index: 1, kind: input, shape index: {}]   ;;  %s1044_s2 = inlined_call_operand.vmem [shape: f32[1,256], index: 2, kind: input, shape index: {}]   ;;  %s1045_s3 = inlined_call_operand.vmem [shape: f32[64,256], index: 3, kind: output, shape index: {}]  }
   0x1 LB: > { %s670_s13 = sadd.s32 4294967295, %s835_s12   ;;  %p674_p0 = scmp.ge.s32.totalorder %s835_s12, 1  ;;  %s835_s12 = sphi %s858_s12, %s13_s12  }
   0x2   : > { %p139_p1 = scmp.lt.s32.totalorder %s835_s12, 3 }
   0x4   : > { %p140_p2 = pnand %p674_p0, %p139_p1 }
   0x5   : > { %v757_v0 = vld [vmem:[%s1043_s1 + $0x4] ss:$8 sps:$4 sm:$0xff] (!%p140_p2)   ;;  %v759_v1 = vld [vmem:[%s1043_s1] ss:$8 sps:$4 sm:$0xff] (!%p140_p2)   ;;  %v837_v2 = vmov (!%p140_p2), 0   ;;  %s675_s11 = sshll.u32 (!%p140_p2), %s670_s13, 2 }
   0x6   : > { %143 = sbr.rel (%p140_p2) target bundleno = 298 (0x12a), region = 32  ;;  %583 = vmatprep.mubr.bf16.mxu0 (!%p140_p2), %v837_v2  ;;  %498 = vmatprep.subr.bf16.mxu1 (!%p140_p2), %v757_v0  ;;  %v760_v3 = vld [vmem:[%s1043_s1 + $0x14] ss:$8 sps:$4 sm:$0xff] (!%p140_p2)   ;;  %v762_v4 = vld [vmem:[%s1043_s1 + $0x10] ss:$8 sps:$4 sm:$0xff] (!%p140_p2)   ;;  %p166_p3 = scmp.lt.s32.totalorder (!%p140_p2), %s675_s11, 7 }
   0x7   : > { %499 = vmatpush1.bf16.msra.mxu1 (!%p140_p2), %v759_v1  ;;  %v763_v5 = vld [vmem:[%s1043_s1 + $0x24] ss:$8 sps:$4 sm:$0xff] (!%p140_p2)   ;;  %v765_v6 = vld [vmem:[%s1043_s1 + $0x20] ss:$8 sps:$4 sm:$0xff] (!%p140_p2)   ;;  %v766_v7 = vld [vmem:[%s1043_s1 + $0x34] ss:$8 sps:$4 sm:$0xff] (!%p140_p2)  }
   0x8   : > { %500 = vmatprep.subr.bf16.mxu1 (!%p140_p2), %v760_v3  ;;  %v768_v8 = vld [vmem:[%s1043_s1 + $0x30] ss:$8 sps:$4 sm:$0xff] (!%p140_p2)   ;;  %v781_v9 = vld [vmem:[%s1043_s1 + $0x104] ss:$8 sps:$4 sm:$0xff] (!%p140_p2)   ;;  %v785_v11 = vld [vmem:[%s1043_s1 + $0x100] ss:$8 sps:$4 sm:$0xff] (!%p140_p2)  }
   0x9   : > { %v769_v10 = vld [vmem:[%s1043_s1 + $0x44] ss:$8 sps:$4 sm:$0xff] (!%p140_p2)   ;;  %551 = vmatprep.subr.bf16.mxu0 (!%p140_p2), %v781_v9  ;;  %v787_v12 = vld [vmem:[%s1043_s1 + $0x114] ss:$8 sps:$4 sm:$0xff] (!%p140_p2)   ;;  %v771_v13 = vld [vmem:[%s1043_s1 + $0x40] ss:$8 sps:$4 sm:$0xff] (!%p140_p2)  }
   0xa   : > { %552 = vmatpush1.bf16.msra.mxu0 (!%p140_p2), %v785_v11  ;;  %v772_v14 = vld [vmem:[%s1043_s1 + $0x54] ss:$8 sps:$4 sm:$0xff] (!%p140_p2)   ;;  %v791_v15 = vld [vmem:[%s1043_s1 + $0x110] ss:$8 sps:$4 sm:$0xff] (!%p140_p2)   ;;  %v793_v16 = vld [vmem:[%s1043_s1 + $0x124] ss:$8 sps:$4 sm:$0xff] (!%p140_p2)  }
   0xb   : > { %501 = vmatpush1.bf16.msra.mxu1 (!%p140_p2), %v762_v4  ;;  %553 = vmatprep.subr.bf16.mxu0 (!%p140_p2), %v787_v12  ;;  %v774_v17 = vld [vmem:[%s1043_s1 + $0x50] ss:$8 sps:$4 sm:$0xff] (!%p140_p2)   ;;  %v797_v18 = vld [vmem:[%s1043_s1 + $0x120] ss:$8 sps:$4 sm:$0xff] (!%p140_p2)   ;;  %v799_v19 = vld [vmem:[%s1043_s1 + $0x134] ss:$8 sps:$4 sm:$0xff] (!%p140_p2)  }
   0xc   : > { %502 = vmatprep.subr.bf16.mxu1 (!%p140_p2), %v763_v5  ;;  %v775_v20 = vld [vmem:[%s1043_s1 + $0x64] ss:$8 sps:$4 sm:$0xff] (!%p140_p2)   ;;  %v803_v21 = vld [vmem:[%s1043_s1 + $0x130] ss:$8 sps:$4 sm:$0xff] (!%p140_p2)   ;;  %v777_v22 = vld [vmem:[%s1043_s1 + $0x60] ss:$8 sps:$4 sm:$0xff] (!%p140_p2)  }
   0xd   : > { %s1047_s11 = smov (!%p166_p3, %s675_s11), 7  ;;  %v805_v23 = vld [vmem:[%s1043_s1 + $0x144] ss:$8 sps:$4 sm:$0xff]   ;;  %v778_v24 = vld [vmem:[%s1043_s1 + $0x74] ss:$8 sps:$4 sm:$0xff]  }
   0xe   : > { %554 = vmatpush1.bf16.msra.mxu0 %v791_v15  ;;  %s747_s10 = smul.u32 24, %s1047_s11  ;;  %v780_v25 = vld [vmem:[%s1043_s1 + $0x70] ss:$8 sps:$4 sm:$0xff]   ;;  %v809_v26 = vld [vmem:[%s1043_s1 + $0x140] ss:$8 sps:$4 sm:$0xff]  }
   0xf   : > { %503 = vmatpush1.bf16.msra.mxu1 %v765_v6  ;;  %555 = vmatprep.subr.bf16.mxu0 %v793_v16  ;;  %v811_v27 = vld [vmem:[%s1043_s1 + $0x154] ss:$8 sps:$4 sm:$0xff]   ;;  %v783_v28 = vld [vmem:[%s1043_s1 + $0x84] ss:$8 sps:$4 sm:$0xff]   ;;  %v815_v29 = vld [vmem:[%s1043_s1 + $0x150] ss:$8 sps:$4 sm:$0xff]  }
  0x10   : > { %504 = vmatprep.subr.bf16.mxu1 %v766_v7  ;;  %s957_s23 = scalar_lea.vmem %s1042_s0, %s747_s10  ;;  %v786_v30 = vld [vmem:[%s1043_s1 + $0x80] ss:$8 sps:$4 sm:$0xff]   ;;  %v817_v31 = vld [vmem:[%s1043_s1 + $0x164] ss:$8 sps:$4 sm:$0xff]   ;;  %v789_v32 = vld [vmem:[%s1043_s1 + $0x94] ss:$8 sps:$4 sm:$0xff]   ;;  %v248_v7 = vlaneseq }
  0x11   : > { %v181_v33 = vld [vmem:[%s957_s23 + $0x8] sm:$0xff]  ;;  %v184_v34 = vld [vmem:[%s957_s23 + $0x20] sm:$0xff]  ;;  %v792_v37 = vld [vmem:[%s1043_s1 + $0x90] ss:$8 sps:$4 sm:$0xff]  }
  0x12   : > { %556 = vmatpush1.bf16.msra.mxu0 %v797_v18  ;;  %v193_v35 = vpack.c.bf16 %v184_v34, %v181_v33  ;;  %v821_v36 = vld [vmem:[%s1043_s1 + $0x160] ss:$8 sps:$4 sm:$0xff]   ;;  %v823_v38 = vld [vmem:[%s1043_s1 + $0x174] ss:$8 sps:$4 sm:$0xff]   ;;  %v795_v39 = vld [vmem:[%s1043_s1 + $0xa4] ss:$8 sps:$4 sm:$0xff]  }
  0x13   : > { %505 = vmatpush1.bf16.msra.mxu1 %v768_v8  ;;  %557 = vmatprep.subr.bf16.mxu0 %v799_v19  ;;  %v827_v40 = vld [vmem:[%s1043_s1 + $0x170] ss:$8 sps:$4 sm:$0xff]   ;;  %v185_v42 = vld [vmem:[%s957_s23 + $0x28] sm:$0xff]  ;;  %v801_v44 = vld [vmem:[%s1043_s1 + $0xb4] ss:$8 sps:$4 sm:$0xff]  }
  0x14   : > { %506 = vmatprep.subr.bf16.mxu1 %v769_v10  ;;  %530 = vmatprep.mubr.bf16.mxu1 %v193_v35  ;;  %v182_v41 = vld [vmem:[%s957_s23 + $0x10] sm:$0xff]  ;;  %v798_v43 = vld [vmem:[%s1043_s1 + $0xa0] ss:$8 sps:$4 sm:$0xff]   ;;  %v807_v47 = vld [vmem:[%s1043_s1 + $0xc4] ss:$8 sps:$4 sm:$0xff]   ;;  %v249_v10 = vshrl.u32 %v248_v7, 7 }
  0x15   : > { %v194_v45 = vpack.c.bf16 %v185_v42, %v182_v41  ;;  %v804_v46 = vld [vmem:[%s1043_s1 + $0xb0] ss:$8 sps:$4 sm:$0xff]   ;;  %v188_v48 = vld [vmem:[%s957_s23 + $0x40] sm:$0xff]  ;;  %v813_v51 = vld [vmem:[%s1043_s1 + $0xd4] ss:$8 sps:$4 sm:$0xff]  }
  0x16   : > { %558 = vmatpush1.bf16.msra.mxu0 %v803_v21  ;;  %v191_v49 = vld [vmem:[%s957_s23 + $0x58] sm:$0xff]  ;;  %v810_v50 = vld [vmem:[%s1043_s1 + $0xc0] ss:$8 sps:$4 sm:$0xff]   ;;  %v819_v54 = vld [vmem:[%s1043_s1 + $0xe4] ss:$8 sps:$4 sm:$0xff]   ;;  %v254_v15 = vsub.s32 1, %v249_v10 }
  0x17   : > { %507 = vmatpush1.bf16.msra.mxu1 %v771_v13  ;;  %559 = vmatprep.subr.bf16.mxu0 %v805_v23  ;;  %v197_v52 = vpack.c.bf16 %v191_v49, %v188_v48  ;;  %v816_v53 = vld [vmem:[%s1043_s1 + $0xd0] ss:$8 sps:$4 sm:$0xff]   ;;  %v822_v55 = vld [vmem:[%s1043_s1 + $0xe0] ss:$8 sps:$4 sm:$0xff]   ;;  %v825_v56 = vld [vmem:[%s1043_s1 + $0xf4] ss:$8 sps:$4 sm:$0xff]  }
  0x18   : > { %508 = vmatprep.subr.bf16.mxu1 %v772_v14  ;;  %v828_v57 = vld [vmem:[%s1043_s1 + $0xf0] ss:$8 sps:$4 sm:$0xff]   ;;  %v180_v58 = vld [vmem:[%s957_s23] sm:$0xff]  ;;  %v189_v1 = vld [vmem:[%s957_s23 + $0x48] sm:$0xff]  ;;  %v250_v13 = vsub.s32 0, %v249_v10 }
  0x19   : > { %v183_v59 = vld [vmem:[%s957_s23 + $0x18] sm:$0xff]  ;;  %v190_v61 = vld [vmem:[%s957_s23 + $0x50] sm:$0xff]  ;;  %v246_v14 = vld [vmem:[%s1044_s2] sm:$0x3] }
  0x1a   : > { %560 = vmatpush1.bf16.msra.mxu0 %v809_v26  ;;  %v187_v60 = vld [vmem:[%s957_s23 + $0x38] sm:$0xff]  ;;  %v192_v62 = vpack.c.bf16 %v183_v59, %v180_v58  ;;  %v186_v0 = vld [vmem:[%s957_s23 + $0x30] sm:$0xff]  ;;  %v251_v16 = vrot.slane %v246_v14, %v250_v13  ;;  %s730_s23 = sshll.u32 %s1047_s11, 4 }
  0x1b   : > { %509 = vmatpush1.bf16.msra.mxu1 %v774_v17  ;;  %561 = vmatprep.subr.bf16.mxu0 %v811_v27  ;;  %v196_v63 = vpack.c.bf16 %v190_v61, %v187_v60  ;;  %v255_v17 = vrot.slane %v246_v14, %v254_v15  ;;  %s177_s20 = scalar_lea.vmem %s1045_s3, %s730_s23 }
  0x1c   : > { %510 = vmatprep.subr.bf16.mxu1 %v775_v20 }
  0x1e   : > { %562 = vmatpush1.bf16.msra.mxu0 %v815_v29 }
  0x1f   : > { %511 = vmatpush1.bf16.msra.mxu1 %v777_v22  ;;  %563 = vmatprep.subr.bf16.mxu0 %v817_v31 }
  0x20   : > { %512 = vmatprep.subr.bf16.mxu1 %v778_v24 }
  0x22   : > { %564 = vmatpush1.bf16.msra.mxu0 %v821_v36 }
  0x23   : > { %513 = vmatpush1.bf16.msra.mxu1 %v780_v25  ;;  %565 = vmatprep.subr.bf16.mxu0 %v823_v38 }
  0x24   : > { %514 = vmatprep.subr.bf16.mxu1 %v783_v28 }
  0x26   : > { %566 = vmatpush1.bf16.msra.mxu0 %v827_v40 }
  0x27   : > { %515 = vmatpush1.bf16.msra.mxu1 %v786_v30 }
  0x28   : > { %516 = vmatprep.subr.bf16.mxu1 %v789_v32 }
  0x29   : > { %584 = vmatmul.mubr.bf16.vlgmr.msra.gmra.mrb[0].mxu0 %v194_v45 }
  0x2a   : > { %593 = vmatprep.mubr.bf16.mxu0 %v837_v2  ;;  %v195_v2 = vpack.c.bf16 %v189_v1, %v186_v0 }
  0x2b   : > { %517 = vmatpush1.bf16.msra.mxu1 %v792_v37 }
  0x2c   : > { %518 = vmatprep.subr.bf16.mxu1 %v795_v39 }
  0x2f   : > { %519 = vmatpush1.bf16.msra.mxu1 %v798_v43 }
  0x30   : > { %520 = vmatprep.subr.bf16.mxu1 %v801_v44 }
  0x31   : > { %594 = vmatmul.mubr.bf16.gmra.mrb[4].mxu0 %v197_v52 }
  0x33   : > { %521 = vmatpush1.bf16.msra.mxu1 %v804_v46 }
  0x34   : > { %522 = vmatprep.subr.bf16.mxu1 %v807_v47 }
  0x37   : > { %523 = vmatpush1.bf16.msra.mxu1 %v810_v50 }
  0x38   : > { %524 = vmatprep.subr.bf16.mxu1 %v813_v51 }
  0x3b   : > { %525 = vmatpush1.bf16.msra.mxu1 %v816_v53 }
  0x3c   : > { %526 = vmatprep.subr.bf16.mxu1 %v819_v54 }
  0x3f   : > { %527 = vmatpush1.bf16.msra.mxu1 %v822_v55 }
  0x40   : > { %528 = vmatprep.subr.bf16.mxu1 %v825_v56 }
  0x43   : > { %529 = vmatpush1.bf16.msra.mxu1 %v828_v57 }
  0x46   : > { %531 = vmatmul.mubr.bf16.vlgmr.msra.gmra.mrb[0].mxu1 %v192_v62 }
  0x47   : > { %540 = vmatprep.mubr.bf16.mxu1 %v196_v63 }
  0x4e   : > { %541 = vmatmul.mubr.bf16.gmra.mrb[4].mxu1 %v195_v2 }
  0xfc   : > { %v585_v3 = vpop.f32.mrb[0].mxu0 }
  0xfd   : > { %v587_v4 = vpop.f32.mrb[1].mxu0 }
  0xfe   : > { %v589_v5 = vpop.f32.mrb[2].mxu0 }
  0xff   : > { %v591_v6 = vpop.f32.mrb[3].mxu0 }
 0x104   : > { %v595_v8 = vpop.f32.mrb[4].mxu0 }
 0x105   : > { %v597_v9 = vpop.f32.mrb[5].mxu0 }
 0x106   : > { %v599_v11 = vpop.f32.mrb[6].mxu0 }
 0x107   : > { %v601_v12 = vpop.f32.mrb[7].mxu0 }
 0x119   : > { %v532_v18 = vpop.f32.mrb[0].mxu1 }
 0x11a   : > { %v533_v19 = vadd.f32 %v532_v18, %v251_v16  ;;  %v534_v20 = vpop.f32.mrb[1].mxu1 }
 0x11b   : > { %v535_v21 = vadd.f32 %v534_v20, %v255_v17  ;;  %v536_v22 = vpop.f32.mrb[2].mxu1 }
 0x11c   : > { %v586_v23 = vadd.f32 %v585_v3, %v533_v19  ;;  %v537_v24 = vadd.f32 %v536_v22, %v251_v16  ;;  %v538_v25 = vpop.f32.mrb[3].mxu1 }
 0x11d   : > { %v588_v26 = vadd.f32 %v587_v4, %v535_v21  ;;  %v539_v27 = vadd.f32 %v538_v25, %v255_v17 }
 0x11e   : > { %604 = vst [vmem:[%s177_s20] sm:$0xff] %v586_v23  ;;  %v590_v28 = vadd.f32 %v589_v5, %v537_v24 }
 0x11f   : > { %605 = vst [vmem:[%s177_s20 + $0x8] sm:$0xff] %v588_v26  ;;  %v592_v29 = vadd.f32 %v591_v6, %v539_v27 }
 0x120   : > { %606 = vst [vmem:[%s177_s20 + $0x10] sm:$0xff] %v590_v28 }
 0x121   : > { %607 = vst [vmem:[%s177_s20 + $0x18] sm:$0xff] %v592_v29  ;;  %v542_v30 = vpop.f32.mrb[4].mxu1 }
 0x122   : > { %v543_v31 = vadd.f32 %v542_v30, %v251_v16  ;;  %v544_v32 = vpop.f32.mrb[5].mxu1 }
 0x123   : > { %v545_v33 = vadd.f32 %v544_v32, %v255_v17  ;;  %v546_v34 = vpop.f32.mrb[6].mxu1 }
 0x124   : > { %v596_v35 = vadd.f32 %v595_v8, %v543_v31  ;;  %v547_v36 = vadd.f32 %v546_v34, %v251_v16  ;;  %v548_v37 = vpop.f32.mrb[7].mxu1 }
 0x125   : > { %v598_v38 = vadd.f32 %v597_v9, %v545_v33  ;;  %v549_v39 = vadd.f32 %v548_v37, %v255_v17 }
 0x126   : > { %608 = vst [vmem:[%s177_s20 + $0x20] sm:$0xff] %v596_v35  ;;  %v600_v40 = vadd.f32 %v599_v11, %v547_v36 }
 0x127   : > { %609 = vst [vmem:[%s177_s20 + $0x28] sm:$0xff] %v598_v38  ;;  %v602_v41 = vadd.f32 %v601_v12, %v549_v39 }
 0x128   : > { %610 = vst [vmem:[%s177_s20 + $0x30] sm:$0xff] %v600_v40 }
 0x129   : > { %611 = vst [vmem:[%s177_s20 + $0x38] sm:$0xff] %v602_v41 }
 0x12a PF: > { %s13_s12 = sadd.s32 1, %s835_s12  }
 0x12b   : > { %p10_p4 = scmp.ge.s32.totalorder %s13_s12, 4  }
 0x12d   :  { %12 = sbr.rel (!%p10_p4) target bundleno = 1 (0x1), region = 62 }

// kernel: _wavlm_loss_forward.27
= control target key start
LH: loop header
LB: loop body
LE: loop exit
PB: predicated region body
PF: predicated region fallthrough
CT: control target
= control target key end

     0   :  { %v41_v0 = vlaneseq  ;;  %v209_v11 = vmov 0.0   ;;  %s295_s0 = inlined_call_operand.vmem [shape: f32[64,256], index: 0, kind: input, shape index: {}, may-alias: {0,1}]   ;;  %s296_s1 = inlined_call_operand.vmem [shape: f32[64,256], index: 1, kind: input, shape index: {}, may-alias: {0,1}]   ;;  %s297_s2 = inlined_call_operand.hbm [shape: f32[1,1], index: 2, kind: output, shape index: {}]  }
   0x1   :  { %v46_v1 = vld [vmem:[%s295_s0] sm:$0xff]  ;;  %v47_v2 = vld [vmem:[%s295_s0 + $0x8] sm:$0xff]  ;;  %v48_v3 = vld [vmem:[%s295_s0 + $0x10] sm:$0xff] }
   0x2   :  { %v49_v4 = vld [vmem:[%s295_s0 + $0x18] sm:$0xff]  ;;  %v50_v5 = vld [vmem:[%s295_s0 + $0x20] sm:$0xff]  ;;  %v51_v6 = vld [vmem:[%s295_s0 + $0x28] sm:$0xff]  ;;  %vm245_vm0 = vcmp.lt.s32.totalorder %v41_v0, 256 }
   0x3   :  { %v52_v8 = vld [vmem:[%s295_s0 + $0x30] sm:$0xff]  ;;  %v53_v9 = vld [vmem:[%s295_s0 + $0x38] sm:$0xff]  ;;  %v172_v10 = vld [vmem:[%s296_s1 + $0x40] sm:$0xff]  ;;  %45 = vst.msk [vmem:[#allocation2] sm:$0x3] %vm245_vm0, %v209_v11 }
   0x4   :  { %v173_v12 = vld [vmem:[%s296_s1 + $0x48] sm:$0xff]  ;;  %v174_v13 = vld [vmem:[%s296_s1 + $0x50] sm:$0xff]  ;;  %v175_v14 = vld [vmem:[%s296_s1 + $0x58] sm:$0xff]  ;;  %v62_v15 = vsub.f32 %v46_v1, %v172_v10 }
   0x5   :  { %v176_v16 = vld [vmem:[%s296_s1 + $0x60] sm:$0xff]  ;;  %v177_v17 = vld [vmem:[%s296_s1 + $0x68] sm:$0xff]  ;;  %v178_v18 = vld [vmem:[%s296_s1 + $0x70] sm:$0xff]  ;;  %v63_v19 = vsub.f32 %v47_v2, %v173_v12  ;;  %v64_v20 = vsub.f32 %v48_v3, %v174_v13  ;;  %v65_v21 = vsub.f32 %v49_v4, %v175_v14 }
   0x6   :  { %v179_v22 = vld [vmem:[%s296_s1 + $0x78] sm:$0xff]  ;;  %v66_v23 = vsub.f32 %v50_v5, %v176_v16  ;;  %v67_v24 = vsub.f32 %v51_v6, %v177_v17  ;;  %v68_v25 = vsub.f32 %v52_v8, %v178_v18  ;;  %v70_v26 = vand.u32 2147483647, %v62_v15 }
   0x7   :  { %7 = vsyncpa [#allocation4], 0  ;;  %v69_v27 = vsub.f32 %v53_v9, %v179_v22  ;;  %v71_v28 = vand.u32 2147483647, %v63_v19  ;;  %v72_v29 = vand.u32 2147483647, %v64_v20 }
   0x8   :  { %v73_v30 = vand.u32 2147483647, %v65_v21  ;;  %v74_v31 = vand.u32 2147483647, %v66_v23  ;;  %v75_v32 = vand.u32 2147483647, %v67_v24 }
   0x9   :  { %v76_v33 = vand.u32 2147483647, %v68_v25  ;;  %v77_v34 = vand.u32 2147483647, %v69_v27  ;;  %v79_v35 = vadd.f32 %v72_v29, %v70_v26  ;;  %v210_v45 = vmov 1966171168  }
   0xa   :  { %v88_v36 = vadd.f32 %v73_v30, %v71_v28  ;;  %v101_v46 = vunpack.c.l.s4 %v210_v45  ;;  %v104_v52 = vshrl.u32 %v41_v0, 7  ;;  %v78_v60 = vld [vmem:[#allocation2] sm:$0x3]  ;;  %vm136_vm1 = vcmask 1040384   ;;  %s211_s1 = smov [#allocation3]  }
   0xb   :  { %v80_v37 = vadd.f32 %v79_v35, %v74_v31  ;;  %s158_s12 = sshll.u32 %s211_s1, 4  ;;  %vm150_vm2 = vcmask 0   ;;  %s159_s12 = int_to_ptr.vmem [resolvable:$true] %s158_s12 }
   0xc   :  { %v89_v38 = vadd.f32 %v88_v36, %v75_v32  ;;  %v102_v51 = vunpack.c.0.s8 %v101_v46  ;;  %v128_v63 = vsub.s32 0, %v104_v52  ;;  %v132_v1 = vsub.s32 1, %v104_v52  ;;  %s185_s14 = scalar_lea.vmem %s159_s12, 16  ;;  %s189_s15 = scalar_lea.vmem %s159_s12, 32 }
   0xd   :  { %v81_v39 = vadd.f32 %v80_v37, %v76_v33  ;;  %p186_p0 = scmp.ne.s32.totalorder %s159_s12, %s185_s14  ;;  %p190_p1 = scmp.lt.s32.totalorder %s159_s12, %s159_s12 }
   0xe   :  { %v90_v40 = vadd.f32 %v89_v38, %v77_v34  ;;  %v105_v57 = vsub.s32 %v102_v51, %v104_v52  ;;  %p191_p2 = scmp.lt.s32.totalorder %s189_s15, %s185_s14 }
   0xf   :  { %v82_v41 = vrot.slane %v81_v39, 4 }
  0x10   :  { %v91_v42 = vrot.slane %v90_v40, 4  ;;  %p192_p3 = por %p191_p2, %p190_p1 }
  0x11   :  { %v83_v43 = vadd.f32 %v82_v41, %v81_v39 }
  0x12   :  { %v92_v44 = vadd.f32 %v91_v42, %v90_v40  ;;  %p193_p4 = pnand %p192_p3, %p186_p0 }
  0x13   :  { %v84_v47 = vrot.slane %v83_v43, 2 }
  0x14   :  { %v93_v48 = vrot.slane %v92_v44, 2 }
  0x15   :  { %v85_v49 = vadd.f32 %v84_v47, %v83_v43 }
  0x16   :  { %v94_v50 = vadd.f32 %v93_v48, %v92_v44 }
  0x17   :  { %v86_v53 = vrot.slane %v85_v49, 1 }
  0x18   :  { %v95_v54 = vrot.slane %v94_v50, 1 }
  0x19   :  { %v87_v55 = vadd.f32 %v86_v53, %v85_v49 }
  0x1a   :  { %v96_v56 = vadd.f32 %v95_v54, %v94_v50 }
  0x1c   :  { %v99_v58 = vcombine.low %v87_v55, %v96_v56 }
  0x1e   :  { %v106_v59 = vrot.slane %v99_v58, %v105_v57 }
  0x20   :  { %v113_v61 = vrot.slane %v106_v59, %v105_v57 }
  0x22   :  { %v115_v62 = vadd.f32 %v113_v61, %v78_v60 }
  0x24   :  { %120 = vst.msk [vmem:[#allocation2] sm:$0x3] %vm245_vm0, %v115_v62 }
  0x2b   :  { %v124_v2 = vld [vmem:[#allocation2] sm:$0x3] }
  0x2c   :  { %v129_v3 = vrot.slane %v124_v2, %v128_v63  ;;  %v133_v4 = vrot.slane %v124_v2, %v132_v1 }
  0x2e   :  { %v137_v0 = vsel %vm136_vm1, %v129_v3, 0.0  ;;  %v138_v5 = vsel %vm136_vm1, %v133_v4, 0.0 }
  0x2f   :  { %v139_v6 = vadd.f32 %v138_v5, %v137_v0 }
  0x31   :  { %140 = vadd.xlane.f32.xlu0 %v139_v6 }
  0xbe   :  { %v141_v8 = vpop.xlane.xlu0 %140 }
  0xbf   :  { %v142_v9 = vrot.slane %v141_v8, 4 }
  0xc1   :  { %v143_v10 = vadd.f32 %v142_v9, %v141_v8 }
  0xc3   :  { %v144_v11 = vrot.slane %v143_v10, 2 }
  0xc5   :  { %v145_v12 = vadd.f32 %v144_v11, %v143_v10 }
  0xc7   :  { %v146_v13 = vrot.slane %v145_v12, 1 }
  0xc9   :  { %v147_v14 = vadd.f32 %v146_v13, %v145_v12 }
  0xcb   :  { %180 = vpush %v147_v14 }
  0xfc   :  { %s181_s13 = spop %180 }
  0xfd   :  { %v149_v7 = vstv %s181_s13 }
  0xfe   :  { %151 = vst.msk [vmem:[#allocation3] sm:$0x1] %vm150_vm2, %v149_v7 }
  0xff   :  { %196 = shalt.err (!%p193_p4)
}
 0x100   :  { %s197_s18 = scalar_lea.hbm %s297_s2, 16 }
 0x101   :  { %p198_p5 = scmp.ne.s32.totalorder %s297_s2, %s197_s18  ;;  %p201_p6 = scmp.lt.u32.totalorder %s197_s18, %s297_s2 }
 0x103   :  { %p203_p7 = pnand %p201_p6, %p198_p5 }
 0x105   :  { %206 = shalt.err (!%p203_p7)
}
 0x106   :  { %161 = dma.vmem_to_hbm [thread:$0]  %s159_s12, 16, %s297_s2, [#allocation4]  }
 0x107   :  { %207 = dma.done.wait [#allocation4], 16  }
 0x108   :  { %208 = vsyncadd [#allocation4], 4294967280 }
 0x109   :  { %165 = vsyncpa [#allocation4], 1 }

// kernel: _wavlm_loss_forward.29
= control target key start
LH: loop header
LB: loop body
LE: loop exit
PB: predicated region body
PF: predicated region fallthrough
CT: control target
= control target key end

     0   :  { %s1098_s0 = inlined_call_operand.vmem [shape: f32[64,768], index: 0, kind: input, shape index: {}, may-alias: {0,1,2}]   ;;  %s1099_s1 = inlined_call_operand.vmem [shape: f32[64,768], index: 1, kind: input, shape index: {}, may-alias: {0,1,2}]   ;;  %s1100_s2 = inlined_call_operand.vmem [shape: f32[64,768], index: 2, kind: input, shape index: {}, may-alias: {0,1,2}]   ;;  %s1101_s3 = inlined_call_operand.vmem [shape: f32[64,256], index: 3, kind: output, shape index: {}]  }
   0x1   :  { %1104 = sst [smem:[#allocation9_spill]] %s1101_s3 }
   0x2   :  { %s899_s12 = smov 0   ;;  %s901_s13 = smov 0  }
   0x3   :  { %s903_s14 = smov 0   ;;  %s905_s15 = smov 0  }
   0x4   :  { %s907_s16 = smov 0   ;;  %s909_s17 = smov 0  }
   0x5   :  { %s911_s18 = smov 0   ;;  %s913_s19 = smov 0  }
   0x6   :  { %s915_s20 = smov 0   ;;  %s917_s21 = smov 0  }
   0x7   :  { %s919_s22 = smov 0  }
   0x8 LB: > { %s22_s24 = sadd.s32 1, %s867_s20  ;;  %s25_s25 = sadd.s32 1, %s871_s21  ;;  %s875_s22 = sphi %s919_s22, %s13_s22   ;;  %s871_s21 = sphi %s917_s21, %s1126_s21   ;;  %s867_s20 = sphi %s915_s20, %s1125_s20   ;;  %s863_s19 = sphi %s913_s19, %s1124_s19   ;;  %s859_s18 = sphi %s911_s18, %s1123_s18   ;;  %s855_s17 = sphi %s909_s17, %s1122_s17   ;;  %s851_s16 = sphi %s907_s16, %s1121_s16   ;;  %s847_s15 = sphi %s905_s15, %s1120_s15   ;;  %s843_s14 = sphi %s903_s14, %s1119_s14   ;;  %s839_s13 = sphi %s901_s13, %s1118_s13   ;;  %s835_s12 = sphi %s899_s12, %s1117_s12  }
   0x9   : > { %p23_p0 = scmp.ge.s32.totalorder %s22_s24, 2  ;;  %s34_s26 = sadd.s32 1, %s855_s17 }
   0xa   : > { %p41_p1 = scmp.ne.s32.totalorder %s855_s17, %s851_s16  ;;  %p42_p2 = scmp.eq.s32.totalorder %s875_s22, 0 }
   0xb   : > { %s1128_s24 = smov (%p23_p0, %s22_s24), 0  ;;  %s1130_s25 = smov (!%p23_p0, %s25_s25), %s871_s21 }
   0xc   : > { %1105 = sst [smem:[#allocation6_spill]] %s1128_s24  ;;  %s30_s27 = ssub.s32 %s867_s20, %s1128_s24 }
   0xd   : > { %p27_p3 = scmp.ge.s32.totalorder %s1130_s25, 4  ;;  %s57_s28 = sadd.s32 2, %s867_s20 }
   0xe   : > { %p972_p4 = por %p42_p2, %p41_p1  ;;  %s58_s30 = sadd.s32 2, %s1128_s24 }
   0xf   : > { %s1132_s25 = smov (%p27_p3, %s1130_s25), 0  ;;  %s60_s4 = ssub.s32 %s57_s28, %s58_s30 }
  0x10   : > { %1107 = sst [smem:[#allocation7_spill]] %s1132_s25  ;;  %s64_s5 = sadd.s32 1, %s847_s15 }
  0x11   : > { %s29_s6 = ssub.s32 %s871_s21, %s1132_s25  ;;  %p71_p5 = scmp.ne.s32.totalorder %s847_s15, %s843_s14 }
  0x12   : > { %s31_s7 = sor.u32 %s30_s27, %s29_s6  ;;  %s61_s8 = sor.u32 %s60_s4, %s29_s6 }
  0x13   : > { %p32_p6 = scmp.eq.s32.totalorder %s31_s7, 0  ;;  %p62_p7 = scmp.eq.s32.totalorder %s61_s8, 0 }
  0x14   : > { %p986_p8 = por %p71_p5, %p42_p2  ;;  %s87_s10 = sadd.s32 4, %s867_s20 }
  0x15   : > { %s992_s11 = scalar_select %p32_p6, %s855_s17, %s34_s26  }
  0x16   : > { %s995_s28 = scalar_select %p62_p7, %s847_s15, %s64_s5  }
  0x17   : > { %1109 = sst [smem:[#allocation8_spill]] %s992_s11  ;;  %s88_s30 = sadd.s32 4, %s1128_s24 }
  0x18   : > { %s94_s23 = sadd.s32 1, %s839_s13  ;;  %s90_s25 = ssub.s32 %s87_s10, %s88_s30 }
  0x19   : > { %p101_p9 = scmp.ne.s32.totalorder %s839_s13, %s835_s12  ;;  %s91_s27 = sor.u32 %s90_s25, %s29_s6 }
  0x1a   : > { %s1110_s3 = sadd.s32 4294967295, %s875_s22   ;;  %p92_p11 = scmp.eq.s32.totalorder %s91_s27, 0 }
  0x1b   : > { %p133_p10 = scmp.eq.s32.totalorder %s1110_s3, 7  ;;  %p1005_p12 = por %p101_p9, %p42_p2 }
  0x1c   : > { %s1017_s26 = scalar_select %p92_p11, %s839_s13, %s94_s23  }
  0x1d   : > { %p1012_p13 = por %p133_p10, %p41_p1  ;;  %p648_p0 = scmp.ge.s32.totalorder %s875_s22, 8 }
  0x1f   : > { %155 = sbr.rel (%p648_p0) target bundleno = 62 (0x3e), region = 16 }
  0x26   : > { %158 = sbr.rel (!%p972_p4) target bundleno = 46 (0x2e), region = 20  ;;  %s160_s3 = sand.u32 (%p972_p4), 1, %s855_s17  }
  0x27   : > { %s690_s25 = smul.u32 (%p972_p4), 12, %s871_s21  ;;  %s649_s5 = sshll.u32 (%p972_p4), %s160_s3, 4 }
  0x28   : > { %s162_s23 = scalar_lea.vmem (%p972_p4), [#allocation2], %s649_s5 }
  0x29   : > { %s165_s6 = sadd.s32 (%p972_p4), %s867_s20, %s690_s25 }
  0x2a   : > { %s652_s8 = sshll.u32 (%p972_p4), %s165_s6, 3 }
  0x2b   : > { %s167_s27 = scalar_lea.vmem (%p972_p4), %s1098_s0, %s652_s8 }
  0x2c   : > { %v197_v0 = vld [vmem:[%s167_s27] sm:$0xff] (%p972_p4)  ;;  %v199_v1 = vld [vmem:[%s167_s27 + $0x30] sm:$0xff] (%p972_p4) }
  0x2d   : > { %198 = vst [vmem:[%s162_s23] sm:$0xff] %v197_v0  ;;  %200 = vst [vmem:[%s162_s23 + $0x8] sm:$0xff] %v199_v1 }
  0x2e PF: > { %206 = sbr.rel (!%p986_p8) target bundleno = 54 (0x36), region = 58  ;;  %s208_s29 = sand.u32 (%p986_p8), 1, %s847_s15  }
  0x2f   : > { %s551_s3 = smul.u32 (%p986_p8), 12, %s871_s21  ;;  %s653_s25 = sshll.u32 (%p986_p8), %s208_s29, 4 }
  0x30   : > { %s210_s5 = scalar_lea.vmem (%p986_p8), [#allocation3], %s653_s25 }
  0x31   : > { %s552_s6 = sadd.s32 (%p986_p8), %s867_s20, %s551_s3 }
  0x32   : > { %s654_s24 = sshll.u32 (%p986_p8), %s552_s6, 3 }
  0x33   : > { %s554_s8 = scalar_lea.vmem (%p986_p8), %s1099_s1, %s654_s24 }
  0x34   : > { %v655_v2 = vld [vmem:[%s554_s8 + $0x10] sm:$0xff] (%p986_p8)  ;;  %v656_v3 = vld [vmem:[%s554_s8 + $0x40] sm:$0xff] (%p986_p8) }
  0x35   : > { %247 = vst [vmem:[%s210_s5] sm:$0xff] %v655_v2  ;;  %249 = vst [vmem:[%s210_s5 + $0x8] sm:$0xff] %v656_v3 }
  0x36 PF: > { %255 = sbr.rel (!%p1005_p12) target bundleno = 62 (0x3e), region = 96  ;;  %s257_s9 = sand.u32 (%p1005_p12), 1, %s839_s13  }
  0x37   : > { %s558_s30 = smul.u32 (%p1005_p12), 12, %s871_s21  ;;  %s657_s27 = sshll.u32 (%p1005_p12), %s257_s9, 4 }
  0x38   : > { %s259_s25 = scalar_lea.vmem (%p1005_p12), [#allocation4], %s657_s27 }
  0x39   : > { %s559_s23 = sadd.s32 (%p1005_p12), %s867_s20, %s558_s30 }
  0x3a   : > { %s658_s29 = sshll.u32 (%p1005_p12), %s559_s23, 3 }
  0x3b   : > { %s561_s24 = scalar_lea.vmem (%p1005_p12), %s1100_s2, %s658_s29 }
  0x3c   : > { %v659_v4 = vld [vmem:[%s561_s24 + $0x20] sm:$0xff] (%p1005_p12)  ;;  %v660_v5 = vld [vmem:[%s561_s24 + $0x50] sm:$0xff] (%p1005_p12) }
  0x3d   : > { %296 = vst [vmem:[%s259_s25] sm:$0xff] %v659_v4  ;;  %298 = vst [vmem:[%s259_s25 + $0x8] sm:$0xff] %v660_v5 }
  0x3e PF: > { %p661_p1 = scmp.ge.s32.totalorder %s875_s22, 1  ;;  %p303_p2 = scmp.lt.s32.totalorder %s875_s22, 9 }
  0x40   : > { %p304_p3 = pnand %p661_p1, %p303_p2 }
  0x41   : > { %s317_s4 = sand.u32 (!%p304_p3), 1, %s843_s14   ;;  %s310_s6 = sand.u32 (!%p304_p3), 1, %s851_s16   ;;  %v877_v6 = vmov (!%p304_p3), 0.0   ;;  %vm878_vm0 = vmmov (!%p304_p3), 0   ;;  %vm410_vm1 = vcmask (!%p304_p3), 130048  }
  0x42   : > { %307 = sbr.rel (%p304_p3) target bundleno = 835 (0x343), region = 134  ;;  %678 = vmatprep.subr.bf16.mxu0 (!%p304_p3), %v877_v6  ;;  %s663_s10 = sshll.u32 (!%p304_p3), %s317_s4, 4  ;;  %680 = vmatprep.mubr.msk.bf16.mxu0 (!%p304_p3), %vm878_vm0, %v877_v6 }
  0x43   : > { %s1048_s8 = sshll.u32 (!%p304_p3), %s310_s6, 4  ;;  %684 = vmatprep.subr.bf16.mxu1 (!%p304_p3), %v877_v6  ;;  %686 = vmatprep.mubr.msk.bf16.mxu1 (!%p304_p3), %vm878_vm0, %v877_v6  ;;  %s319_s5 = scalar_lea.vmem (!%p304_p3), [#allocation3], %s663_s10 }
  0x44   : > { %v364_v7 = vld [vmem:[%s319_s5] sm:$0xff] (!%p304_p3)  ;;  %v365_v8 = vld [vmem:[%s319_s5 + $0x8] sm:$0xff] (!%p304_p3)  ;;  %s312_s9 = scalar_lea.vmem (!%p304_p3), [#allocation2], %s1048_s8  ;;  %s324_s14 = sand.u32 (!%p304_p3), 1, %s835_s12  }
  0x45   : > { %v366_v9 = vpack.c.bf16 (!%p304_p3), %v365_v8, %v364_v7  ;;  %v361_v10 = vld [vmem:[%s312_s9] sm:$0xff] (!%p304_p3)  ;;  %v362_v11 = vld [vmem:[%s312_s9 + $0x8] sm:$0xff] (!%p304_p3)  ;;  %s664_s16 = sshll.u32 (!%p304_p3), %s324_s14, 4  ;;  %s353_s12 = scalar_lea.vmem (!%p304_p3), [#allocation5], %s1048_s8 }
  0x46   : > { %v363_v12 = vpack.c.bf16 (!%p304_p3), %v362_v11, %v361_v10  ;;  %s326_s30 = scalar_lea.vmem (!%p304_p3), [#allocation4], %s664_s16 }
  0x47   : > { %679 = vmatpush3.bf16.xpose.msra.mxu0 (!%p304_p3), %v366_v9  ;;  %v434_v31 = vld [vmem:[%s326_s30] sm:$0xff] (!%p304_p3)  ;;  %v435_v32 = vld [vmem:[%s326_s30 + $0x8] sm:$0xff] (!%p304_p3) }
  0x48   : > { %v436_v33 = vpack.c.bf16 (!%p304_p3), %v435_v32, %v434_v31 }
  0x49   : > { %s673_s27 = sshll.u32 (%p1012_p13), %s863_s19, 2  ;;  %s1113_s24 = sld [smem:[#allocation9_spill]] (%p1012_p13) }
  0x4a   : > { %685 = vmatpush3.bf16.msra.mxu1 %v436_v33  ;;  %s492_s23 = sadd.s32 (%p1012_p13), %s859_s18, %s673_s27 }
  0x4b   : > { %s670_s29 = sshll.u32 (%p1012_p13), %s492_s23, 3 }
  0x4e   : > { %681 = vmatmul.mubr.bf16.vlgmr.msra.gmra.mrb[0].mxu0 %v363_v12 }
  0x4f   : > { %s494_s25 = scalar_lea.vmem (%p1012_p13), %s1113_s24, %s670_s29 }
 0x121   : > { %v401_v13 = vpop.f32.mrb[0].mxu0 }
 0x122   : > { %v408_v14 = vmul.f32 0.088388346, %v401_v13  ;;  %v682_v15 = vpop.f32.mrb[1].mxu0 }
 0x123   : > { %v404_v16 = vpop.f32.mrb[2].mxu0 }
 0x124   : > { %v409_v17 = vmul.f32 0.088388346, %v404_v16  ;;  %v683_v18 = vpop.f32.mrb[3].mxu0  ;;  %v411_v19 = vsel %vm410_vm1, %v408_v14, -inf }
 0x125   : > { %412 = vmax.xlane.f32.xlu0 %v411_v19 }
 0x126   : > { %v414_v20 = vsel %vm410_vm1, %v409_v17, -inf }
 0x129   : > { %415 = vmax.xlane.f32.xlu0 %v414_v20 }
 0x1b2   : > { %v413_v21 = vpop.xlane.xlu0 %412 }
 0x1b3   : > { %v417_v22 = vsub.f32 %v408_v14, %v413_v21 }
 0x1b5   : > { %v419_v23 = vmul.f32 1.442695, %v417_v22 }
 0x1b6   : > { %v416_v24 = vpop.xlane.xlu0 %415 }
 0x1b7   : > { %781 = vpow2.f32 %v419_v23  ;;  %v418_v25 = vsub.f32 %v409_v17, %v416_v24 }
 0x1b9   : > { %v421_v26 = vmul.f32 1.442695, %v418_v25 }
 0x1bb   : > { %783 = vpow2.f32 %v421_v26 }
 0x1c1   : > { %v782_v27 = vpop.eup %781 }
 0x1c2   : > { %v423_v28 = vsel %vm410_vm1, %v782_v27, 0.0 }
 0x1c3   : > { %424 = vadd.xlane.f32.xlu1 %v423_v28 }
 0x1c5   : > { %v784_v29 = vpop.eup %783 }
 0x1c6   : > { %v426_v30 = vsel %vm410_vm1, %v784_v29, 0.0 }
 0x1c7   : > { %427 = vadd.xlane.f32.xlu1 %v426_v30 }
 0x250   : > { %v425_v34 = vpop.xlane.xlu1 %424 }
 0x251   : > { %785 = vrcp.f32 %v425_v34 }
 0x254   : > { %v428_v35 = vpop.xlane.xlu1 %427 }
 0x255   : > { %787 = vrcp.f32 %v428_v35 }
 0x25b   : > { %v786_v36 = vpop.eup %785 }
 0x25c   : > { %v431_v38 = vmul.f32 %v786_v36, %v782_v27 }
 0x25f   : > { %v788_v37 = vpop.eup %787 }
 0x260   : > { %v432_v39 = vmul.f32 %v788_v37, %v784_v29 }
 0x262   : > { %v433_v40 = vpack.c.bf16 %v432_v39, %v431_v38 }
 0x264   : > { %687 = vmatmul.mubr.msk.bf16.vlgmr.msra.gmra.mrb[0].mxu1 %vm410_vm1, %v433_v40 }
 0x334   : > { %489 = sbr.rel (!%p1012_p13) target bundleno = 835 (0x343), region = 150 }
 0x337   : > { %v474_v41 = vpop.f32.mrb[0].mxu1 }
 0x338   : > { %481 = vst [vmem:[%s353_s12] sm:$0xff] %v474_v41  ;;  %v688_v42 = vpop.f32.mrb[1].mxu1 }
 0x339   : > { %v477_v43 = vpop.f32.mrb[2].mxu1 }
 0x33a   : > { %482 = vst [vmem:[%s353_s12 + $0x8] sm:$0xff] %v477_v43  ;;  %v689_v44 = vpop.f32.mrb[3].mxu1 }
 0x33f   : > { %v524_v45 = vld [vmem:[%s353_s12] sm:$0xff] }
 0x340   : > { %525 = vst [vmem:[%s494_s25] sm:$0xff] %v524_v45 }
 0x341   : > { %v526_v46 = vld [vmem:[%s353_s12 + $0x8] sm:$0xff] }
 0x342   : > { %527 = vst [vmem:[%s494_s25 + $0x10] sm:$0xff] %v526_v46 }
 0x343 PF: > { %s13_s22 = sadd.s32 1, %s875_s22   ;;  %s1114_s18 = sld [smem:[#allocation8_spill]] }
 0x344   : > { %p10_p4 = scmp.ge.s32.totalorder %s13_s22, 10   ;;  %s1115_s7 = sld [smem:[#allocation6_spill]] }
 0x345   : > { %s1116_s4 = sld [smem:[#allocation7_spill]]  ;;  %s1117_s12 = smov %s839_s13 }
 0x346   : > { %s1118_s13 = smov %s1017_s26  ;;  %s1119_s14 = smov %s847_s15 }
 0x347   : > { %s1120_s15 = smov %s995_s28  ;;  %s1121_s16 = smov %s855_s17 }
 0x348   : > { %s1124_s19 = smov %s871_s21  ;;  %12 = sbr.rel (!%p10_p4) target bundleno = 8 (0x8), region = 235 }
 0x349   : > { %s1122_s17 = smov %s1114_s18  ;;  %s1123_s18 = smov %s867_s20 }
 0x34a   : > { %s1125_s20 = smov %s1115_s7 }
 0x34b   : > { %s1126_s21 = smov %s1116_s4 }

// kernel: _wavlm_loss_forward.30
= control target key start
LH: loop header
LB: loop body
LE: loop exit
PB: predicated region body
PF: predicated region fallthrough
CT: control target
= control target key end

     0   :  { %s766_s15 = smov 0   ;;  %s900_s0 = inlined_call_operand.vmem [shape: f32[64,256], index: 0, kind: input, shape index: {}]   ;;  %s901_s1 = inlined_call_operand.vmem [shape: bf16[256,256], index: 1, kind: input, shape index: {}]   ;;  %s902_s2 = inlined_call_operand.vmem [shape: f32[1,256], index: 2, kind: input, shape index: {}]   ;;  %s903_s3 = inlined_call_operand.vmem [shape: f32[64,256], index: 3, kind: input, shape index: {}]   ;;  %s904_s4 = inlined_call_operand.vmem [shape: f32[64,256], index: 4, kind: output, shape index: {}]  }
   0x1 LB: > { %s594_s16 = sadd.s32 4294967295, %s739_s15   ;;  %p598_p0 = scmp.ge.s32.totalorder %s739_s15, 1  ;;  %s739_s15 = sphi %s766_s15, %s14_s15  }
   0x2   : > { %p176_p1 = scmp.lt.s32.totalorder %s739_s15, 3 }
   0x4   : > { %p177_p2 = pnand %p598_p0, %p176_p1 }
   0x5   : > { %v685_v0 = vld [vmem:[%s901_s1 + $0x4] ss:$8 sps:$4 sm:$0xff] (!%p177_p2)   ;;  %v687_v1 = vld [vmem:[%s901_s1] ss:$8 sps:$4 sm:$0xff] (!%p177_p2)   ;;  %v688_v2 = vld [vmem:[%s901_s1 + $0x14] ss:$8 sps:$4 sm:$0xff] (!%p177_p2)   ;;  %v277_v44 = vlaneseq (!%p177_p2) }
   0x6   : > { %180 = sbr.rel (%p177_p2) target bundleno = 290 (0x122), region = 36  ;;  %447 = vmatprep.subr.bf16.mxu0 (!%p177_p2), %v685_v0  ;;  %645 = vmatprep.subr.bf16.mxu1 (!%p177_p2), %v685_v0  ;;  %v690_v3 = vld [vmem:[%s901_s1 + $0x10] ss:$8 sps:$4 sm:$0xff] (!%p177_p2)   ;;  %v691_v4 = vld [vmem:[%s901_s1 + $0x24] ss:$8 sps:$4 sm:$0xff] (!%p177_p2)   ;;  %s599_s27 = sshll.u32 (!%p177_p2), %s594_s16, 2 }
   0x7   : > { %448 = vmatpush1.bf16.msra.mxu0 (!%p177_p2), %v687_v1  ;;  %661 = vmatpush1.bf16.msra.mxu1 (!%p177_p2), %v687_v1  ;;  %v693_v5 = vld [vmem:[%s901_s1 + $0x20] ss:$8 sps:$4 sm:$0xff] (!%p177_p2)   ;;  %p211_p3 = scmp.lt.s32.totalorder (!%p177_p2), %s599_s27, 7  ;;  %v694_v6 = vld [vmem:[%s901_s1 + $0x34] ss:$8 sps:$4 sm:$0xff] (!%p177_p2)   ;;  %v278_v45 = vshrl.u32 (!%p177_p2), %v277_v44, 7 }
   0x8   : > { %449 = vmatprep.subr.bf16.mxu0 (!%p177_p2), %v688_v2  ;;  %646 = vmatprep.subr.bf16.mxu1 (!%p177_p2), %v688_v2  ;;  %v696_v7 = vld [vmem:[%s901_s1 + $0x30] ss:$8 sps:$4 sm:$0xff] (!%p177_p2)   ;;  %v697_v8 = vld [vmem:[%s901_s1 + $0x44] ss:$8 sps:$4 sm:$0xff] (!%p177_p2)   ;;  %v699_v9 = vld [vmem:[%s901_s1 + $0x40] ss:$8 sps:$4 sm:$0xff] (!%p177_p2)  }
   0x9   : > { %v700_v10 = vld [vmem:[%s901_s1 + $0x54] ss:$8 sps:$4 sm:$0xff] (!%p177_p2)   ;;  %v702_v11 = vld [vmem:[%s901_s1 + $0x50] ss:$8 sps:$4 sm:$0xff] (!%p177_p2)   ;;  %v703_v12 = vld [vmem:[%s901_s1 + $0x64] ss:$8 sps:$4 sm:$0xff] (!%p177_p2)  }
   0xa   : > { %v705_v18 = vld [vmem:[%s901_s1 + $0x60] ss:$8 sps:$4 sm:$0xff] (!%p177_p2)   ;;  %v706_v20 = vld [vmem:[%s901_s1 + $0x74] ss:$8 sps:$4 sm:$0xff] (!%p177_p2)   ;;  %v708_v21 = vld [vmem:[%s901_s1 + $0x70] ss:$8 sps:$4 sm:$0xff] (!%p177_p2)  }
   0xb   : > { %450 = vmatpush1.bf16.msra.mxu0 (!%p177_p2), %v690_v3  ;;  %662 = vmatpush1.bf16.msra.mxu1 (!%p177_p2), %v690_v3  ;;  %v709_v22 = vld [vmem:[%s901_s1 + $0x84] ss:$8 sps:$4 sm:$0xff] (!%p177_p2)   ;;  %v711_v23 = vld [vmem:[%s901_s1 + $0x80] ss:$8 sps:$4 sm:$0xff] (!%p177_p2)   ;;  %v712_v24 = vld [vmem:[%s901_s1 + $0x94] ss:$8 sps:$4 sm:$0xff] (!%p177_p2)  }
   0xc   : > { %451 = vmatprep.subr.bf16.mxu0 (!%p177_p2), %v691_v4  ;;  %647 = vmatprep.subr.bf16.mxu1 (!%p177_p2), %v691_v4  ;;  %v714_v25 = vld [vmem:[%s901_s1 + $0x90] ss:$8 sps:$4 sm:$0xff] (!%p177_p2)   ;;  %v715_v26 = vld [vmem:[%s901_s1 + $0xa4] ss:$8 sps:$4 sm:$0xff] (!%p177_p2)   ;;  %v717_v27 = vld [vmem:[%s901_s1 + $0xa0] ss:$8 sps:$4 sm:$0xff] (!%p177_p2)  }
   0xd   : > { %s906_s27 = smov (!%p211_p3, %s599_s27), 7  ;;  %v718_v28 = vld [vmem:[%s901_s1 + $0xb4] ss:$8 sps:$4 sm:$0xff]   ;;  %v720_v29 = vld [vmem:[%s901_s1 + $0xb0] ss:$8 sps:$4 sm:$0xff]   ;;  %v279_v46 = vsub.s32 0, %v278_v45 }
   0xe   : > { %s804_s12 = sshll.u32 %s906_s27, 4  ;;  %v721_v30 = vld [vmem:[%s901_s1 + $0xc4] ss:$8 sps:$4 sm:$0xff]   ;;  %v723_v31 = vld [vmem:[%s901_s1 + $0xc0] ss:$8 sps:$4 sm:$0xff]   ;;  %v283_v48 = vsub.s32 1, %v278_v45 }
   0xf   : > { %452 = vmatpush1.bf16.msra.mxu0 %v693_v5  ;;  %663 = vmatpush1.bf16.msra.mxu1 %v693_v5  ;;  %s813_s18 = scalar_lea.vmem %s900_s0, %s804_s12  ;;  %v724_v32 = vld [vmem:[%s901_s1 + $0xd4] ss:$8 sps:$4 sm:$0xff]   ;;  %v726_v33 = vld [vmem:[%s901_s1 + $0xd0] ss:$8 sps:$4 sm:$0xff]   ;;  %v727_v34 = vld [vmem:[%s901_s1 + $0xe4] ss:$8 sps:$4 sm:$0xff]   ;;  %s229_s21 = scalar_lea.vmem %s904_s4, %s804_s12 }
  0x10   : > { %453 = vmatprep.subr.bf16.mxu0 %v694_v6  ;;  %648 = vmatprep.subr.bf16.mxu1 %v694_v6  ;;  %v232_v13 = vld [vmem:[%s813_s18 + $0x8] sm:$0xff]  ;;  %v234_v14 = vld [vmem:[%s813_s18 + $0x18] sm:$0xff]  ;;  %v231_v38 = vld [vmem:[%s813_s18] sm:$0xff] }
  0x11   : > { %v240_v15 = vpack.c.bf16 %v234_v14, %v232_v13  ;;  %v236_v16 = vld [vmem:[%s813_s18 + $0x28] sm:$0xff]  ;;  %v238_v17 = vld [vmem:[%s813_s18 + $0x38] sm:$0xff]  ;;  %v233_v39 = vld [vmem:[%s813_s18 + $0x10] sm:$0xff] }
  0x12   : > { %v242_v19 = vpack.c.bf16 %v238_v17, %v236_v16  ;;  %v729_v35 = vld [vmem:[%s901_s1 + $0xe0] ss:$8 sps:$4 sm:$0xff]   ;;  %v730_v36 = vld [vmem:[%s901_s1 + $0xf4] ss:$8 sps:$4 sm:$0xff]   ;;  %v732_v37 = vld [vmem:[%s901_s1 + $0xf0] ss:$8 sps:$4 sm:$0xff]   ;;  %v239_v42 = vpack.c.bf16 %v233_v39, %v231_v38 }
  0x13   : > { %454 = vmatpush1.bf16.msra.mxu0 %v696_v7  ;;  %664 = vmatpush1.bf16.msra.mxu1 %v696_v7  ;;  %v235_v40 = vld [vmem:[%s813_s18 + $0x20] sm:$0xff]  ;;  %v237_v41 = vld [vmem:[%s813_s18 + $0x30] sm:$0xff]  ;;  %s222_s18 = scalar_lea.vmem %s903_s3, %s804_s12 }
  0x14   : > { %455 = vmatprep.subr.bf16.mxu0 %v697_v8  ;;  %649 = vmatprep.subr.bf16.mxu1 %v697_v8  ;;  %v241_v43 = vpack.c.bf16 %v237_v41, %v235_v40  ;;  %v275_v47 = vld [vmem:[%s902_s2] sm:$0x3]  ;;  %v501_v58 = vld [vmem:[%s222_s18 + $0x8] sm:$0xff]  ;;  %v502_v0 = vld [vmem:[%s222_s18 + $0x10] sm:$0xff] }
  0x15   : > { %479 = vmatprep.mubr.bf16.mxu0 %v240_v15  ;;  %489 = vmatprep.mubr.bf16.mxu1 %v242_v19  ;;  %v280_v49 = vrot.slane %v275_v47, %v279_v46  ;;  %v284_v50 = vrot.slane %v275_v47, %v283_v48  ;;  %v500_v52 = vld [vmem:[%s222_s18] sm:$0xff]  ;;  %v505_v60 = vld [vmem:[%s222_s18 + $0x28] sm:$0xff]  ;;  %v506_v2 = vld [vmem:[%s222_s18 + $0x30] sm:$0xff] }
  0x16   : > { %v504_v54 = vld [vmem:[%s222_s18 + $0x20] sm:$0xff]  ;;  %v503_v8 = vld [vmem:[%s222_s18 + $0x18] sm:$0xff] }
  0x17   : > { %456 = vmatpush1.bf16.msra.mxu0 %v699_v9  ;;  %665 = vmatpush1.bf16.msra.mxu1 %v699_v9 }
  0x18   : > { %457 = vmatprep.subr.bf16.mxu0 %v700_v10  ;;  %650 = vmatprep.subr.bf16.mxu1 %v700_v10  ;;  %v507_v10 = vld [vmem:[%s222_s18 + $0x38] sm:$0xff] }
  0x1b   : > { %458 = vmatpush1.bf16.msra.mxu0 %v702_v11  ;;  %666 = vmatpush1.bf16.msra.mxu1 %v702_v11 }
  0x1c   : > { %459 = vmatprep.subr.bf16.mxu0 %v703_v12  ;;  %651 = vmatprep.subr.bf16.mxu1 %v703_v12 }
  0x1f   : > { %460 = vmatpush1.bf16.msra.mxu0 %v705_v18  ;;  %667 = vmatpush1.bf16.msra.mxu1 %v705_v18 }
  0x20   : > { %461 = vmatprep.subr.bf16.mxu0 %v706_v20  ;;  %652 = vmatprep.subr.bf16.mxu1 %v706_v20 }
  0x23   : > { %462 = vmatpush1.bf16.msra.mxu0 %v708_v21  ;;  %668 = vmatpush1.bf16.msra.mxu1 %v708_v21 }
  0x24   : > { %463 = vmatprep.subr.bf16.mxu0 %v709_v22  ;;  %653 = vmatprep.subr.bf16.mxu1 %v709_v22 }
  0x27   : > { %464 = vmatpush1.bf16.msra.mxu0 %v711_v23  ;;  %669 = vmatpush1.bf16.msra.mxu1 %v711_v23 }
  0x28   : > { %465 = vmatprep.subr.bf16.mxu0 %v712_v24  ;;  %654 = vmatprep.subr.bf16.mxu1 %v712_v24 }
  0x2b   : > { %466 = vmatpush1.bf16.msra.mxu0 %v714_v25  ;;  %670 = vmatpush1.bf16.msra.mxu1 %v714_v25 }
  0x2c   : > { %467 = vmatprep.subr.bf16.mxu0 %v715_v26  ;;  %655 = vmatprep.subr.bf16.mxu1 %v715_v26 }
  0x2f   : > { %468 = vmatpush1.bf16.msra.mxu0 %v717_v27  ;;  %671 = vmatpush1.bf16.msra.mxu1 %v717_v27 }
  0x30   : > { %469 = vmatprep.subr.bf16.mxu0 %v718_v28  ;;  %656 = vmatprep.subr.bf16.mxu1 %v718_v28 }
  0x33   : > { %470 = vmatpush1.bf16.msra.mxu0 %v720_v29  ;;  %672 = vmatpush1.bf16.msra.mxu1 %v720_v29 }
  0x34   : > { %471 = vmatprep.subr.bf16.mxu0 %v721_v30  ;;  %657 = vmatprep.subr.bf16.mxu1 %v721_v30 }
  0x37   : > { %472 = vmatpush1.bf16.msra.mxu0 %v723_v31  ;;  %673 = vmatpush1.bf16.msra.mxu1 %v723_v31 }
  0x38   : > { %473 = vmatprep.subr.bf16.mxu0 %v724_v32  ;;  %658 = vmatprep.subr.bf16.mxu1 %v724_v32 }
  0x3b   : > { %474 = vmatpush1.bf16.msra.mxu0 %v726_v33  ;;  %674 = vmatpush1.bf16.msra.mxu1 %v726_v33 }
  0x3c   : > { %475 = vmatprep.subr.bf16.mxu0 %v727_v34  ;;  %659 = vmatprep.subr.bf16.mxu1 %v727_v34 }
  0x3f   : > { %476 = vmatpush1.bf16.msra.mxu0 %v729_v35  ;;  %675 = vmatpush1.bf16.msra.mxu1 %v729_v35 }
  0x40   : > { %477 = vmatprep.subr.bf16.mxu0 %v730_v36  ;;  %660 = vmatprep.subr.bf16.mxu1 %v730_v36 }
  0x43   : > { %478 = vmatpush1.bf16.msra.mxu0 %v732_v37  ;;  %676 = vmatpush1.bf16.msra.mxu1 %v732_v37 }
  0x46   : > { %480 = vmatmul.mubr.bf16.vlgmr.msra.gmra.mrb[0].mxu0 %v239_v42  ;;  %490 = vmatmul.mubr.bf16.vlgmr.msra.gmra.mrb[0].mxu1 %v241_v43 }
 0x119   : > { %v481_v51 = vpop.f32.mrb[0].mxu0  ;;  %v491_v53 = vpop.f32.mrb[0].mxu1 }
 0x11a   : > { %v482_v55 = vadd.f32 %v481_v51, %v280_v49  ;;  %v492_v56 = vadd.f32 %v491_v53, %v280_v49  ;;  %v483_v57 = vpop.f32.mrb[1].mxu0  ;;  %v493_v59 = vpop.f32.mrb[1].mxu1 }
 0x11b   : > { %v484_v61 = vadd.f32 %v483_v57, %v284_v50  ;;  %v494_v62 = vadd.f32 %v493_v59, %v284_v50  ;;  %v485_v63 = vpop.f32.mrb[2].mxu0  ;;  %v495_v1 = vpop.f32.mrb[2].mxu1 }
 0x11c   : > { %v508_v3 = vadd.f32 %v500_v52, %v482_v55  ;;  %v512_v4 = vadd.f32 %v504_v54, %v492_v56  ;;  %v486_v5 = vadd.f32 %v485_v63, %v280_v49  ;;  %v496_v6 = vadd.f32 %v495_v1, %v280_v49  ;;  %v487_v7 = vpop.f32.mrb[3].mxu0  ;;  %v497_v9 = vpop.f32.mrb[3].mxu1 }
 0x11d   : > { %v509_v11 = vadd.f32 %v501_v58, %v484_v61  ;;  %v513_v12 = vadd.f32 %v505_v60, %v494_v62  ;;  %v488_v13 = vadd.f32 %v487_v7, %v284_v50  ;;  %v498_v14 = vadd.f32 %v497_v9, %v284_v50 }
 0x11e   : > { %516 = vst [vmem:[%s229_s21] sm:$0xff] %v508_v3  ;;  %v510_v15 = vadd.f32 %v502_v0, %v486_v5  ;;  %v514_v16 = vadd.f32 %v506_v2, %v496_v6  ;;  %520 = vst [vmem:[%s229_s21 + $0x20] sm:$0xff] %v512_v4 }
 0x11f   : > { %517 = vst [vmem:[%s229_s21 + $0x8] sm:$0xff] %v509_v11  ;;  %v511_v17 = vadd.f32 %v503_v8, %v488_v13  ;;  %v515_v18 = vadd.f32 %v507_v10, %v498_v14  ;;  %521 = vst [vmem:[%s229_s21 + $0x28] sm:$0xff] %v513_v12 }
 0x120   : > { %518 = vst [vmem:[%s229_s21 + $0x10] sm:$0xff] %v510_v15  ;;  %522 = vst [vmem:[%s229_s21 + $0x30] sm:$0xff] %v514_v16 }
 0x121   : > { %519 = vst [vmem:[%s229_s21 + $0x18] sm:$0xff] %v511_v17  ;;  %523 = vst [vmem:[%s229_s21 + $0x38] sm:$0xff] %v515_v18 }
 0x122 PF: > { %s14_s15 = sadd.s32 1, %s739_s15  }
 0x123   : > { %p11_p4 = scmp.ge.s32.totalorder %s14_s15, 4  }
 0x125   :  { %13 = sbr.rel (!%p11_p4) target bundleno = 1 (0x1), region = 69 }

// kernel: _wavlm_loss_forward.28
= control target key start
LH: loop header
LB: loop body
LE: loop exit
PB: predicated region body
PF: predicated region fallthrough
CT: control target
= control target key end

     0   :  { %s1547_s18 = smov 0   ;;  %s1967_s0 = inlined_call_operand.vmem [shape: f32[64,256], index: 0, kind: input, shape index: {}]   ;;  %s1968_s1 = inlined_call_operand.vmem [shape: bf16[256,768], index: 1, kind: input, shape index: {}]   ;;  %s1969_s2 = inlined_call_operand.vmem [shape: f32[1,768], index: 2, kind: input, shape index: {}]   ;;  %s1970_s3 = inlined_call_operand.vmem [shape: f32[1,256], index: 3, kind: input, shape index: {}]   ;;  %s1971_s4 = inlined_call_operand.vmem [shape: f32[1,256], index: 4, kind: input, shape index: {}]   ;;  %s1972_s5 = inlined_call_operand.vmem [shape: f32[64,768], index: 5, kind: output, shape index: {}]  }
   0x1 LB: > { %s1207_s19 = sadd.s32 4294967295, %s1515_s18   ;;  %p1211_p0 = scmp.ge.s32.totalorder %s1515_s18, 1  ;;  %s1515_s18 = sphi %s1547_s18, %s15_s18  }
   0x2   : > { %p189_p1 = scmp.lt.s32.totalorder %s1515_s18, 3 }
   0x4   : > { %p190_p2 = pnand %p1211_p0, %p189_p1 }
   0x5   : > { %s1212_s20 = sshll.u32 (!%p190_p2), %s1207_s19, 2  ;;  %v1357_v0 = vld [vmem:[%s1968_s1 + $0x4] ss:$24 sps:$4 sm:$0xff] (!%p190_p2)   ;;  %v1361_v2 = vld [vmem:[%s1968_s1] ss:$24 sps:$4 sm:$0xff] (!%p190_p2)  }
   0x6   : > { %193 = sbr.rel (%p190_p2) target bundleno = 476 (0x1dc), region = 40  ;;  %p220_p3 = scmp.lt.s32.totalorder (!%p190_p2), %s1212_s20, 7  ;;  %v1359_v1 = vld [vmem:[%s1968_s1 + $0xc] ss:$24 sps:$4 sm:$0xff] (!%p190_p2)   ;;  %966 = vmatprep.subr.bf16.mxu0 (!%p190_p2), %v1357_v0  ;;  %v1362_v3 = vld [vmem:[%s1968_s1 + $0x8] ss:$24 sps:$4 sm:$0xff] (!%p190_p2)  }
   0x7   : > { %1019 = vmatprep.subr.bf16.mxu1 (!%p190_p2), %v1359_v1  ;;  %v1363_v4 = vld [vmem:[%s1968_s1 + $0x34] ss:$24 sps:$4 sm:$0xff] (!%p190_p2)   ;;  %967 = vmatpush1.bf16.msra.mxu0 (!%p190_p2), %v1361_v2  ;;  %v1367_v6 = vld [vmem:[%s1968_s1 + $0x30] ss:$24 sps:$4 sm:$0xff] (!%p190_p2)   ;;  %v1369_v8 = vld [vmem:[%s1968_s1 + $0x64] ss:$24 sps:$4 sm:$0xff] (!%p190_p2)  }
   0x8   : > { %1020 = vmatpush1.bf16.msra.mxu1 (!%p190_p2), %v1362_v3  ;;  %v1365_v5 = vld [vmem:[%s1968_s1 + $0x3c] ss:$24 sps:$4 sm:$0xff] (!%p190_p2)   ;;  %968 = vmatprep.subr.bf16.mxu0 (!%p190_p2), %v1363_v4  ;;  %v1368_v7 = vld [vmem:[%s1968_s1 + $0x38] ss:$24 sps:$4 sm:$0xff] (!%p190_p2)   ;;  %v1371_v20 = vld [vmem:[%s1968_s1 + $0x6c] ss:$24 sps:$4 sm:$0xff] (!%p190_p2)  }
   0x9   : > { %1021 = vmatprep.subr.bf16.mxu1 (!%p190_p2), %v1365_v5  ;;  %v1373_v23 = vld [vmem:[%s1968_s1 + $0x60] ss:$24 sps:$4 sm:$0xff] (!%p190_p2)   ;;  %v1375_v27 = vld [vmem:[%s1968_s1 + $0x94] ss:$24 sps:$4 sm:$0xff] (!%p190_p2)   ;;  %v1379_v30 = vld [vmem:[%s1968_s1 + $0x90] ss:$24 sps:$4 sm:$0xff] (!%p190_p2)  }
   0xa   : > { %v1374_v24 = vld [vmem:[%s1968_s1 + $0x68] ss:$24 sps:$4 sm:$0xff] (!%p190_p2)   ;;  %v1377_v29 = vld [vmem:[%s1968_s1 + $0x9c] ss:$24 sps:$4 sm:$0xff] (!%p190_p2)   ;;  %v1380_v31 = vld [vmem:[%s1968_s1 + $0x98] ss:$24 sps:$4 sm:$0xff] (!%p190_p2)  }
   0xb   : > { %969 = vmatpush1.bf16.msra.mxu0 (!%p190_p2), %v1367_v6  ;;  %v1381_v35 = vld [vmem:[%s1968_s1 + $0xc4] ss:$24 sps:$4 sm:$0xff] (!%p190_p2)   ;;  %v1385_v37 = vld [vmem:[%s1968_s1 + $0xc0] ss:$24 sps:$4 sm:$0xff] (!%p190_p2)   ;;  %v1387_v42 = vld [vmem:[%s1968_s1 + $0xf4] ss:$24 sps:$4 sm:$0xff] (!%p190_p2)  }
   0xc   : > { %1022 = vmatpush1.bf16.msra.mxu1 (!%p190_p2), %v1368_v7  ;;  %970 = vmatprep.subr.bf16.mxu0 (!%p190_p2), %v1369_v8  ;;  %v1383_v36 = vld [vmem:[%s1968_s1 + $0xcc] ss:$24 sps:$4 sm:$0xff] (!%p190_p2)   ;;  %v1386_v41 = vld [vmem:[%s1968_s1 + $0xc8] ss:$24 sps:$4 sm:$0xff] (!%p190_p2)   ;;  %v1389_v44 = vld [vmem:[%s1968_s1 + $0xfc] ss:$24 sps:$4 sm:$0xff] (!%p190_p2)  }
   0xd   : > { %s1974_s20 = smov (!%p220_p3, %s1212_s20), 7  ;;  %1023 = vmatprep.subr.bf16.mxu1 %v1371_v20  ;;  %v1391_v46 = vld [vmem:[%s1968_s1 + $0xf0] ss:$24 sps:$4 sm:$0xff]   ;;  %v1393_v48 = vld [vmem:[%s1968_s1 + $0x124] ss:$24 sps:$4 sm:$0xff]  }
   0xe   : > { %s1315_s10 = sshll.u32 %s1974_s20, 4  ;;  %v1392_v47 = vld [vmem:[%s1968_s1 + $0xf8] ss:$24 sps:$4 sm:$0xff]   ;;  %v1395_v49 = vld [vmem:[%s1968_s1 + $0x12c] ss:$24 sps:$4 sm:$0xff]   ;;  %s1348_s14 = smul.u32 48, %s1974_s20 }
   0xf   : > { %s224_s15 = scalar_lea.vmem %s1967_s0, %s1315_s10  ;;  %971 = vmatpush1.bf16.msra.mxu0 %v1373_v23  ;;  %v1397_v50 = vld [vmem:[%s1968_s1 + $0x120] ss:$24 sps:$4 sm:$0xff]   ;;  %v1399_v52 = vld [vmem:[%s1968_s1 + $0x154] ss:$24 sps:$4 sm:$0xff]   ;;  %v1403_v54 = vld [vmem:[%s1968_s1 + $0x150] ss:$24 sps:$4 sm:$0xff]  }
  0x10   : > { %v1588_v9 = vld [vmem:[%s224_s15] sm:$0xff]  ;;  %v1590_v10 = vld [vmem:[%s224_s15 + $0x8] sm:$0xff]  ;;  %v1592_v11 = vld [vmem:[%s224_s15 + $0x10] sm:$0xff]  ;;  %1024 = vmatpush1.bf16.msra.mxu1 %v1374_v24  ;;  %972 = vmatprep.subr.bf16.mxu0 %v1375_v27  ;;  %s1936_s17 = scalar_lea.vmem %s1972_s5, %s1348_s14 }
  0x11   : > { %v241_v12 = vadd.f32 %v1590_v10, %v1588_v9  ;;  %v258_v13 = vmul.f32 %v1588_v9, %v1588_v9  ;;  %v259_v14 = vmul.f32 %v1590_v10, %v1590_v10  ;;  %v1600_v15 = vld [vmem:[%s224_s15 + $0x18] sm:$0xff]  ;;  %v260_v16 = vmul.f32 %v1592_v11, %v1592_v11  ;;  %v1606_v18 = vld [vmem:[%s224_s15 + $0x20] sm:$0xff]  ;;  %v1608_v19 = vld [vmem:[%s224_s15 + $0x28] sm:$0xff]  ;;  %1025 = vmatprep.subr.bf16.mxu1 %v1377_v29 }
  0x12   : > { %v261_v17 = vmul.f32 %v1600_v15, %v1600_v15  ;;  %v244_v22 = vadd.f32 %v1600_v15, %v1592_v11  ;;  %v1621_v25 = vld [vmem:[%s224_s15 + $0x30] sm:$0xff]  ;;  %v1623_v26 = vld [vmem:[%s224_s15 + $0x38] sm:$0xff]  ;;  %v247_v32 = vadd.f32 %v1608_v19, %v1606_v18  ;;  %v262_v33 = vmul.f32 %v1606_v18, %v1606_v18  ;;  %v1398_v51 = vld [vmem:[%s1968_s1 + $0x128] ss:$24 sps:$4 sm:$0xff]  }
  0x13   : > { %242 = vadd.xlane.f32.xlu0 %v241_v12  ;;  %v266_v21 = vadd.f32 %v259_v14, %v258_v13  ;;  %v263_v34 = vmul.f32 %v1608_v19, %v1608_v19  ;;  %v250_v38 = vadd.f32 %v1623_v26, %v1621_v25  ;;  %v264_v39 = vmul.f32 %v1621_v25, %v1621_v25  ;;  %v1401_v53 = vld [vmem:[%s1968_s1 + $0x15c] ss:$24 sps:$4 sm:$0xff]   ;;  %v1404_v55 = vld [vmem:[%s1968_s1 + $0x158] ss:$24 sps:$4 sm:$0xff]   ;;  %v1407_v57 = vld [vmem:[%s1968_s1 + $0x18c] ss:$24 sps:$4 sm:$0xff]  }
  0x14   : > { %v269_v28 = vadd.f32 %v261_v17, %v260_v16  ;;  %v265_v40 = vmul.f32 %v1623_v26, %v1623_v26  ;;  %973 = vmatpush1.bf16.msra.mxu0 %v1379_v30  ;;  %1026 = vmatpush1.bf16.msra.mxu1 %v1380_v31  ;;  %v1405_v56 = vld [vmem:[%s1968_s1 + $0x184] ss:$24 sps:$4 sm:$0xff]   ;;  %v1409_v58 = vld [vmem:[%s1968_s1 + $0x180] ss:$24 sps:$4 sm:$0xff]   ;;  %v1411_v60 = vld [vmem:[%s1968_s1 + $0x1b4] ss:$24 sps:$4 sm:$0xff]  }
  0x15   : > { %267 = vadd.xlane.f32.xlu1 %v266_v21  ;;  %974 = vmatprep.subr.bf16.mxu0 %v1381_v35  ;;  %v272_v43 = vadd.f32 %v263_v34, %v262_v33  ;;  %v1410_v59 = vld [vmem:[%s1968_s1 + $0x188] ss:$24 sps:$4 sm:$0xff]   ;;  %v1413_v61 = vld [vmem:[%s1968_s1 + $0x1bc] ss:$24 sps:$4 sm:$0xff]   ;;  %v1416_v63 = vld [vmem:[%s1968_s1 + $0x1b8] ss:$24 sps:$4 sm:$0xff]  }
  0x16   : > { %1027 = vmatprep.subr.bf16.mxu1 %v1383_v36  ;;  %v275_v45 = vadd.f32 %v265_v40, %v264_v39  ;;  %v1415_v62 = vld [vmem:[%s1968_s1 + $0x1b0] ss:$24 sps:$4 sm:$0xff]   ;;  %v1417_v0 = vld [vmem:[%s1968_s1 + $0x1e4] ss:$24 sps:$4 sm:$0xff]   ;;  %v1421_v2 = vld [vmem:[%s1968_s1 + $0x1e0] ss:$24 sps:$4 sm:$0xff]  }
  0x17   : > { %245 = vadd.xlane.f32.xlu0 %v244_v22  ;;  %v1419_v1 = vld [vmem:[%s1968_s1 + $0x1ec] ss:$24 sps:$4 sm:$0xff]   ;;  %v1422_v3 = vld [vmem:[%s1968_s1 + $0x1e8] ss:$24 sps:$4 sm:$0xff]   ;;  %v1425_v5 = vld [vmem:[%s1968_s1 + $0x21c] ss:$24 sps:$4 sm:$0xff]  }
  0x18   : > { %975 = vmatpush1.bf16.msra.mxu0 %v1385_v37  ;;  %1028 = vmatpush1.bf16.msra.mxu1 %v1386_v41  ;;  %v1423_v4 = vld [vmem:[%s1968_s1 + $0x214] ss:$24 sps:$4 sm:$0xff]   ;;  %v1427_v6 = vld [vmem:[%s1968_s1 + $0x210] ss:$24 sps:$4 sm:$0xff]   ;;  %v1429_v8 = vld [vmem:[%s1968_s1 + $0x244] ss:$24 sps:$4 sm:$0xff]  }
  0x19   : > { %270 = vadd.xlane.f32.xlu1 %v269_v28  ;;  %976 = vmatprep.subr.bf16.mxu0 %v1387_v42  ;;  %v1428_v7 = vld [vmem:[%s1968_s1 + $0x218] ss:$24 sps:$4 sm:$0xff]   ;;  %v1431_v12 = vld [vmem:[%s1968_s1 + $0x24c] ss:$24 sps:$4 sm:$0xff]   ;;  %v1434_v14 = vld [vmem:[%s1968_s1 + $0x248] ss:$24 sps:$4 sm:$0xff]  }
  0x1a   : > { %1029 = vmatprep.subr.bf16.mxu1 %v1389_v44  ;;  %v1433_v13 = vld [vmem:[%s1968_s1 + $0x240] ss:$24 sps:$4 sm:$0xff]   ;;  %v1435_v16 = vld [vmem:[%s1968_s1 + $0x274] ss:$24 sps:$4 sm:$0xff]   ;;  %v1439_v20 = vld [vmem:[%s1968_s1 + $0x270] ss:$24 sps:$4 sm:$0xff]  }
  0x1b   : > { %248 = vadd.xlane.f32.xlu0 %v247_v32  ;;  %v1437_v17 = vld [vmem:[%s1968_s1 + $0x27c] ss:$24 sps:$4 sm:$0xff]   ;;  %v1440_v21 = vld [vmem:[%s1968_s1 + $0x278] ss:$24 sps:$4 sm:$0xff]   ;;  %v1443_v23 = vld [vmem:[%s1968_s1 + $0x2ac] ss:$24 sps:$4 sm:$0xff]  }
  0x1c   : > { %977 = vmatpush1.bf16.msra.mxu0 %v1391_v46  ;;  %1030 = vmatpush1.bf16.msra.mxu1 %v1392_v47  ;;  %v1441_v22 = vld [vmem:[%s1968_s1 + $0x2a4] ss:$24 sps:$4 sm:$0xff]   ;;  %v1445_v24 = vld [vmem:[%s1968_s1 + $0x2a0] ss:$24 sps:$4 sm:$0xff]   ;;  %v1447_v28 = vld [vmem:[%s1968_s1 + $0x2d4] ss:$24 sps:$4 sm:$0xff]   ;;  %v316_v46 = vlaneseq }
  0x1d   : > { %251 = vadd.xlane.f32.xlu1 %v250_v38  ;;  %978 = vmatprep.subr.bf16.mxu0 %v1393_v48  ;;  %v1446_v27 = vld [vmem:[%s1968_s1 + $0x2a8] ss:$24 sps:$4 sm:$0xff]   ;;  %v1449_v29 = vld [vmem:[%s1968_s1 + $0x2dc] ss:$24 sps:$4 sm:$0xff]   ;;  %v1452_v31 = vld [vmem:[%s1968_s1 + $0x2d8] ss:$24 sps:$4 sm:$0xff]  }
  0x1e   : > { %1031 = vmatprep.subr.bf16.mxu1 %v1395_v49  ;;  %v1451_v30 = vld [vmem:[%s1968_s1 + $0x2d0] ss:$24 sps:$4 sm:$0xff]   ;;  %v1455_v32 = vld [vmem:[%s1968_s1 + $0x14] ss:$24 sps:$4 sm:$0xff]  }
  0x1f   : > { %273 = vadd.xlane.f32.xlu0 %v272_v43 }
  0x20   : > { %979 = vmatpush1.bf16.msra.mxu0 %v1397_v50  ;;  %1032 = vmatpush1.bf16.msra.mxu1 %v1398_v51 }
  0x21   : > { %276 = vadd.xlane.f32.xlu1 %v275_v45  ;;  %980 = vmatprep.subr.bf16.mxu0 %v1399_v52 }
  0x22   : > { %1033 = vmatprep.subr.bf16.mxu1 %v1401_v53 }
  0x24   : > { %981 = vmatpush1.bf16.msra.mxu0 %v1403_v54  ;;  %1034 = vmatpush1.bf16.msra.mxu1 %v1404_v55  ;;  %v1796_v54 = vshrl.u32 %v316_v46, 7 }
  0x25   : > { %982 = vmatprep.subr.bf16.mxu0 %v1405_v56  ;;  %1035 = vmatprep.subr.bf16.mxu1 %v1407_v57 }
  0x28   : > { %983 = vmatpush1.bf16.msra.mxu0 %v1409_v58  ;;  %1036 = vmatpush1.bf16.msra.mxu1 %v1410_v59 }
  0x29   : > { %984 = vmatprep.subr.bf16.mxu0 %v1411_v60  ;;  %1037 = vmatprep.subr.bf16.mxu1 %v1413_v61  ;;  %v1799_v60 = vsub.s32 1, %v1796_v54 }
  0x2c   : > { %985 = vmatpush1.bf16.msra.mxu0 %v1415_v62  ;;  %1038 = vmatpush1.bf16.msra.mxu1 %v1416_v63  ;;  %v314_v63 = vld [vmem:[%s1970_s3] sm:$0x3] }
  0x2d   : > { %986 = vmatprep.subr.bf16.mxu0 %v1417_v0  ;;  %1039 = vmatprep.subr.bf16.mxu1 %v1419_v1  ;;  %v1805_v0 = vsub.s32 0, %v1796_v54 }
  0x30   : > { %987 = vmatpush1.bf16.msra.mxu0 %v1421_v2  ;;  %1040 = vmatpush1.bf16.msra.mxu1 %v1422_v3 }
  0x31   : > { %988 = vmatprep.subr.bf16.mxu0 %v1423_v4  ;;  %1041 = vmatprep.subr.bf16.mxu1 %v1425_v5  ;;  %v323_v5 = vrot.slane %v314_v63, %v1799_v60 }
  0x34   : > { %989 = vmatpush1.bf16.msra.mxu0 %v1427_v6  ;;  %1042 = vmatpush1.bf16.msra.mxu1 %v1428_v7  ;;  %v334_v7 = vld [vmem:[%s1971_s4] sm:$0x3] }
  0x35   : > { %990 = vmatprep.subr.bf16.mxu0 %v1429_v8  ;;  %1043 = vmatprep.subr.bf16.mxu1 %v1431_v12  ;;  %v319_v12 = vrot.slane %v314_v63, %v1805_v0  ;;  %v1474_v63 = vld [vmem:[%s1968_s1 + $0x160] ss:$24 sps:$4 sm:$0xff]  }
  0x38   : > { %991 = vmatpush1.bf16.msra.mxu0 %v1433_v13  ;;  %1044 = vmatpush1.bf16.msra.mxu1 %v1434_v14 }
  0x39   : > { %992 = vmatprep.subr.bf16.mxu0 %v1435_v16  ;;  %1045 = vmatprep.subr.bf16.mxu1 %v1437_v17  ;;  %v339_v16 = vrot.slane %v334_v7, %v1805_v0 }
  0x3c   : > { %993 = vmatpush1.bf16.msra.mxu0 %v1439_v20  ;;  %1046 = vmatpush1.bf16.msra.mxu1 %v1440_v21 }
  0x3d   : > { %994 = vmatprep.subr.bf16.mxu0 %v1441_v22  ;;  %1047 = vmatprep.subr.bf16.mxu1 %v1443_v23 }
  0x40   : > { %995 = vmatpush1.bf16.msra.mxu0 %v1445_v24  ;;  %1048 = vmatpush1.bf16.msra.mxu1 %v1446_v27 }
  0x41   : > { %996 = vmatprep.subr.bf16.mxu0 %v1447_v28  ;;  %1049 = vmatprep.subr.bf16.mxu1 %v1449_v29 }
  0x44   : > { %997 = vmatpush1.bf16.msra.mxu0 %v1451_v30  ;;  %1050 = vmatpush1.bf16.msra.mxu1 %v1452_v31 }
  0x45   : > { %1072 = vmatprep.subr.bf16.mxu0 %v1455_v32  ;;  %1316 = vmatprep.subr.bf16.mxu1 %v1455_v32 }
  0xa0   : > { %v243_v33 = vpop.xlane.xlu0 %242 }
  0xa1   : > { %v254_v34 = vmul.f32 0.00390625, %v243_v33 }
  0xa2   : > { %v268_v35 = vpop.xlane.xlu1 %267 }
  0xa3   : > { %v278_v36 = vmul.f32 0.00390625, %v268_v35  ;;  %v282_v37 = vmul.f32 %v254_v34, %v254_v34  ;;  %v290_v2 = vsub.f32 %v1588_v9, %v254_v34  ;;  %v291_v3 = vsub.f32 %v1590_v10, %v254_v34 }
  0xa4   : > { %v246_v38 = vpop.xlane.xlu0 %245  ;;  %v343_v10 = vrot.slane %v334_v7, %v1799_v60  ;;  %v1488_v7 = vld [vmem:[%s1968_s1 + $0x224] ss:$24 sps:$4 sm:$0xff]  }
  0xa5   : > { %v286_v39 = vsub.f32 %v278_v36, %v282_v37  ;;  %v255_v40 = vmul.f32 0.00390625, %v246_v38 }
  0xa6   : > { %v271_v41 = vpop.xlane.xlu1 %270 }
  0xa7   : > { %v298_v42 = vadd.f32 1e-05, %v286_v39  ;;  %v279_v43 = vmul.f32 0.00390625, %v271_v41  ;;  %v283_v44 = vmul.f32 %v255_v40, %v255_v40  ;;  %v292_v13 = vsub.f32 %v1592_v11, %v255_v40 }
  0xa8   : > { %v249_v45 = vpop.xlane.xlu0 %248  ;;  %v293_v14 = vsub.f32 %v1600_v15, %v255_v40 }
  0xa9   : > { %1501 = vrsqrt.f32 %v298_v42  ;;  %v256_v47 = vmul.f32 0.00390625, %v249_v45  ;;  %v287_v48 = vsub.f32 %v279_v43, %v283_v44  ;;  %v1456_v44 = vld [vmem:[%s1968_s1 + $0x40] ss:$24 sps:$4 sm:$0xff]  }
  0xaa   : > { %v252_v49 = vpop.xlane.xlu1 %251 }
  0xab   : > { %v257_v50 = vmul.f32 0.00390625, %v252_v49  ;;  %v284_v51 = vmul.f32 %v256_v47, %v256_v47  ;;  %v299_v52 = vadd.f32 1e-05, %v287_v48  ;;  %v294_v23 = vsub.f32 %v1606_v18, %v256_v47  ;;  %v1453_v18 = vld [vmem:[%s1968_s1 + $0x10] ss:$24 sps:$4 sm:$0xff]  }
  0xac   : > { %v274_v53 = vpop.xlane.xlu0 %273  ;;  %v295_v24 = vsub.f32 %v1608_v19, %v256_v47  ;;  %v1461_v47 = vld [vmem:[%s1968_s1 + $0x74] ss:$24 sps:$4 sm:$0xff]  }
  0xad   : > { %v285_v55 = vmul.f32 %v257_v50, %v257_v50  ;;  %v280_v56 = vmul.f32 0.00390625, %v274_v53  ;;  %1503 = vrsqrt.f32 %v299_v52  ;;  %v296_v29 = vsub.f32 %v1621_v25, %v257_v50  ;;  %v1458_v25 = vld [vmem:[%s1968_s1 + $0x44] ss:$24 sps:$4 sm:$0xff]   ;;  %v1462_v53 = vld [vmem:[%s1968_s1 + $0xa0] ss:$24 sps:$4 sm:$0xff]  }
  0xae   : > { %v277_v57 = vpop.xlane.xlu1 %276  ;;  %v297_v11 = vsub.f32 %v1623_v26, %v257_v50  ;;  %v1464_v52 = vld [vmem:[%s1968_s1 + $0xa4] ss:$24 sps:$4 sm:$0xff]  }
  0xaf   : > { %v281_v58 = vmul.f32 0.00390625, %v277_v57  ;;  %v288_v59 = vsub.f32 %v280_v56, %v284_v51  ;;  %v1459_v51 = vld [vmem:[%s1968_s1 + $0x70] ss:$24 sps:$4 sm:$0xff]   ;;  %v1470_v57 = vld [vmem:[%s1968_s1 + $0x104] ss:$24 sps:$4 sm:$0xff]  }
  0xb0   : > { %v1465_v56 = vld [vmem:[%s1968_s1 + $0xd0] ss:$24 sps:$4 sm:$0xff]  }
  0xb1   : > { %v289_v61 = vsub.f32 %v281_v58, %v285_v55  ;;  %v300_v62 = vadd.f32 1e-05, %v288_v59  ;;  %v1467_v55 = vld [vmem:[%s1968_s1 + $0xd4] ss:$24 sps:$4 sm:$0xff]   ;;  %v1468_v58 = vld [vmem:[%s1968_s1 + $0x100] ss:$24 sps:$4 sm:$0xff]  }
  0xb2   : > { %v1473_v59 = vld [vmem:[%s1968_s1 + $0x134] ss:$24 sps:$4 sm:$0xff]  }
  0xb3   : > { %v1502_v1 = vpop.eup %1501  ;;  %v301_v4 = vadd.f32 1e-05, %v289_v61  ;;  %1505 = vrsqrt.f32 %v300_v62  ;;  %v1471_v61 = vld [vmem:[%s1968_s1 + $0x130] ss:$24 sps:$4 sm:$0xff]   ;;  %v1476_v62 = vld [vmem:[%s1968_s1 + $0x164] ss:$24 sps:$4 sm:$0xff]  }
  0xb4   : > { %v307_v6 = vmul.f32 %v1502_v1, %v291_v3  ;;  %v306_v8 = vmul.f32 %v1502_v1, %v290_v2  ;;  %v1479_v1 = vld [vmem:[%s1968_s1 + $0x194] ss:$24 sps:$4 sm:$0xff]   ;;  %v1477_v2 = vld [vmem:[%s1968_s1 + $0x190] ss:$24 sps:$4 sm:$0xff]   ;;  %v1482_v3 = vld [vmem:[%s1968_s1 + $0x1c4] ss:$24 sps:$4 sm:$0xff]  }
  0xb5   : > { %1507 = vrsqrt.f32 %v301_v4  ;;  %v1480_v4 = vld [vmem:[%s1968_s1 + $0x1c0] ss:$24 sps:$4 sm:$0xff]  }
  0xb6   : > { %v327_v20 = vmul.f32 %v323_v5, %v307_v6  ;;  %v326_v22 = vmul.f32 %v319_v12, %v306_v8  ;;  %v1483_v6 = vld [vmem:[%s1968_s1 + $0x1f0] ss:$24 sps:$4 sm:$0xff]   ;;  %v1486_v8 = vld [vmem:[%s1968_s1 + $0x220] ss:$24 sps:$4 sm:$0xff]  }
  0xb7   : > { %v1504_v9 = vpop.eup %1503 }
  0xb8   : > { %v309_v17 = vmul.f32 %v1504_v9, %v293_v14  ;;  %v308_v21 = vmul.f32 %v1504_v9, %v292_v13  ;;  %v347_v30 = vadd.f32 %v343_v10, %v327_v20  ;;  %v346_v32 = vadd.f32 %v339_v16, %v326_v22  ;;  %v1489_v13 = vld [vmem:[%s1968_s1 + $0x250] ss:$24 sps:$4 sm:$0xff]   ;;  %v1494_v14 = vld [vmem:[%s1968_s1 + $0x284] ss:$24 sps:$4 sm:$0xff]   ;;  %v1492_v9 = vld [vmem:[%s1968_s1 + $0x280] ss:$24 sps:$4 sm:$0xff]  }
  0xb9   : > { %v1498_v20 = vld [vmem:[%s1968_s1 + $0x2e0] ss:$24 sps:$4 sm:$0xff]  }
  0xba   : > { %v329_v27 = vmul.f32 %v323_v5, %v309_v17  ;;  %v328_v28 = vmul.f32 %v319_v12, %v308_v21  ;;  %v1500_v17 = vld [vmem:[%s1968_s1 + $0x2e4] ss:$24 sps:$4 sm:$0xff]   ;;  %v466_v21 = vsub.s32 2, %v1796_v54 }
  0xbb   : > { %v454_v22 = vld [vmem:[%s1969_s2] sm:$0x3f] }
  0xbc   : > { %v349_v31 = vadd.f32 %v343_v10, %v329_v27  ;;  %v348_v33 = vadd.f32 %v339_v16, %v328_v28  ;;  %v467_v27 = vrot.slane %v454_v22, %v466_v21  ;;  %v463_v28 = vrot.slane %v454_v22, %v1799_v60 }
  0xbd   : > { %v1506_v15 = vpop.eup %1505 }
  0xbe   : > { %v311_v34 = vmul.f32 %v1506_v15, %v295_v24  ;;  %v310_v35 = vmul.f32 %v1506_v15, %v294_v23  ;;  %v355_v37 = vpack.c.bf16 %v349_v31, %v347_v30  ;;  %v1825_v19 = vpack.c.bf16 %v348_v33, %v346_v32 }
  0xbf   : > { %v1508_v36 = vpop.eup %1507  ;;  %v470_v23 = vsub.s32 3, %v1796_v54  ;;  %v459_v24 = vrot.slane %v454_v22, %v1805_v0 }
  0xc0   : > { %v313_v26 = vmul.f32 %v1508_v36, %v297_v11  ;;  %v331_v38 = vmul.f32 %v323_v5, %v311_v34  ;;  %v312_v39 = vmul.f32 %v1508_v36, %v296_v29  ;;  %v330_v40 = vmul.f32 %v319_v12, %v310_v35  ;;  %998 = vmatprep.mubr.bf16.mxu0 %v355_v37 }
  0xc1   : > { %1051 = vmatprep.mubr.bf16.mxu1 %v355_v37  ;;  %999 = vmatmul.mubr.bf16.vlgmr.msra.gmra.mrb[0].mxu0 %v1825_v19  ;;  %v471_v29 = vrot.slane %v454_v22, %v470_v23 }
  0xc2   : > { %1052 = vmatmul.mubr.bf16.vlgmr.msra.gmra.mrb[0].mxu1 %v1825_v19  ;;  %v333_v41 = vmul.f32 %v323_v5, %v313_v26  ;;  %v351_v42 = vadd.f32 %v343_v10, %v331_v38  ;;  %v332_v43 = vmul.f32 %v319_v12, %v312_v39  ;;  %1073 = vmatpush1.bf16.msra.mxu0 %v1453_v18  ;;  %v1485_v5 = vld [vmem:[%s1968_s1 + $0x1f4] ss:$24 sps:$4 sm:$0xff]  }
  0xc3   : > { %1332 = vmatpush1.bf16.msra.mxu1 %v1453_v18  ;;  %v350_v45 = vadd.f32 %v339_v16, %v330_v40  ;;  %1074 = vmatprep.subr.bf16.mxu0 %v1458_v25  ;;  %v1491_v12 = vld [vmem:[%s1968_s1 + $0x254] ss:$24 sps:$4 sm:$0xff]  }
  0xc4   : > { %1317 = vmatprep.subr.bf16.mxu1 %v1458_v25  ;;  %v353_v46 = vadd.f32 %v343_v10, %v333_v41  ;;  %v352_v48 = vadd.f32 %v339_v16, %v332_v43  ;;  %v1497_v10 = vld [vmem:[%s1968_s1 + $0x2b4] ss:$24 sps:$4 sm:$0xff]   ;;  %v1495_v16 = vld [vmem:[%s1968_s1 + $0x2b0] ss:$24 sps:$4 sm:$0xff]  }
  0xc6   : > { %v357_v49 = vpack.c.bf16 %v353_v46, %v351_v42  ;;  %v1838_v50 = vpack.c.bf16 %v352_v48, %v350_v45  ;;  %1075 = vmatpush1.bf16.msra.mxu0 %v1456_v44 }
  0xc7   : > { %1333 = vmatpush1.bf16.msra.mxu1 %v1456_v44  ;;  %1076 = vmatprep.subr.bf16.mxu0 %v1461_v47 }
  0xc8   : > { %1008 = vmatprep.mubr.bf16.mxu0 %v357_v49  ;;  %1318 = vmatprep.subr.bf16.mxu1 %v1461_v47 }
  0xc9   : > { %1061 = vmatprep.mubr.bf16.mxu1 %v357_v49  ;;  %1009 = vmatmul.mubr.bf16.gmra.mrb[4].mxu0 %v1838_v50 }
  0xca   : > { %1062 = vmatmul.mubr.bf16.gmra.mrb[4].mxu1 %v1838_v50  ;;  %1077 = vmatpush1.bf16.msra.mxu0 %v1459_v51 }
  0xcb   : > { %1334 = vmatpush1.bf16.msra.mxu1 %v1459_v51  ;;  %1104 = vmatprep.mubr.bf16.mxu0 %v355_v37 }
  0xcc   : > { %1078 = vmatprep.subr.bf16.mxu0 %v1464_v52  ;;  %1319 = vmatprep.subr.bf16.mxu1 %v1464_v52 }
  0xcd   : > { %1114 = vmatprep.mubr.bf16.mxu1 %v357_v49 }
  0xce   : > { %1079 = vmatpush1.bf16.msra.mxu0 %v1462_v53 }
  0xcf   : > { %1335 = vmatpush1.bf16.msra.mxu1 %v1462_v53  ;;  %1080 = vmatprep.subr.bf16.mxu0 %v1467_v55 }
  0xd0   : > { %1320 = vmatprep.subr.bf16.mxu1 %v1467_v55  ;;  %v474_v55 = vsub.s32 4, %v1796_v54 }
  0xd2   : > { %1081 = vmatpush1.bf16.msra.mxu0 %v1465_v56 }
  0xd3   : > { %1336 = vmatpush1.bf16.msra.mxu1 %v1465_v56  ;;  %1082 = vmatprep.subr.bf16.mxu0 %v1470_v57  ;;  %v478_v56 = vsub.s32 5, %v1796_v54 }
  0xd4   : > { %1321 = vmatprep.subr.bf16.mxu1 %v1470_v57  ;;  %v475_v57 = vrot.slane %v454_v22, %v474_v55 }
  0xd6   : > { %1083 = vmatpush1.bf16.msra.mxu0 %v1468_v58 }
  0xd7   : > { %1337 = vmatpush1.bf16.msra.mxu1 %v1468_v58  ;;  %1084 = vmatprep.subr.bf16.mxu0 %v1473_v59  ;;  %v479_v58 = vrot.slane %v454_v22, %v478_v56 }
  0xd8   : > { %1322 = vmatprep.subr.bf16.mxu1 %v1473_v59 }
  0xda   : > { %1085 = vmatpush1.bf16.msra.mxu0 %v1471_v61 }
  0xdb   : > { %1338 = vmatpush1.bf16.msra.mxu1 %v1471_v61  ;;  %1086 = vmatprep.subr.bf16.mxu0 %v1476_v62 }
  0xdc   : > { %1323 = vmatprep.subr.bf16.mxu1 %v1476_v62 }
  0xde   : > { %1087 = vmatpush1.bf16.msra.mxu0 %v1474_v63 }
  0xdf   : > { %1339 = vmatpush1.bf16.msra.mxu1 %v1474_v63  ;;  %1088 = vmatprep.subr.bf16.mxu0 %v1479_v1 }
  0xe0   : > { %1324 = vmatprep.subr.bf16.mxu1 %v1479_v1 }
  0xe2   : > { %1089 = vmatpush1.bf16.msra.mxu0 %v1477_v2 }
  0xe3   : > { %1340 = vmatpush1.bf16.msra.mxu1 %v1477_v2  ;;  %1090 = vmatprep.subr.bf16.mxu0 %v1482_v3 }
  0xe4   : > { %1325 = vmatprep.subr.bf16.mxu1 %v1482_v3 }
  0xe6   : > { %1091 = vmatpush1.bf16.msra.mxu0 %v1480_v4 }
  0xe7   : > { %1341 = vmatpush1.bf16.msra.mxu1 %v1480_v4  ;;  %1092 = vmatprep.subr.bf16.mxu0 %v1485_v5 }
  0xe8   : > { %1326 = vmatprep.subr.bf16.mxu1 %v1485_v5 }
  0xea   : > { %1093 = vmatpush1.bf16.msra.mxu0 %v1483_v6 }
  0xeb   : > { %1342 = vmatpush1.bf16.msra.mxu1 %v1483_v6  ;;  %1094 = vmatprep.subr.bf16.mxu0 %v1488_v7 }
  0xec   : > { %1327 = vmatprep.subr.bf16.mxu1 %v1488_v7 }
  0xee   : > { %1095 = vmatpush1.bf16.msra.mxu0 %v1486_v8 }
  0xef   : > { %1343 = vmatpush1.bf16.msra.mxu1 %v1486_v8  ;;  %1096 = vmatprep.subr.bf16.mxu0 %v1491_v12 }
  0xf0   : > { %1328 = vmatprep.subr.bf16.mxu1 %v1491_v12 }
  0xf2   : > { %1097 = vmatpush1.bf16.msra.mxu0 %v1489_v13 }
  0xf3   : > { %1344 = vmatpush1.bf16.msra.mxu1 %v1489_v13  ;;  %1098 = vmatprep.subr.bf16.mxu0 %v1494_v14 }
  0xf4   : > { %1329 = vmatprep.subr.bf16.mxu1 %v1494_v14 }
  0xf6   : > { %1099 = vmatpush1.bf16.msra.mxu0 %v1492_v9 }
  0xf7   : > { %1345 = vmatpush1.bf16.msra.mxu1 %v1492_v9  ;;  %1100 = vmatprep.subr.bf16.mxu0 %v1497_v10 }
  0xf8   : > { %1330 = vmatprep.subr.bf16.mxu1 %v1497_v10 }
  0xfa   : > { %1101 = vmatpush1.bf16.msra.mxu0 %v1495_v16 }
  0xfb   : > { %1346 = vmatpush1.bf16.msra.mxu1 %v1495_v16  ;;  %1102 = vmatprep.subr.bf16.mxu0 %v1500_v17 }
  0xfc   : > { %1331 = vmatprep.subr.bf16.mxu1 %v1500_v17 }
  0xfe   : > { %1103 = vmatpush1.bf16.msra.mxu0 %v1498_v20 }
  0xff   : > { %1347 = vmatpush1.bf16.msra.mxu1 %v1498_v20 }
 0x101   : > { %1105 = vmatmul.mubr.bf16.vlgmr.msra.gmra.mrb[8].mxu0 %v1825_v19 }
 0x102   : > { %1115 = vmatmul.mubr.bf16.vlgmr.msra.gmra.mrb[8].mxu1 %v1838_v50 }
 0x194   : > { %v1000_v11 = vpop.f32.mrb[0].mxu0 }
 0x195   : > { %v1053_v15 = vpop.f32.mrb[0].mxu1  ;;  %v1001_v30 = vadd.f32 %v1000_v11, %v459_v24  ;;  %v1002_v32 = vpop.f32.mrb[1].mxu0 }
 0x196   : > { %v1054_v31 = vadd.f32 %v1053_v15, %v467_v27  ;;  %v1055_v0 = vpop.f32.mrb[1].mxu1  ;;  %v1003_v33 = vadd.f32 %v1002_v32, %v463_v28  ;;  %v1004_v34 = vpop.f32.mrb[2].mxu0 }
 0x197   : > { %v1056_v60 = vadd.f32 %v1055_v0, %v471_v29  ;;  %v1057_v35 = vpop.f32.mrb[2].mxu1  ;;  %1125 = vst [vmem:[%s1936_s17] sm:$0xff] %v1001_v30  ;;  %v1005_v36 = vadd.f32 %v1004_v34, %v459_v24  ;;  %v1006_v18 = vpop.f32.mrb[3].mxu0 }
 0x198   : > { %1127 = vst [vmem:[%s1936_s17 + $0x10] sm:$0xff] %v1054_v31  ;;  %v1058_v37 = vadd.f32 %v1057_v35, %v467_v27  ;;  %v1059_v19 = vpop.f32.mrb[3].mxu1  ;;  %1126 = vst [vmem:[%s1936_s17 + $0x8] sm:$0xff] %v1003_v33  ;;  %v1007_v25 = vadd.f32 %v1006_v18, %v463_v28 }
 0x199   : > { %1128 = vst [vmem:[%s1936_s17 + $0x18] sm:$0xff] %v1056_v60  ;;  %v1060_v26 = vadd.f32 %v1059_v19, %v471_v29  ;;  %1131 = vst [vmem:[%s1936_s17 + $0x30] sm:$0xff] %v1005_v36 }
 0x19a   : > { %1133 = vst [vmem:[%s1936_s17 + $0x40] sm:$0xff] %v1058_v37  ;;  %1132 = vst [vmem:[%s1936_s17 + $0x38] sm:$0xff] %v1007_v25 }
 0x19b   : > { %1134 = vst [vmem:[%s1936_s17 + $0x48] sm:$0xff] %v1060_v26 }
 0x19c   : > { %v1010_v38 = vpop.f32.mrb[4].mxu0 }
 0x19d   : > { %v1063_v39 = vpop.f32.mrb[4].mxu1  ;;  %v1011_v40 = vadd.f32 %v1010_v38, %v459_v24  ;;  %v1012_v42 = vpop.f32.mrb[5].mxu0 }
 0x19e   : > { %v1064_v41 = vadd.f32 %v1063_v39, %v467_v27  ;;  %v1065_v43 = vpop.f32.mrb[5].mxu1  ;;  %v1013_v44 = vadd.f32 %v1012_v42, %v463_v28  ;;  %v1014_v46 = vpop.f32.mrb[6].mxu0 }
 0x19f   : > { %v1066_v45 = vadd.f32 %v1065_v43, %v471_v29  ;;  %v1067_v47 = vpop.f32.mrb[6].mxu1  ;;  %1137 = vst [vmem:[%s1936_s17 + $0x60] sm:$0xff] %v1011_v40  ;;  %v1015_v48 = vadd.f32 %v1014_v46, %v459_v24  ;;  %v1016_v50 = vpop.f32.mrb[7].mxu0 }
 0x1a0   : > { %1139 = vst [vmem:[%s1936_s17 + $0x70] sm:$0xff] %v1064_v41  ;;  %v1068_v49 = vadd.f32 %v1067_v47, %v467_v27  ;;  %v1069_v51 = vpop.f32.mrb[7].mxu1  ;;  %1138 = vst [vmem:[%s1936_s17 + $0x68] sm:$0xff] %v1013_v44  ;;  %v1017_v52 = vadd.f32 %v1016_v50, %v463_v28 }
 0x1a1   : > { %1140 = vst [vmem:[%s1936_s17 + $0x78] sm:$0xff] %v1066_v45  ;;  %v1070_v53 = vadd.f32 %v1069_v51, %v471_v29  ;;  %1143 = vst [vmem:[%s1936_s17 + $0x90] sm:$0xff] %v1015_v48 }
 0x1a2   : > { %1145 = vst [vmem:[%s1936_s17 + $0xa0] sm:$0xff] %v1068_v49  ;;  %1144 = vst [vmem:[%s1936_s17 + $0x98] sm:$0xff] %v1017_v52 }
 0x1a3   : > { %1146 = vst [vmem:[%s1936_s17 + $0xa8] sm:$0xff] %v1070_v53 }
 0x1d4   : > { %v1106_v59 = vpop.f32.mrb[8].mxu0 }
 0x1d5   : > { %v1116_v61 = vpop.f32.mrb[8].mxu1  ;;  %v1107_v62 = vadd.f32 %v1106_v59, %v475_v57  ;;  %v1108_v63 = vpop.f32.mrb[9].mxu0 }
 0x1d6   : > { %v1118_v1 = vpop.f32.mrb[9].mxu1  ;;  %v1109_v2 = vadd.f32 %v1108_v63, %v479_v58  ;;  %v1110_v3 = vpop.f32.mrb[10].mxu0  ;;  %v1117_v7 = vadd.f32 %v1116_v61, %v475_v57 }
 0x1d7   : > { %v1120_v4 = vpop.f32.mrb[10].mxu1  ;;  %1129 = vst [vmem:[%s1936_s17 + $0x20] sm:$0xff] %v1107_v62  ;;  %v1111_v5 = vadd.f32 %v1110_v3, %v475_v57  ;;  %v1112_v54 = vpop.f32.mrb[11].mxu0  ;;  %v1119_v12 = vadd.f32 %v1118_v1, %v479_v58 }
 0x1d8   : > { %v1122_v6 = vpop.f32.mrb[11].mxu1  ;;  %1130 = vst [vmem:[%s1936_s17 + $0x28] sm:$0xff] %v1109_v2  ;;  %v1113_v8 = vadd.f32 %v1112_v54, %v479_v58  ;;  %v1121_v13 = vadd.f32 %v1120_v4, %v475_v57  ;;  %1141 = vst [vmem:[%s1936_s17 + $0x80] sm:$0xff] %v1117_v7 }
 0x1d9   : > { %1135 = vst [vmem:[%s1936_s17 + $0x50] sm:$0xff] %v1111_v5  ;;  %v1123_v14 = vadd.f32 %v1122_v6, %v479_v58  ;;  %1142 = vst [vmem:[%s1936_s17 + $0x88] sm:$0xff] %v1119_v12 }
 0x1da   : > { %1136 = vst [vmem:[%s1936_s17 + $0x58] sm:$0xff] %v1113_v8  ;;  %1147 = vst [vmem:[%s1936_s17 + $0xb0] sm:$0xff] %v1121_v13 }
 0x1db   : > { %1148 = vst [vmem:[%s1936_s17 + $0xb8] sm:$0xff] %v1123_v14 }
 0x1dc PF: > { %s15_s18 = sadd.s32 1, %s1515_s18  }
 0x1dd   : > { %p12_p4 = scmp.ge.s32.totalorder %s15_s18, 4  }
 0x1df   :  { %14 = sbr.rel (!%p12_p4) target bundleno = 1 (0x1), region = 70 }

// kernel: _wavlm_loss_forward.32
= control target key start
LH: loop header
LB: loop body
LE: loop exit
PB: predicated region body
PF: predicated region fallthrough
CT: control target
= control target key end

     0   :  { %s1087_s15 = smov 0   ;;  %s1346_s0 = inlined_call_operand.vmem [shape: f32[64,512], index: 0, kind: input, shape index: {}]   ;;  %s1347_s1 = inlined_call_operand.vmem [shape: bf16[512,256], index: 1, kind: input, shape index: {}]   ;;  %s1348_s2 = inlined_call_operand.vmem [shape: f32[1,256], index: 2, kind: input, shape index: {}]   ;;  %s1349_s3 = inlined_call_operand.vmem [shape: f32[64,256], index: 3, kind: input, shape index: {}]   ;;  %s1350_s4 = inlined_call_operand.vmem [shape: f32[64,256], index: 4, kind: output, shape index: {}]  }
   0x1 LB: > { %s851_s16 = sadd.s32 4294967295, %s1060_s15   ;;  %p855_p0 = scmp.ge.s32.totalorder %s1060_s15, 1  ;;  %s1060_s15 = sphi %s1087_s15, %s14_s15  }
   0x2   : > { %p176_p1 = scmp.lt.s32.totalorder %s1060_s15, 3 }
   0x4   : > { %p177_p2 = pnand %p855_p0, %p176_p1 }
   0x5   : > { %v958_v0 = vld [vmem:[%s1347_s1 + $0x4] ss:$8 sps:$4 sm:$0xff] (!%p177_p2)   ;;  %v962_v2 = vld [vmem:[%s1347_s1] ss:$8 sps:$4 sm:$0xff] (!%p177_p2)   ;;  %v964_v4 = vld [vmem:[%s1347_s1 + $0x14] ss:$8 sps:$4 sm:$0xff] (!%p177_p2)  }
   0x6   : > { %180 = sbr.rel (%p177_p2) target bundleno = 300 (0x12c), region = 36  ;;  %v960_v1 = vld [vmem:[%s1347_s1 + $0x104] ss:$8 sps:$4 sm:$0xff] (!%p177_p2)   ;;  %651 = vmatprep.subr.bf16.mxu1 (!%p177_p2), %v958_v0  ;;  %v963_v3 = vld [vmem:[%s1347_s1 + $0x100] ss:$8 sps:$4 sm:$0xff] (!%p177_p2)   ;;  %s856_s29 = sshll.u32 (!%p177_p2), %s851_s16, 2 }
   0x7   : > { %704 = vmatprep.subr.bf16.mxu0 (!%p177_p2), %v960_v1  ;;  %652 = vmatpush1.bf16.msra.mxu1 (!%p177_p2), %v962_v2  ;;  %v966_v5 = vld [vmem:[%s1347_s1 + $0x114] ss:$8 sps:$4 sm:$0xff] (!%p177_p2)   ;;  %v968_v6 = vld [vmem:[%s1347_s1 + $0x10] ss:$8 sps:$4 sm:$0xff] (!%p177_p2)   ;;  %v970_v8 = vld [vmem:[%s1347_s1 + $0x24] ss:$8 sps:$4 sm:$0xff] (!%p177_p2)  }
   0x8   : > { %705 = vmatpush1.bf16.msra.mxu0 (!%p177_p2), %v963_v3  ;;  %653 = vmatprep.subr.bf16.mxu1 (!%p177_p2), %v964_v4  ;;  %v969_v7 = vld [vmem:[%s1347_s1 + $0x110] ss:$8 sps:$4 sm:$0xff] (!%p177_p2)   ;;  %v972_v9 = vld [vmem:[%s1347_s1 + $0x124] ss:$8 sps:$4 sm:$0xff] (!%p177_p2)   ;;  %v974_v10 = vld [vmem:[%s1347_s1 + $0x20] ss:$8 sps:$4 sm:$0xff] (!%p177_p2)  }
   0x9   : > { %706 = vmatprep.subr.bf16.mxu0 (!%p177_p2), %v966_v5  ;;  %v975_v11 = vld [vmem:[%s1347_s1 + $0x120] ss:$8 sps:$4 sm:$0xff] (!%p177_p2)   ;;  %v976_v12 = vld [vmem:[%s1347_s1 + $0x34] ss:$8 sps:$4 sm:$0xff] (!%p177_p2)   ;;  %v980_v14 = vld [vmem:[%s1347_s1 + $0x30] ss:$8 sps:$4 sm:$0xff] (!%p177_p2)  }
   0xa   : > { %v978_v13 = vld [vmem:[%s1347_s1 + $0x134] ss:$8 sps:$4 sm:$0xff] (!%p177_p2)   ;;  %v981_v15 = vld [vmem:[%s1347_s1 + $0x130] ss:$8 sps:$4 sm:$0xff] (!%p177_p2)   ;;  %v982_v16 = vld [vmem:[%s1347_s1 + $0x44] ss:$8 sps:$4 sm:$0xff] (!%p177_p2)  }
   0xb   : > { %654 = vmatpush1.bf16.msra.mxu1 (!%p177_p2), %v968_v6  ;;  %v984_v17 = vld [vmem:[%s1347_s1 + $0x144] ss:$8 sps:$4 sm:$0xff] (!%p177_p2)   ;;  %v986_v18 = vld [vmem:[%s1347_s1 + $0x40] ss:$8 sps:$4 sm:$0xff] (!%p177_p2)   ;;  %v988_v20 = vld [vmem:[%s1347_s1 + $0x54] ss:$8 sps:$4 sm:$0xff] (!%p177_p2)  }
   0xc   : > { %707 = vmatpush1.bf16.msra.mxu0 (!%p177_p2), %v969_v7  ;;  %655 = vmatprep.subr.bf16.mxu1 (!%p177_p2), %v970_v8  ;;  %v987_v19 = vld [vmem:[%s1347_s1 + $0x140] ss:$8 sps:$4 sm:$0xff] (!%p177_p2)   ;;  %v990_v21 = vld [vmem:[%s1347_s1 + $0x154] ss:$8 sps:$4 sm:$0xff] (!%p177_p2)   ;;  %v992_v22 = vld [vmem:[%s1347_s1 + $0x50] ss:$8 sps:$4 sm:$0xff] (!%p177_p2)  }
   0xd   : > { %708 = vmatprep.subr.bf16.mxu0 %v972_v9  ;;  %v993_v23 = vld [vmem:[%s1347_s1 + $0x150] ss:$8 sps:$4 sm:$0xff]   ;;  %v994_v24 = vld [vmem:[%s1347_s1 + $0x64] ss:$8 sps:$4 sm:$0xff]   ;;  %v998_v26 = vld [vmem:[%s1347_s1 + $0x60] ss:$8 sps:$4 sm:$0xff]  }
   0xe   : > { %v996_v25 = vld [vmem:[%s1347_s1 + $0x164] ss:$8 sps:$4 sm:$0xff]   ;;  %v999_v27 = vld [vmem:[%s1347_s1 + $0x160] ss:$8 sps:$4 sm:$0xff]   ;;  %v1000_v28 = vld [vmem:[%s1347_s1 + $0x74] ss:$8 sps:$4 sm:$0xff]  }
   0xf   : > { %656 = vmatpush1.bf16.msra.mxu1 %v974_v10  ;;  %v1002_v29 = vld [vmem:[%s1347_s1 + $0x174] ss:$8 sps:$4 sm:$0xff]   ;;  %v1004_v30 = vld [vmem:[%s1347_s1 + $0x70] ss:$8 sps:$4 sm:$0xff]   ;;  %v1006_v32 = vld [vmem:[%s1347_s1 + $0x84] ss:$8 sps:$4 sm:$0xff]  }
  0x10   : > { %709 = vmatpush1.bf16.msra.mxu0 %v975_v11  ;;  %657 = vmatprep.subr.bf16.mxu1 %v976_v12  ;;  %v1005_v31 = vld [vmem:[%s1347_s1 + $0x170] ss:$8 sps:$4 sm:$0xff]   ;;  %p211_p3 = scmp.lt.s32.totalorder %s856_s29, 7  ;;  %v1008_v33 = vld [vmem:[%s1347_s1 + $0x184] ss:$8 sps:$4 sm:$0xff]  }
  0x11   : > { %710 = vmatprep.subr.bf16.mxu0 %v978_v13  ;;  %v1010_v34 = vld [vmem:[%s1347_s1 + $0x80] ss:$8 sps:$4 sm:$0xff]   ;;  %v1012_v36 = vld [vmem:[%s1347_s1 + $0x94] ss:$8 sps:$4 sm:$0xff]   ;;  %v1016_v38 = vld [vmem:[%s1347_s1 + $0x90] ss:$8 sps:$4 sm:$0xff]  }
  0x12   : > { %v1011_v35 = vld [vmem:[%s1347_s1 + $0x180] ss:$8 sps:$4 sm:$0xff]   ;;  %s1352_s29 = smov (!%p211_p3, %s856_s29), 7  ;;  %v1014_v37 = vld [vmem:[%s1347_s1 + $0x194] ss:$8 sps:$4 sm:$0xff]  }
  0x13   : > { %658 = vmatpush1.bf16.msra.mxu1 %v980_v14  ;;  %v1017_v39 = vld [vmem:[%s1347_s1 + $0x190] ss:$8 sps:$4 sm:$0xff]   ;;  %v1018_v40 = vld [vmem:[%s1347_s1 + $0xa4] ss:$8 sps:$4 sm:$0xff]   ;;  %s931_s27 = sshll.u32 %s1352_s29, 5  ;;  %s932_s7 = sshll.u32 %s1352_s29, 4 }
  0x14   : > { %711 = vmatpush1.bf16.msra.mxu0 %v981_v15  ;;  %659 = vmatprep.subr.bf16.mxu1 %v982_v16  ;;  %v1020_v41 = vld [vmem:[%s1347_s1 + $0x1a4] ss:$8 sps:$4 sm:$0xff]   ;;  %v1022_v42 = vld [vmem:[%s1347_s1 + $0xa0] ss:$8 sps:$4 sm:$0xff]   ;;  %s1235_s11 = scalar_lea.vmem %s1346_s0, %s931_s27  ;;  %v1024_v44 = vld [vmem:[%s1347_s1 + $0xb4] ss:$8 sps:$4 sm:$0xff]   ;;  %s1320_s10 = scalar_lea.vmem %s1349_s3, %s932_s7 }
  0x15   : > { %712 = vmatprep.subr.bf16.mxu0 %v984_v17  ;;  %v1023_v43 = vld [vmem:[%s1347_s1 + $0x1a0] ss:$8 sps:$4 sm:$0xff]   ;;  %v1026_v45 = vld [vmem:[%s1347_s1 + $0x1b4] ss:$8 sps:$4 sm:$0xff]   ;;  %v1028_v50 = vld [vmem:[%s1347_s1 + $0xb0] ss:$8 sps:$4 sm:$0xff]   ;;  %s1327_s16 = scalar_lea.vmem %s1350_s4, %s932_s7 }
  0x16   : > { %v232_v46 = vld [vmem:[%s1235_s11 + $0x8] sm:$0xff]  ;;  %v234_v48 = vld [vmem:[%s1235_s11 + $0x18] sm:$0xff]  ;;  %v231_v6 = vld [vmem:[%s1235_s11] sm:$0xff] }
  0x17   : > { %660 = vmatpush1.bf16.msra.mxu1 %v986_v18  ;;  %v236_v47 = vld [vmem:[%s1235_s11 + $0x28] sm:$0xff]  ;;  %v238_v49 = vld [vmem:[%s1235_s11 + $0x38] sm:$0xff]  ;;  %v235_v7 = vld [vmem:[%s1235_s11 + $0x20] sm:$0xff] }
  0x18   : > { %713 = vmatpush1.bf16.msra.mxu0 %v987_v19  ;;  %661 = vmatprep.subr.bf16.mxu1 %v988_v20  ;;  %v1029_v51 = vld [vmem:[%s1347_s1 + $0x1b0] ss:$8 sps:$4 sm:$0xff]   ;;  %v248_v52 = vpack.c.bf16 %v236_v47, %v232_v46  ;;  %v250_v53 = vpack.c.bf16 %v238_v49, %v234_v48  ;;  %v1030_v54 = vld [vmem:[%s1347_s1 + $0xc4] ss:$8 sps:$4 sm:$0xff]   ;;  %v1034_v56 = vld [vmem:[%s1347_s1 + $0xc0] ss:$8 sps:$4 sm:$0xff]   ;;  %v247_v14 = vpack.c.bf16 %v235_v7, %v231_v6 }
  0x19   : > { %714 = vmatprep.subr.bf16.mxu0 %v990_v21  ;;  %v1032_v55 = vld [vmem:[%s1347_s1 + $0x1c4] ss:$8 sps:$4 sm:$0xff]   ;;  %v1035_v57 = vld [vmem:[%s1347_s1 + $0x1c0] ss:$8 sps:$4 sm:$0xff]   ;;  %v1036_v58 = vld [vmem:[%s1347_s1 + $0xd4] ss:$8 sps:$4 sm:$0xff]  }
  0x1a   : > { %683 = vmatprep.mubr.bf16.mxu1 %v248_v52  ;;  %736 = vmatprep.mubr.bf16.mxu0 %v250_v53  ;;  %v1038_v59 = vld [vmem:[%s1347_s1 + $0x1d4] ss:$8 sps:$4 sm:$0xff]   ;;  %v1040_v60 = vld [vmem:[%s1347_s1 + $0xd0] ss:$8 sps:$4 sm:$0xff]   ;;  %v1042_v62 = vld [vmem:[%s1347_s1 + $0xe4] ss:$8 sps:$4 sm:$0xff]  }
  0x1b   : > { %662 = vmatpush1.bf16.msra.mxu1 %v992_v22  ;;  %v1041_v61 = vld [vmem:[%s1347_s1 + $0x1d0] ss:$8 sps:$4 sm:$0xff]   ;;  %v1044_v63 = vld [vmem:[%s1347_s1 + $0x1e4] ss:$8 sps:$4 sm:$0xff]   ;;  %v1046_v0 = vld [vmem:[%s1347_s1 + $0xe0] ss:$8 sps:$4 sm:$0xff]  }
  0x1c   : > { %715 = vmatpush1.bf16.msra.mxu0 %v993_v23  ;;  %663 = vmatprep.subr.bf16.mxu1 %v994_v24  ;;  %v1047_v1 = vld [vmem:[%s1347_s1 + $0x1e0] ss:$8 sps:$4 sm:$0xff]   ;;  %v1048_v2 = vld [vmem:[%s1347_s1 + $0xf4] ss:$8 sps:$4 sm:$0xff]   ;;  %v1052_v4 = vld [vmem:[%s1347_s1 + $0xf0] ss:$8 sps:$4 sm:$0xff]   ;;  %v321_v24 = vlaneseq }
  0x1d   : > { %716 = vmatprep.subr.bf16.mxu0 %v996_v25  ;;  %v1050_v3 = vld [vmem:[%s1347_s1 + $0x1f4] ss:$8 sps:$4 sm:$0xff]   ;;  %v1053_v5 = vld [vmem:[%s1347_s1 + $0x1f0] ss:$8 sps:$4 sm:$0xff]   ;;  %v240_v10 = vld [vmem:[%s1235_s11 + $0x48] sm:$0xff] }
  0x1e   : > { %v233_v8 = vld [vmem:[%s1235_s11 + $0x10] sm:$0xff]  ;;  %v244_v11 = vld [vmem:[%s1235_s11 + $0x68] sm:$0xff]  ;;  %v242_v12 = vld [vmem:[%s1235_s11 + $0x58] sm:$0xff]  ;;  %v322_v25 = vshrl.u32 %v321_v24, 7 }
  0x1f   : > { %664 = vmatpush1.bf16.msra.mxu1 %v998_v26  ;;  %v237_v9 = vld [vmem:[%s1235_s11 + $0x30] sm:$0xff]  ;;  %v246_v13 = vld [vmem:[%s1235_s11 + $0x78] sm:$0xff]  ;;  %v252_v16 = vpack.c.bf16 %v244_v11, %v240_v10  ;;  %v239_v18 = vld [vmem:[%s1235_s11 + $0x40] sm:$0xff] }
  0x20   : > { %717 = vmatpush1.bf16.msra.mxu0 %v999_v27  ;;  %665 = vmatprep.subr.bf16.mxu1 %v1000_v28  ;;  %v249_v15 = vpack.c.bf16 %v237_v9, %v233_v8  ;;  %v254_v17 = vpack.c.bf16 %v246_v13, %v242_v12  ;;  %v243_v19 = vld [vmem:[%s1235_s11 + $0x60] sm:$0xff]  ;;  %v241_v20 = vld [vmem:[%s1235_s11 + $0x50] sm:$0xff]  ;;  %v323_v26 = vsub.s32 0, %v322_v25  ;;  %v327_v28 = vsub.s32 1, %v322_v25  ;;  %v764_v10 = vld [vmem:[%s1320_s10 + $0x38] sm:$0xff] }
  0x21   : > { %718 = vmatprep.subr.bf16.mxu0 %v1002_v29  ;;  %v245_v21 = vld [vmem:[%s1235_s11 + $0x70] sm:$0xff]  ;;  %v251_v22 = vpack.c.bf16 %v243_v19, %v239_v18  ;;  %v319_v27 = vld [vmem:[%s1348_s2] sm:$0x3] }
  0x22   : > { %v253_v23 = vpack.c.bf16 %v245_v21, %v241_v20  ;;  %v324_v29 = vrot.slane %v319_v27, %v323_v26  ;;  %v759_v46 = vld [vmem:[%s1320_s10 + $0x10] sm:$0xff] }
  0x23   : > { %666 = vmatpush1.bf16.msra.mxu1 %v1004_v30  ;;  %v328_v30 = vrot.slane %v319_v27, %v327_v28  ;;  %v763_v6 = vld [vmem:[%s1320_s10 + $0x30] sm:$0xff] }
  0x24   : > { %719 = vmatpush1.bf16.msra.mxu0 %v1005_v31  ;;  %667 = vmatprep.subr.bf16.mxu1 %v1006_v32 }
  0x25   : > { %720 = vmatprep.subr.bf16.mxu0 %v1008_v33 }
  0x27   : > { %668 = vmatpush1.bf16.msra.mxu1 %v1010_v34 }
  0x28   : > { %721 = vmatpush1.bf16.msra.mxu0 %v1011_v35  ;;  %669 = vmatprep.subr.bf16.mxu1 %v1012_v36  ;;  %v757_v36 = vld [vmem:[%s1320_s10] sm:$0xff] }
  0x29   : > { %722 = vmatprep.subr.bf16.mxu0 %v1014_v37 }
  0x2b   : > { %670 = vmatpush1.bf16.msra.mxu1 %v1016_v38 }
  0x2c   : > { %723 = vmatpush1.bf16.msra.mxu0 %v1017_v39  ;;  %671 = vmatprep.subr.bf16.mxu1 %v1018_v40 }
  0x2d   : > { %724 = vmatprep.subr.bf16.mxu0 %v1020_v41  ;;  %v758_v41 = vld [vmem:[%s1320_s10 + $0x8] sm:$0xff] }
  0x2f   : > { %672 = vmatpush1.bf16.msra.mxu1 %v1022_v42 }
  0x30   : > { %725 = vmatpush1.bf16.msra.mxu0 %v1023_v43  ;;  %673 = vmatprep.subr.bf16.mxu1 %v1024_v44 }
  0x31   : > { %726 = vmatprep.subr.bf16.mxu0 %v1026_v45 }
  0x33   : > { %674 = vmatpush1.bf16.msra.mxu1 %v1028_v50  ;;  %v760_v50 = vld [vmem:[%s1320_s10 + $0x18] sm:$0xff] }
  0x34   : > { %727 = vmatpush1.bf16.msra.mxu0 %v1029_v51  ;;  %675 = vmatprep.subr.bf16.mxu1 %v1030_v54 }
  0x35   : > { %728 = vmatprep.subr.bf16.mxu0 %v1032_v55 }
  0x37   : > { %676 = vmatpush1.bf16.msra.mxu1 %v1034_v56 }
  0x38   : > { %729 = vmatpush1.bf16.msra.mxu0 %v1035_v57  ;;  %677 = vmatprep.subr.bf16.mxu1 %v1036_v58 }
  0x39   : > { %730 = vmatprep.subr.bf16.mxu0 %v1038_v59 }
  0x3b   : > { %678 = vmatpush1.bf16.msra.mxu1 %v1040_v60  ;;  %v761_v60 = vld [vmem:[%s1320_s10 + $0x20] sm:$0xff] }
  0x3c   : > { %731 = vmatpush1.bf16.msra.mxu0 %v1041_v61  ;;  %679 = vmatprep.subr.bf16.mxu1 %v1042_v62 }
  0x3d   : > { %732 = vmatprep.subr.bf16.mxu0 %v1044_v63 }
  0x3f   : > { %680 = vmatpush1.bf16.msra.mxu1 %v1046_v0 }
  0x40   : > { %733 = vmatpush1.bf16.msra.mxu0 %v1047_v1  ;;  %681 = vmatprep.subr.bf16.mxu1 %v1048_v2  ;;  %v762_v1 = vld [vmem:[%s1320_s10 + $0x28] sm:$0xff] }
  0x41   : > { %734 = vmatprep.subr.bf16.mxu0 %v1050_v3 }
  0x43   : > { %682 = vmatpush1.bf16.msra.mxu1 %v1052_v4 }
  0x44   : > { %735 = vmatpush1.bf16.msra.mxu0 %v1053_v5 }
  0x46   : > { %684 = vmatmul.mubr.bf16.vlgmr.msra.gmra.mrb[0].mxu1 %v247_v14 }
  0x47   : > { %737 = vmatmul.mubr.bf16.vlgmr.msra.gmra.mrb[0].mxu0 %v249_v15  ;;  %693 = vmatprep.mubr.bf16.mxu1 %v252_v16 }
  0x48   : > { %746 = vmatprep.mubr.bf16.mxu0 %v254_v17 }
  0x4e   : > { %694 = vmatmul.mubr.bf16.gmra.mrb[4].mxu1 %v251_v22 }
  0x4f   : > { %747 = vmatmul.mubr.bf16.gmra.mrb[4].mxu0 %v253_v23 }
 0x119   : > { %v685_v31 = vpop.f32.mrb[0].mxu1 }
 0x11a   : > { %v738_v32 = vpop.f32.mrb[0].mxu0  ;;  %v686_v33 = vadd.f32 %v685_v31, %v324_v29  ;;  %v687_v34 = vpop.f32.mrb[1].mxu1 }
 0x11b   : > { %v740_v35 = vpop.f32.mrb[1].mxu0  ;;  %v688_v37 = vadd.f32 %v687_v34, %v328_v30  ;;  %v689_v38 = vpop.f32.mrb[2].mxu1 }
 0x11c   : > { %v742_v39 = vpop.f32.mrb[2].mxu0  ;;  %v739_v40 = vadd.f32 %v738_v32, %v686_v33  ;;  %v690_v42 = vadd.f32 %v689_v38, %v324_v29  ;;  %v691_v43 = vpop.f32.mrb[3].mxu1 }
 0x11d   : > { %v744_v44 = vpop.f32.mrb[3].mxu0  ;;  %v741_v45 = vadd.f32 %v740_v35, %v688_v37  ;;  %v692_v47 = vadd.f32 %v691_v43, %v328_v30 }
 0x11e   : > { %v765_v48 = vadd.f32 %v757_v36, %v739_v40  ;;  %v743_v49 = vadd.f32 %v742_v39, %v690_v42 }
 0x11f   : > { %v766_v51 = vadd.f32 %v758_v41, %v741_v45  ;;  %v745_v52 = vadd.f32 %v744_v44, %v692_v47 }
 0x120   : > { %773 = vst [vmem:[%s1327_s16] sm:$0xff] %v765_v48  ;;  %v767_v53 = vadd.f32 %v759_v46, %v743_v49 }
 0x121   : > { %774 = vst [vmem:[%s1327_s16 + $0x8] sm:$0xff] %v766_v51  ;;  %v768_v54 = vadd.f32 %v760_v50, %v745_v52  ;;  %v695_v55 = vpop.f32.mrb[4].mxu1 }
 0x122   : > { %v748_v56 = vpop.f32.mrb[4].mxu0  ;;  %775 = vst [vmem:[%s1327_s16 + $0x10] sm:$0xff] %v767_v53  ;;  %v696_v57 = vadd.f32 %v695_v55, %v324_v29  ;;  %v697_v58 = vpop.f32.mrb[5].mxu1 }
 0x123   : > { %v750_v59 = vpop.f32.mrb[5].mxu0  ;;  %776 = vst [vmem:[%s1327_s16 + $0x18] sm:$0xff] %v768_v54  ;;  %v698_v61 = vadd.f32 %v697_v58, %v328_v30  ;;  %v699_v62 = vpop.f32.mrb[6].mxu1 }
 0x124   : > { %v752_v63 = vpop.f32.mrb[6].mxu0  ;;  %v749_v0 = vadd.f32 %v748_v56, %v696_v57  ;;  %v700_v2 = vadd.f32 %v699_v62, %v324_v29  ;;  %v701_v3 = vpop.f32.mrb[7].mxu1 }
 0x125   : > { %v754_v4 = vpop.f32.mrb[7].mxu0  ;;  %v751_v5 = vadd.f32 %v750_v59, %v698_v61  ;;  %v702_v7 = vadd.f32 %v701_v3, %v328_v30 }
 0x126   : > { %v769_v8 = vadd.f32 %v761_v60, %v749_v0  ;;  %v753_v9 = vadd.f32 %v752_v63, %v700_v2 }
 0x127   : > { %v770_v11 = vadd.f32 %v762_v1, %v751_v5  ;;  %v755_v12 = vadd.f32 %v754_v4, %v702_v7 }
 0x128   : > { %777 = vst [vmem:[%s1327_s16 + $0x20] sm:$0xff] %v769_v8  ;;  %v771_v13 = vadd.f32 %v763_v6, %v753_v9 }
 0x129   : > { %778 = vst [vmem:[%s1327_s16 + $0x28] sm:$0xff] %v770_v11  ;;  %v772_v14 = vadd.f32 %v764_v10, %v755_v12 }
 0x12a   : > { %779 = vst [vmem:[%s1327_s16 + $0x30] sm:$0xff] %v771_v13 }
 0x12b   : > { %780 = vst [vmem:[%s1327_s16 + $0x38] sm:$0xff] %v772_v14 }
 0x12c PF: > { %s14_s15 = sadd.s32 1, %s1060_s15  }
 0x12d   : > { %p11_p4 = scmp.ge.s32.totalorder %s14_s15, 4  }
 0x12f   :  { %13 = sbr.rel (!%p11_p4) target bundleno = 1 (0x1), region = 69 }

// kernel: _wavlm_loss_forward.31
= control target key start
LH: loop header
LB: loop body
LE: loop exit
PB: predicated region body
PF: predicated region fallthrough
CT: control target
= control target key end

     0   :  { %s1349_s18 = smov 0   ;;  %s1768_s0 = inlined_call_operand.vmem [shape: f32[64,256], index: 0, kind: input, shape index: {}]   ;;  %s1769_s1 = inlined_call_operand.vmem [shape: bf16[256,512], index: 1, kind: input, shape index: {}]   ;;  %s1770_s2 = inlined_call_operand.vmem [shape: f32[1,512], index: 2, kind: input, shape index: {}]   ;;  %s1771_s3 = inlined_call_operand.vmem [shape: f32[1,256], index: 3, kind: input, shape index: {}]   ;;  %s1772_s4 = inlined_call_operand.vmem [shape: f32[1,256], index: 4, kind: input, shape index: {}]   ;;  %s1773_s5 = inlined_call_operand.vmem [shape: f32[64,512], index: 5, kind: output, shape index: {}]  }
   0x1 LB: > { %s1088_s19 = sadd.s32 4294967295, %s1317_s18   ;;  %p1092_p0 = scmp.ge.s32.totalorder %s1317_s18, 1  ;;  %s1317_s18 = sphi %s1349_s18, %s15_s18  }
   0x2   : > { %p189_p1 = scmp.lt.s32.totalorder %s1317_s18, 3 }
   0x4   : > { %p190_p2 = pnand %p1092_p0, %p189_p1 }
   0x5   : > { %s1093_s20 = sshll.u32 (!%p190_p2), %s1088_s19, 2  ;;  %v1175_v0 = vld [vmem:[%s1769_s1 + $0x4] ss:$16 sps:$4 sm:$0xff] (!%p190_p2)   ;;  %v1177_v1 = vld [vmem:[%s1769_s1 + $0xc] ss:$16 sps:$4 sm:$0xff] (!%p190_p2)  }
   0x6   : > { %193 = sbr.rel (%p190_p2) target bundleno = 462 (0x1ce), region = 40  ;;  %p220_p3 = scmp.lt.s32.totalorder (!%p190_p2), %s1093_s20, 7  ;;  %764 = vmatprep.subr.bf16.mxu0 (!%p190_p2), %v1175_v0  ;;  %v1179_v2 = vld [vmem:[%s1769_s1] ss:$16 sps:$4 sm:$0xff] (!%p190_p2)   ;;  %v1180_v3 = vld [vmem:[%s1769_s1 + $0x8] ss:$16 sps:$4 sm:$0xff] (!%p190_p2)   ;;  %817 = vmatprep.subr.bf16.mxu1 (!%p190_p2), %v1177_v1 }
   0x7   : > { %v1181_v4 = vld [vmem:[%s1769_s1 + $0x24] ss:$16 sps:$4 sm:$0xff] (!%p190_p2)   ;;  %765 = vmatpush1.bf16.msra.mxu0 (!%p190_p2), %v1179_v2  ;;  %818 = vmatpush1.bf16.msra.mxu1 (!%p190_p2), %v1180_v3  ;;  %v1183_v5 = vld [vmem:[%s1769_s1 + $0x2c] ss:$16 sps:$4 sm:$0xff] (!%p190_p2)   ;;  %v1185_v6 = vld [vmem:[%s1769_s1 + $0x20] ss:$16 sps:$4 sm:$0xff] (!%p190_p2)  }
   0x8   : > { %766 = vmatprep.subr.bf16.mxu0 (!%p190_p2), %v1181_v4  ;;  %v1186_v7 = vld [vmem:[%s1769_s1 + $0x28] ss:$16 sps:$4 sm:$0xff] (!%p190_p2)   ;;  %819 = vmatprep.subr.bf16.mxu1 (!%p190_p2), %v1183_v5  ;;  %v1187_v8 = vld [vmem:[%s1769_s1 + $0x44] ss:$16 sps:$4 sm:$0xff] (!%p190_p2)   ;;  %v1189_v20 = vld [vmem:[%s1769_s1 + $0x4c] ss:$16 sps:$4 sm:$0xff] (!%p190_p2)  }
   0x9   : > { %v1191_v23 = vld [vmem:[%s1769_s1 + $0x40] ss:$16 sps:$4 sm:$0xff] (!%p190_p2)   ;;  %v1192_v24 = vld [vmem:[%s1769_s1 + $0x48] ss:$16 sps:$4 sm:$0xff] (!%p190_p2)   ;;  %v1193_v27 = vld [vmem:[%s1769_s1 + $0x64] ss:$16 sps:$4 sm:$0xff] (!%p190_p2)  }
   0xa   : > { %v1195_v29 = vld [vmem:[%s1769_s1 + $0x6c] ss:$16 sps:$4 sm:$0xff] (!%p190_p2)   ;;  %v1197_v30 = vld [vmem:[%s1769_s1 + $0x60] ss:$16 sps:$4 sm:$0xff] (!%p190_p2)   ;;  %v1198_v31 = vld [vmem:[%s1769_s1 + $0x68] ss:$16 sps:$4 sm:$0xff] (!%p190_p2)  }
   0xb   : > { %767 = vmatpush1.bf16.msra.mxu0 (!%p190_p2), %v1185_v6  ;;  %820 = vmatpush1.bf16.msra.mxu1 (!%p190_p2), %v1186_v7  ;;  %v1199_v35 = vld [vmem:[%s1769_s1 + $0x84] ss:$16 sps:$4 sm:$0xff] (!%p190_p2)   ;;  %v1201_v36 = vld [vmem:[%s1769_s1 + $0x8c] ss:$16 sps:$4 sm:$0xff] (!%p190_p2)   ;;  %v1203_v37 = vld [vmem:[%s1769_s1 + $0x80] ss:$16 sps:$4 sm:$0xff] (!%p190_p2)  }
   0xc   : > { %768 = vmatprep.subr.bf16.mxu0 (!%p190_p2), %v1187_v8  ;;  %821 = vmatprep.subr.bf16.mxu1 (!%p190_p2), %v1189_v20  ;;  %v1204_v41 = vld [vmem:[%s1769_s1 + $0x88] ss:$16 sps:$4 sm:$0xff] (!%p190_p2)   ;;  %v1205_v42 = vld [vmem:[%s1769_s1 + $0xa4] ss:$16 sps:$4 sm:$0xff] (!%p190_p2)   ;;  %v1207_v44 = vld [vmem:[%s1769_s1 + $0xac] ss:$16 sps:$4 sm:$0xff] (!%p190_p2)  }
   0xd   : > { %s1775_s20 = smov (!%p220_p3, %s1093_s20), 7  ;;  %v1209_v46 = vld [vmem:[%s1769_s1 + $0xa0] ss:$16 sps:$4 sm:$0xff]   ;;  %v1210_v47 = vld [vmem:[%s1769_s1 + $0xa8] ss:$16 sps:$4 sm:$0xff]  }
   0xe   : > { %s1165_s10 = sshll.u32 %s1775_s20, 4  ;;  %v1211_v48 = vld [vmem:[%s1769_s1 + $0xc4] ss:$16 sps:$4 sm:$0xff]   ;;  %v1213_v49 = vld [vmem:[%s1769_s1 + $0xcc] ss:$16 sps:$4 sm:$0xff]   ;;  %s1166_s21 = sshll.u32 %s1775_s20, 5 }
   0xf   : > { %s224_s15 = scalar_lea.vmem %s1768_s0, %s1165_s10  ;;  %769 = vmatpush1.bf16.msra.mxu0 %v1191_v23  ;;  %822 = vmatpush1.bf16.msra.mxu1 %v1192_v24  ;;  %v1215_v50 = vld [vmem:[%s1769_s1 + $0xc0] ss:$16 sps:$4 sm:$0xff]   ;;  %v1216_v51 = vld [vmem:[%s1769_s1 + $0xc8] ss:$16 sps:$4 sm:$0xff]   ;;  %v1217_v52 = vld [vmem:[%s1769_s1 + $0xe4] ss:$16 sps:$4 sm:$0xff]   ;;  %s1715_s23 = scalar_lea.vmem %s1773_s5, %s1166_s21 }
  0x10   : > { %v1390_v9 = vld [vmem:[%s224_s15] sm:$0xff]  ;;  %v1392_v10 = vld [vmem:[%s224_s15 + $0x8] sm:$0xff]  ;;  %v1394_v11 = vld [vmem:[%s224_s15 + $0x10] sm:$0xff]  ;;  %770 = vmatprep.subr.bf16.mxu0 %v1193_v27  ;;  %823 = vmatprep.subr.bf16.mxu1 %v1195_v29 }
  0x11   : > { %v241_v12 = vadd.f32 %v1392_v10, %v1390_v9  ;;  %v258_v13 = vmul.f32 %v1390_v9, %v1390_v9  ;;  %v259_v14 = vmul.f32 %v1392_v10, %v1392_v10  ;;  %v1402_v15 = vld [vmem:[%s224_s15 + $0x18] sm:$0xff]  ;;  %v260_v16 = vmul.f32 %v1394_v11, %v1394_v11  ;;  %v1408_v18 = vld [vmem:[%s224_s15 + $0x20] sm:$0xff]  ;;  %v1410_v19 = vld [vmem:[%s224_s15 + $0x28] sm:$0xff] }
  0x12   : > { %v261_v17 = vmul.f32 %v1402_v15, %v1402_v15  ;;  %v244_v22 = vadd.f32 %v1402_v15, %v1394_v11  ;;  %v1423_v25 = vld [vmem:[%s224_s15 + $0x30] sm:$0xff]  ;;  %v1425_v26 = vld [vmem:[%s224_s15 + $0x38] sm:$0xff]  ;;  %v247_v32 = vadd.f32 %v1410_v19, %v1408_v18  ;;  %v262_v33 = vmul.f32 %v1408_v18, %v1408_v18 }
  0x13   : > { %242 = vadd.xlane.f32.xlu0 %v241_v12  ;;  %v266_v21 = vadd.f32 %v259_v14, %v258_v13  ;;  %v263_v34 = vmul.f32 %v1410_v19, %v1410_v19  ;;  %v250_v38 = vadd.f32 %v1425_v26, %v1423_v25  ;;  %v264_v39 = vmul.f32 %v1423_v25, %v1423_v25  ;;  %v1219_v53 = vld [vmem:[%s1769_s1 + $0xec] ss:$16 sps:$4 sm:$0xff]   ;;  %v1221_v54 = vld [vmem:[%s1769_s1 + $0xe0] ss:$16 sps:$4 sm:$0xff]   ;;  %v1222_v55 = vld [vmem:[%s1769_s1 + $0xe8] ss:$16 sps:$4 sm:$0xff]  }
  0x14   : > { %v269_v28 = vadd.f32 %v261_v17, %v260_v16  ;;  %v265_v40 = vmul.f32 %v1425_v26, %v1425_v26  ;;  %771 = vmatpush1.bf16.msra.mxu0 %v1197_v30  ;;  %824 = vmatpush1.bf16.msra.mxu1 %v1198_v31  ;;  %v1223_v56 = vld [vmem:[%s1769_s1 + $0x104] ss:$16 sps:$4 sm:$0xff]   ;;  %v1225_v57 = vld [vmem:[%s1769_s1 + $0x10c] ss:$16 sps:$4 sm:$0xff]   ;;  %v1227_v58 = vld [vmem:[%s1769_s1 + $0x100] ss:$16 sps:$4 sm:$0xff]  }
  0x15   : > { %267 = vadd.xlane.f32.xlu1 %v266_v21  ;;  %772 = vmatprep.subr.bf16.mxu0 %v1199_v35  ;;  %v272_v43 = vadd.f32 %v263_v34, %v262_v33  ;;  %v1228_v59 = vld [vmem:[%s1769_s1 + $0x108] ss:$16 sps:$4 sm:$0xff]   ;;  %v1229_v60 = vld [vmem:[%s1769_s1 + $0x124] ss:$16 sps:$4 sm:$0xff]   ;;  %v1231_v61 = vld [vmem:[%s1769_s1 + $0x12c] ss:$16 sps:$4 sm:$0xff]  }
  0x16   : > { %825 = vmatprep.subr.bf16.mxu1 %v1201_v36  ;;  %v275_v45 = vadd.f32 %v265_v40, %v264_v39  ;;  %v1233_v62 = vld [vmem:[%s1769_s1 + $0x120] ss:$16 sps:$4 sm:$0xff]   ;;  %v1234_v63 = vld [vmem:[%s1769_s1 + $0x128] ss:$16 sps:$4 sm:$0xff]   ;;  %v1235_v0 = vld [vmem:[%s1769_s1 + $0x144] ss:$16 sps:$4 sm:$0xff]  }
  0x17   : > { %245 = vadd.xlane.f32.xlu0 %v244_v22  ;;  %v1237_v1 = vld [vmem:[%s1769_s1 + $0x14c] ss:$16 sps:$4 sm:$0xff]   ;;  %v1239_v2 = vld [vmem:[%s1769_s1 + $0x140] ss:$16 sps:$4 sm:$0xff]   ;;  %v1240_v3 = vld [vmem:[%s1769_s1 + $0x148] ss:$16 sps:$4 sm:$0xff]  }
  0x18   : > { %773 = vmatpush1.bf16.msra.mxu0 %v1203_v37  ;;  %826 = vmatpush1.bf16.msra.mxu1 %v1204_v41  ;;  %v1241_v4 = vld [vmem:[%s1769_s1 + $0x164] ss:$16 sps:$4 sm:$0xff]   ;;  %v1243_v5 = vld [vmem:[%s1769_s1 + $0x16c] ss:$16 sps:$4 sm:$0xff]   ;;  %v1245_v6 = vld [vmem:[%s1769_s1 + $0x160] ss:$16 sps:$4 sm:$0xff]  }
  0x19   : > { %270 = vadd.xlane.f32.xlu1 %v269_v28  ;;  %774 = vmatprep.subr.bf16.mxu0 %v1205_v42  ;;  %v1246_v7 = vld [vmem:[%s1769_s1 + $0x168] ss:$16 sps:$4 sm:$0xff]   ;;  %v1247_v8 = vld [vmem:[%s1769_s1 + $0x184] ss:$16 sps:$4 sm:$0xff]   ;;  %v1249_v12 = vld [vmem:[%s1769_s1 + $0x18c] ss:$16 sps:$4 sm:$0xff]  }
  0x1a   : > { %827 = vmatprep.subr.bf16.mxu1 %v1207_v44  ;;  %v1251_v13 = vld [vmem:[%s1769_s1 + $0x180] ss:$16 sps:$4 sm:$0xff]   ;;  %v1252_v14 = vld [vmem:[%s1769_s1 + $0x188] ss:$16 sps:$4 sm:$0xff]   ;;  %v1253_v16 = vld [vmem:[%s1769_s1 + $0x1a4] ss:$16 sps:$4 sm:$0xff]  }
  0x1b   : > { %248 = vadd.xlane.f32.xlu0 %v247_v32  ;;  %v1255_v17 = vld [vmem:[%s1769_s1 + $0x1ac] ss:$16 sps:$4 sm:$0xff]   ;;  %v1257_v20 = vld [vmem:[%s1769_s1 + $0x1a0] ss:$16 sps:$4 sm:$0xff]   ;;  %v1258_v21 = vld [vmem:[%s1769_s1 + $0x1a8] ss:$16 sps:$4 sm:$0xff]  }
  0x1c   : > { %775 = vmatpush1.bf16.msra.mxu0 %v1209_v46  ;;  %828 = vmatpush1.bf16.msra.mxu1 %v1210_v47  ;;  %v1259_v22 = vld [vmem:[%s1769_s1 + $0x1c4] ss:$16 sps:$4 sm:$0xff]   ;;  %v1261_v23 = vld [vmem:[%s1769_s1 + $0x1cc] ss:$16 sps:$4 sm:$0xff]   ;;  %v1263_v24 = vld [vmem:[%s1769_s1 + $0x1c0] ss:$16 sps:$4 sm:$0xff]  }
  0x1d   : > { %251 = vadd.xlane.f32.xlu1 %v250_v38  ;;  %776 = vmatprep.subr.bf16.mxu0 %v1211_v48  ;;  %v1264_v27 = vld [vmem:[%s1769_s1 + $0x1c8] ss:$16 sps:$4 sm:$0xff]   ;;  %v1265_v28 = vld [vmem:[%s1769_s1 + $0x1e4] ss:$16 sps:$4 sm:$0xff]   ;;  %v1267_v29 = vld [vmem:[%s1769_s1 + $0x1ec] ss:$16 sps:$4 sm:$0xff]  }
  0x1e   : > { %829 = vmatprep.subr.bf16.mxu1 %v1213_v49  ;;  %v1269_v30 = vld [vmem:[%s1769_s1 + $0x1e0] ss:$16 sps:$4 sm:$0xff]   ;;  %v1270_v31 = vld [vmem:[%s1769_s1 + $0x1e8] ss:$16 sps:$4 sm:$0xff]  }
  0x1f   : > { %273 = vadd.xlane.f32.xlu0 %v272_v43 }
  0x20   : > { %777 = vmatpush1.bf16.msra.mxu0 %v1215_v50  ;;  %830 = vmatpush1.bf16.msra.mxu1 %v1216_v51 }
  0x21   : > { %276 = vadd.xlane.f32.xlu1 %v275_v45  ;;  %778 = vmatprep.subr.bf16.mxu0 %v1217_v52  ;;  %v316_v45 = vlaneseq }
  0x22   : > { %831 = vmatprep.subr.bf16.mxu1 %v1219_v53 }
  0x23   : > { %v1595_v53 = vshrl.u32 %v316_v45, 7 }
  0x24   : > { %779 = vmatpush1.bf16.msra.mxu0 %v1221_v54  ;;  %832 = vmatpush1.bf16.msra.mxu1 %v1222_v55 }
  0x25   : > { %780 = vmatprep.subr.bf16.mxu0 %v1223_v56  ;;  %833 = vmatprep.subr.bf16.mxu1 %v1225_v57 }
  0x28   : > { %781 = vmatpush1.bf16.msra.mxu0 %v1227_v58  ;;  %834 = vmatpush1.bf16.msra.mxu1 %v1228_v59  ;;  %v1598_v59 = vsub.s32 0, %v1595_v53 }
  0x29   : > { %782 = vmatprep.subr.bf16.mxu0 %v1229_v60  ;;  %835 = vmatprep.subr.bf16.mxu1 %v1231_v61 }
  0x2c   : > { %783 = vmatpush1.bf16.msra.mxu0 %v1233_v62  ;;  %836 = vmatpush1.bf16.msra.mxu1 %v1234_v63  ;;  %v314_v62 = vld [vmem:[%s1771_s3] sm:$0x3]  ;;  %v322_v63 = vsub.s32 1, %v1595_v53 }
  0x2d   : > { %784 = vmatprep.subr.bf16.mxu0 %v1235_v0  ;;  %837 = vmatprep.subr.bf16.mxu1 %v1237_v1 }
  0x30   : > { %785 = vmatpush1.bf16.msra.mxu0 %v1239_v2  ;;  %838 = vmatpush1.bf16.msra.mxu1 %v1240_v3 }
  0x31   : > { %786 = vmatprep.subr.bf16.mxu0 %v1241_v4  ;;  %839 = vmatprep.subr.bf16.mxu1 %v1243_v5  ;;  %v319_v4 = vrot.slane %v314_v62, %v1598_v59 }
  0x34   : > { %787 = vmatpush1.bf16.msra.mxu0 %v1245_v6  ;;  %840 = vmatpush1.bf16.msra.mxu1 %v1246_v7  ;;  %v323_v6 = vrot.slane %v314_v62, %v322_v63  ;;  %v334_v7 = vld [vmem:[%s1772_s4] sm:$0x3] }
  0x35   : > { %788 = vmatprep.subr.bf16.mxu0 %v1247_v8  ;;  %841 = vmatprep.subr.bf16.mxu1 %v1249_v12 }
  0x38   : > { %789 = vmatpush1.bf16.msra.mxu0 %v1251_v13  ;;  %842 = vmatpush1.bf16.msra.mxu1 %v1252_v14 }
  0x39   : > { %790 = vmatprep.subr.bf16.mxu0 %v1253_v16  ;;  %843 = vmatprep.subr.bf16.mxu1 %v1255_v17 }
  0x3c   : > { %791 = vmatpush1.bf16.msra.mxu0 %v1257_v20  ;;  %844 = vmatpush1.bf16.msra.mxu1 %v1258_v21 }
  0x3d   : > { %792 = vmatprep.subr.bf16.mxu0 %v1259_v22  ;;  %845 = vmatprep.subr.bf16.mxu1 %v1261_v23 }
  0x40   : > { %793 = vmatpush1.bf16.msra.mxu0 %v1263_v24  ;;  %846 = vmatpush1.bf16.msra.mxu1 %v1264_v27 }
  0x41   : > { %794 = vmatprep.subr.bf16.mxu0 %v1265_v28  ;;  %847 = vmatprep.subr.bf16.mxu1 %v1267_v29 }
  0x44   : > { %795 = vmatpush1.bf16.msra.mxu0 %v1269_v30  ;;  %848 = vmatpush1.bf16.msra.mxu1 %v1270_v31 }
  0xa0   : > { %v243_v32 = vpop.xlane.xlu0 %242 }
  0xa1   : > { %v254_v33 = vmul.f32 0.00390625, %v243_v32 }
  0xa2   : > { %v268_v34 = vpop.xlane.xlu1 %267 }
  0xa3   : > { %v278_v35 = vmul.f32 0.00390625, %v268_v34  ;;  %v282_v36 = vmul.f32 %v254_v33, %v254_v33  ;;  %v290_v1 = vsub.f32 %v1390_v9, %v254_v33  ;;  %v291_v2 = vsub.f32 %v1392_v10, %v254_v33 }
  0xa4   : > { %v246_v37 = vpop.xlane.xlu0 %245  ;;  %v339_v9 = vrot.slane %v334_v7, %v1598_v59  ;;  %v343_v10 = vrot.slane %v334_v7, %v322_v63 }
  0xa5   : > { %v286_v38 = vsub.f32 %v278_v35, %v282_v36  ;;  %v255_v39 = vmul.f32 0.00390625, %v246_v37 }
  0xa6   : > { %v271_v40 = vpop.xlane.xlu1 %270 }
  0xa7   : > { %v298_v41 = vadd.f32 1e-05, %v286_v38  ;;  %v279_v42 = vmul.f32 0.00390625, %v271_v40  ;;  %v283_v43 = vmul.f32 %v255_v39, %v255_v39  ;;  %v292_v12 = vsub.f32 %v1394_v11, %v255_v39 }
  0xa8   : > { %v249_v44 = vpop.xlane.xlu0 %248  ;;  %v293_v13 = vsub.f32 %v1402_v15, %v255_v39 }
  0xa9   : > { %1271 = vrsqrt.f32 %v298_v41  ;;  %v256_v46 = vmul.f32 0.00390625, %v249_v44  ;;  %v287_v47 = vsub.f32 %v279_v42, %v283_v43 }
  0xaa   : > { %v252_v48 = vpop.xlane.xlu1 %251 }
  0xab   : > { %v257_v49 = vmul.f32 0.00390625, %v252_v48  ;;  %v284_v50 = vmul.f32 %v256_v46, %v256_v46  ;;  %v299_v51 = vadd.f32 1e-05, %v287_v47  ;;  %v294_v24 = vsub.f32 %v1408_v18, %v256_v46  ;;  %v422_v47 = vld [vmem:[%s1770_s2] sm:$0xf] }
  0xac   : > { %v274_v52 = vpop.xlane.xlu0 %273  ;;  %v295_v27 = vsub.f32 %v1410_v19, %v256_v46  ;;  %v434_v46 = vsub.s32 2, %v1595_v53  ;;  %v438_v48 = vsub.s32 3, %v1595_v53 }
  0xad   : > { %v280_v54 = vmul.f32 0.00390625, %v274_v52  ;;  %1273 = vrsqrt.f32 %v299_v51  ;;  %v285_v57 = vmul.f32 %v257_v49, %v257_v49  ;;  %v296_v15 = vsub.f32 %v1423_v25, %v257_v49 }
  0xae   : > { %v277_v55 = vpop.xlane.xlu1 %276  ;;  %v297_v32 = vsub.f32 %v1425_v26, %v257_v49  ;;  %v1623_v49 = vrot.slane %v422_v47, %v1598_v59  ;;  %v1627_v51 = vrot.slane %v422_v47, %v322_v63  ;;  %v1629_v52 = vrot.slane %v422_v47, %v438_v48 }
  0xaf   : > { %v288_v56 = vsub.f32 %v280_v54, %v284_v50  ;;  %v281_v58 = vmul.f32 0.00390625, %v277_v55  ;;  %v1625_v50 = vrot.slane %v422_v47, %v434_v46 }
  0xb1   : > { %v300_v60 = vadd.f32 1e-05, %v288_v56  ;;  %v289_v61 = vsub.f32 %v281_v58, %v285_v57 }
  0xb3   : > { %v1272_v0 = vpop.eup %1271  ;;  %1275 = vrsqrt.f32 %v300_v60  ;;  %v301_v3 = vadd.f32 1e-05, %v289_v61 }
  0xb4   : > { %v307_v5 = vmul.f32 %v1272_v0, %v291_v2  ;;  %v306_v8 = vmul.f32 %v1272_v0, %v290_v1 }
  0xb5   : > { %1277 = vrsqrt.f32 %v301_v3 }
  0xb6   : > { %v327_v17 = vmul.f32 %v323_v6, %v307_v5  ;;  %v326_v21 = vmul.f32 %v319_v4, %v306_v8 }
  0xb7   : > { %v1274_v14 = vpop.eup %1273 }
  0xb8   : > { %v309_v16 = vmul.f32 %v1274_v14, %v293_v13  ;;  %v308_v20 = vmul.f32 %v1274_v14, %v292_v12  ;;  %v347_v29 = vadd.f32 %v343_v10, %v327_v17  ;;  %v346_v11 = vadd.f32 %v339_v9, %v326_v21 }
  0xba   : > { %v329_v22 = vmul.f32 %v323_v6, %v309_v16  ;;  %v328_v23 = vmul.f32 %v319_v4, %v308_v20 }
  0xbc   : > { %v349_v30 = vadd.f32 %v343_v10, %v329_v22  ;;  %v348_v31 = vadd.f32 %v339_v9, %v328_v23 }
  0xbd   : > { %v1276_v28 = vpop.eup %1275 }
  0xbe   : > { %v311_v33 = vmul.f32 %v1276_v28, %v295_v27  ;;  %v310_v34 = vmul.f32 %v1276_v28, %v294_v24  ;;  %v355_v36 = vpack.c.bf16 %v349_v30, %v347_v29  ;;  %v354_v37 = vpack.c.bf16 %v348_v31, %v346_v11 }
  0xbf   : > { %v1278_v35 = vpop.eup %1277 }
  0xc0   : > { %v313_v38 = vmul.f32 %v1278_v35, %v297_v32  ;;  %v331_v39 = vmul.f32 %v323_v6, %v311_v33  ;;  %v312_v40 = vmul.f32 %v1278_v35, %v296_v15  ;;  %v330_v18 = vmul.f32 %v319_v4, %v310_v34  ;;  %796 = vmatprep.mubr.bf16.mxu0 %v355_v36 }
  0xc1   : > { %849 = vmatprep.mubr.bf16.mxu1 %v355_v36  ;;  %797 = vmatmul.mubr.bf16.vlgmr.msra.gmra.mrb[0].mxu0 %v354_v37 }
  0xc2   : > { %850 = vmatmul.mubr.bf16.vlgmr.msra.gmra.mrb[0].mxu1 %v354_v37  ;;  %v333_v19 = vmul.f32 %v323_v6, %v313_v38  ;;  %v332_v41 = vmul.f32 %v319_v4, %v312_v40  ;;  %v351_v42 = vadd.f32 %v343_v10, %v331_v39  ;;  %v350_v25 = vadd.f32 %v339_v9, %v330_v18 }
  0xc4   : > { %v353_v43 = vadd.f32 %v343_v10, %v333_v19  ;;  %v352_v44 = vadd.f32 %v339_v9, %v332_v41 }
  0xc6   : > { %v357_v26 = vpack.c.bf16 %v353_v43, %v351_v42  ;;  %v356_v45 = vpack.c.bf16 %v352_v44, %v350_v25 }
  0xc8   : > { %806 = vmatprep.mubr.bf16.mxu0 %v357_v26  ;;  %859 = vmatprep.mubr.bf16.mxu1 %v357_v26 }
  0xc9   : > { %807 = vmatmul.mubr.bf16.gmra.mrb[4].mxu0 %v356_v45 }
  0xca   : > { %860 = vmatmul.mubr.bf16.gmra.mrb[4].mxu1 %v356_v45 }
 0x194   : > { %v798_v54 = vpop.f32.mrb[0].mxu0 }
 0x195   : > { %v851_v55 = vpop.f32.mrb[0].mxu1  ;;  %v799_v56 = vadd.f32 %v798_v54, %v1623_v49  ;;  %v800_v58 = vpop.f32.mrb[1].mxu0 }
 0x196   : > { %v852_v57 = vadd.f32 %v851_v55, %v1625_v50  ;;  %v853_v60 = vpop.f32.mrb[1].mxu1  ;;  %v801_v61 = vadd.f32 %v800_v58, %v1627_v51  ;;  %v802_v59 = vpop.f32.mrb[2].mxu0 }
 0x197   : > { %v1635_v53 = vadd.f32 %v853_v60, %v1629_v52  ;;  %v855_v62 = vpop.f32.mrb[2].mxu1  ;;  %v886_v0 = vmul.f32 0.044715, %v799_v56  ;;  %v1639_v5 = vadd.f32 %v802_v59, %v1623_v49  ;;  %v804_v7 = vpop.f32.mrb[3].mxu0  ;;  %v1660_v36 = vmul.f32 0.5, %v799_v56 }
 0x198   : > { %v888_v63 = vmul.f32 0.044715, %v852_v57  ;;  %v887_v1 = vmul.f32 0.044715, %v801_v61  ;;  %v1642_v6 = vadd.f32 %v855_v62, %v1625_v50  ;;  %v857_v8 = vpop.f32.mrb[3].mxu1  ;;  %v1646_v14 = vadd.f32 %v804_v7, %v1627_v51 }
 0x199   : > { %v889_v2 = vmul.f32 0.044715, %v1635_v53  ;;  %v902_v3 = vmul.f32 %v886_v0, %v799_v56  ;;  %v890_v16 = vmul.f32 0.044715, %v1639_v5  ;;  %v1653_v29 = vadd.f32 %v857_v8, %v1629_v52 }
 0x19a   : > { %v904_v4 = vmul.f32 %v888_v63, %v852_v57  ;;  %v903_v12 = vmul.f32 %v887_v1, %v801_v61  ;;  %v892_v21 = vmul.f32 0.044715, %v1642_v6  ;;  %v891_v33 = vmul.f32 0.044715, %v1646_v14 }
 0x19b   : > { %v905_v13 = vmul.f32 %v889_v2, %v1635_v53  ;;  %v918_v9 = vmul.f32 %v902_v3, %v799_v56  ;;  %v906_v28 = vmul.f32 %v890_v16, %v1639_v5  ;;  %v893_v44 = vmul.f32 0.044715, %v1653_v29 }
 0x19c   : > { %v920_v10 = vmul.f32 %v904_v4, %v852_v57  ;;  %v919_v17 = vmul.f32 %v903_v12, %v801_v61  ;;  %v808_v22 = vpop.f32.mrb[4].mxu0  ;;  %v908_v32 = vmul.f32 %v892_v21, %v1642_v6  ;;  %v907_v42 = vmul.f32 %v891_v33, %v1646_v14 }
 0x19d   : > { %v921_v20 = vmul.f32 %v905_v13, %v1635_v53  ;;  %v861_v23 = vpop.f32.mrb[4].mxu1  ;;  %v934_v24 = vadd.f32 %v918_v9, %v799_v56  ;;  %v810_v30 = vpop.f32.mrb[5].mxu0  ;;  %v922_v39 = vmul.f32 %v906_v28, %v1639_v5  ;;  %v1672_v26 = vadd.f32 %v808_v22, %v1623_v49 }
 0x19e   : > { %v936_v27 = vadd.f32 %v920_v10, %v852_v57  ;;  %v863_v11 = vpop.f32.mrb[5].mxu1  ;;  %v935_v31 = vadd.f32 %v919_v17, %v801_v61  ;;  %v812_v34 = vpop.f32.mrb[6].mxu0  ;;  %v924_v41 = vmul.f32 %v908_v32, %v1642_v6  ;;  %v923_v46 = vmul.f32 %v907_v42, %v1646_v14 }
 0x19f   : > { %v937_v15 = vadd.f32 %v921_v20, %v1635_v53  ;;  %v1658_v35 = vpop.f32.mrb[6].mxu1  ;;  %v950_v37 = vmul.f32 0.7978846, %v934_v24  ;;  %v1663_v40 = vpop.f32.mrb[7].mxu0  ;;  %v938_v25 = vadd.f32 %v922_v39, %v1639_v5  ;;  %v1677_v47 = vadd.f32 %v861_v23, %v1625_v50 }
 0x1a0   : > { %v952_v38 = vmul.f32 0.7978846, %v936_v27  ;;  %v951_v18 = vmul.f32 0.7978846, %v935_v31  ;;  %v1667_v43 = vpop.f32.mrb[7].mxu1  ;;  %v940_v45 = vadd.f32 %v924_v41, %v1642_v6  ;;  %v872_v48 = vmul.f32 0.5, %v852_v57 }
 0x1a1   : > { %v953_v19 = vmul.f32 0.7978846, %v937_v15  ;;  %1279 = vtanh.f32 %v950_v37  ;;  %v954_v54 = vmul.f32 0.7978846, %v938_v25  ;;  %v909_v55 = vmul.f32 %v893_v44, %v1653_v29 }
 0x1a2   : > { %1281 = vtanh.f32 %v952_v38  ;;  %v956_v56 = vmul.f32 0.7978846, %v940_v45  ;;  %v939_v58 = vadd.f32 %v923_v46, %v1646_v14  ;;  %v894_v60 = vmul.f32 0.044715, %v1672_v26 }
 0x1a3   : > { %1283 = vtanh.f32 %v951_v18  ;;  %v871_v59 = vmul.f32 0.5, %v801_v61  ;;  %v925_v62 = vmul.f32 %v909_v55, %v1653_v29  ;;  %v896_v0 = vmul.f32 0.044715, %v1677_v47 }
 0x1a4   : > { %1285 = vtanh.f32 %v953_v19  ;;  %v955_v63 = vmul.f32 0.7978846, %v939_v58  ;;  %v910_v57 = vmul.f32 %v894_v60, %v1672_v26  ;;  %v1686_v1 = vadd.f32 %v810_v30, %v1627_v51 }
 0x1a5   : > { %1287 = vtanh.f32 %v954_v54  ;;  %v941_v2 = vadd.f32 %v925_v62, %v1653_v29  ;;  %v912_v3 = vmul.f32 %v896_v0, %v1677_v47  ;;  %v1691_v4 = vadd.f32 %v863_v11, %v1629_v52 }
 0x1a6   : > { %1289 = vtanh.f32 %v956_v56  ;;  %v1694_v61 = vadd.f32 %v812_v34, %v1623_v49  ;;  %v873_v7 = vmul.f32 0.5, %v1635_v53  ;;  %v926_v8 = vmul.f32 %v910_v57, %v1672_v26 }
 0x1a7   : > { %1291 = vtanh.f32 %v955_v63  ;;  %v895_v12 = vmul.f32 0.044715, %v1686_v1  ;;  %v874_v13 = vmul.f32 0.5, %v1639_v5  ;;  %v957_v9 = vmul.f32 0.7978846, %v941_v2 }
 0x1a8   : > { %v928_v10 = vmul.f32 %v912_v3, %v1677_v47  ;;  %v897_v16 = vmul.f32 0.044715, %v1691_v4  ;;  %v876_v17 = vmul.f32 0.5, %v1642_v6  ;;  %v942_v49 = vadd.f32 %v926_v8, %v1672_v26 }
 0x1a9   : > { %v911_v20 = vmul.f32 %v895_v12, %v1686_v1  ;;  %v898_v53 = vmul.f32 0.044715, %v1694_v61  ;;  %v875_v22 = vmul.f32 0.5, %v1646_v14  ;;  %1293 = vtanh.f32 %v957_v9 }
 0x1aa   : > { %v944_v5 = vadd.f32 %v928_v10, %v1677_v47  ;;  %v913_v23 = vmul.f32 %v897_v16, %v1691_v4  ;;  %v958_v28 = vmul.f32 0.7978846, %v942_v49  ;;  %v1720_v32 = vadd.f32 %v1658_v35, %v1625_v50 }
 0x1ab   : > { %v1280_v21 = vpop.eup %1279  ;;  %v927_v30 = vmul.f32 %v911_v20, %v1686_v1  ;;  %v914_v6 = vmul.f32 %v898_v53, %v1694_v61  ;;  %v1733_v58 = vadd.f32 %v1663_v40, %v1627_v51  ;;  %v868_v57 = vadd.f32 %v1667_v43, %v1629_v52 }
 0x1ac   : > { %v1282_v24 = vpop.eup %1281  ;;  %v982_v27 = vadd.f32 1.0, %v1280_v21  ;;  %v960_v31 = vmul.f32 0.7978846, %v944_v5  ;;  %v929_v15 = vmul.f32 %v913_v23, %v1691_v4  ;;  %1295 = vtanh.f32 %v958_v28 }
 0x1ad   : > { %v1284_v11 = vpop.eup %1283  ;;  %v984_v14 = vadd.f32 1.0, %v1282_v24  ;;  %v943_v38 = vadd.f32 %v927_v30, %v1686_v1  ;;  %v930_v44 = vmul.f32 %v914_v6, %v1694_v61  ;;  %v899_v63 = vmul.f32 0.044715, %v1733_v58 }
 0x1ae   : > { %v1286_v33 = vpop.eup %1285  ;;  %v998_v34 = vmul.f32 %v982_v27, %v1660_v36  ;;  %v983_v37 = vadd.f32 1.0, %v1284_v11  ;;  %1297 = vtanh.f32 %v960_v31  ;;  %v945_v41 = vadd.f32 %v929_v15, %v1691_v4 }
 0x1af   : > { %v1288_v39 = vpop.eup %1287  ;;  %v1000_v18 = vmul.f32 %v984_v14, %v872_v48  ;;  %v985_v19 = vadd.f32 1.0, %v1286_v33  ;;  %v959_v25 = vmul.f32 0.7978846, %v943_v38  ;;  %v900_v48 = vmul.f32 0.044715, %v1720_v32 }
 0x1b0   : > { %v1290_v42 = vpop.eup %1289  ;;  %1014 = vst [vmem:[%s1715_s23] sm:$0xff] %v998_v34  ;;  %v999_v50 = vmul.f32 %v983_v37, %v871_v59  ;;  %v986_v35 = vadd.f32 1.0, %v1288_v39  ;;  %v961_v46 = vmul.f32 0.7978846, %v945_v41  ;;  %v946_v56 = vadd.f32 %v930_v44, %v1694_v61 }
 0x1b1   : > { %1016 = vst [vmem:[%s1715_s23 + $0x10] sm:$0xff] %v1000_v18  ;;  %v1001_v36 = vmul.f32 %v985_v19, %v873_v7  ;;  %v988_v45 = vadd.f32 1.0, %v1290_v42  ;;  %v1292_v54 = vpop.eup %1291  ;;  %1299 = vtanh.f32 %v959_v25  ;;  %v916_v62 = vmul.f32 %v900_v48, %v1720_v32 }
 0x1b2   : > { %1015 = vst [vmem:[%s1715_s23 + $0x8] sm:$0xff] %v999_v50  ;;  %v1002_v55 = vmul.f32 %v986_v35, %v874_v13  ;;  %v987_v59 = vadd.f32 1.0, %v1292_v54  ;;  %1301 = vtanh.f32 %v961_v46  ;;  %v962_v0 = vmul.f32 0.7978846, %v946_v56 }
 0x1b3   : > { %1017 = vst [vmem:[%s1715_s23 + $0x18] sm:$0xff] %v1001_v36  ;;  %v1004_v60 = vmul.f32 %v988_v45, %v876_v17  ;;  %v1294_v2 = vpop.eup %1293  ;;  %v932_v51 = vmul.f32 %v916_v62, %v1720_v32  ;;  %v877_v40 = vmul.f32 0.5, %v1653_v29  ;;  %v915_v8 = vmul.f32 %v899_v63, %v1733_v58 }
 0x1b4   : > { %1018 = vst [vmem:[%s1715_s23 + $0x20] sm:$0xff] %v1002_v55  ;;  %v1003_v3 = vmul.f32 %v987_v59, %v875_v22  ;;  %v989_v7 = vadd.f32 1.0, %v1294_v2  ;;  %1303 = vtanh.f32 %v962_v0  ;;  %v901_v13 = vmul.f32 0.044715, %v868_v57 }
 0x1b5   : > { %1020 = vst [vmem:[%s1715_s23 + $0x30] sm:$0xff] %v1004_v60  ;;  %v948_v12 = vadd.f32 %v932_v51, %v1720_v32  ;;  %v931_v52 = vmul.f32 %v915_v8, %v1733_v58  ;;  %v878_v16 = vmul.f32 0.5, %v1672_v26  ;;  %v880_v29 = vmul.f32 0.5, %v1677_v47 }
 0x1b6   : > { %1019 = vst [vmem:[%s1715_s23 + $0x28] sm:$0xff] %v1003_v3  ;;  %v1296_v9 = vpop.eup %1295  ;;  %v1005_v10 = vmul.f32 %v989_v7, %v877_v40  ;;  %v917_v20 = vmul.f32 %v901_v13, %v868_v57  ;;  %v879_v26 = vmul.f32 0.5, %v1686_v1  ;;  %v881_v47 = vmul.f32 0.5, %v1691_v4 }
 0x1b7   : > { %v990_v17 = vadd.f32 1.0, %v1296_v9  ;;  %v964_v49 = vmul.f32 0.7978846, %v948_v12  ;;  %v947_v21 = vadd.f32 %v931_v52, %v1733_v58  ;;  %v882_v34 = vmul.f32 0.5, %v1694_v61 }
 0x1b8   : > { %v1298_v43 = vpop.eup %1297  ;;  %1021 = vst [vmem:[%s1715_s23 + $0x38] sm:$0xff] %v1005_v10  ;;  %v933_v5 = vmul.f32 %v917_v20, %v868_v57  ;;  %v884_v4 = vmul.f32 0.5, %v1720_v32  ;;  %v883_v41 = vmul.f32 0.5, %v1733_v58  ;;  %v885_v61 = vmul.f32 0.5, %v868_v57 }
 0x1b9   : > { %v992_v53 = vadd.f32 1.0, %v1298_v43  ;;  %v1006_v22 = vmul.f32 %v990_v17, %v878_v16  ;;  %1305 = vtanh.f32 %v964_v49  ;;  %v963_v27 = vmul.f32 0.7978846, %v947_v21 }
 0x1ba   : > { %v949_v6 = vadd.f32 %v933_v5, %v868_v57 }
 0x1bb   : > { %v1300_v23 = vpop.eup %1299  ;;  %v1008_v24 = vmul.f32 %v992_v53, %v880_v29  ;;  %1022 = vst [vmem:[%s1715_s23 + $0x40] sm:$0xff] %v1006_v22  ;;  %1307 = vtanh.f32 %v963_v27 }
 0x1bc   : > { %v1302_v28 = vpop.eup %1301  ;;  %v991_v30 = vadd.f32 1.0, %v1300_v23  ;;  %v965_v31 = vmul.f32 0.7978846, %v949_v6 }
 0x1bd   : > { %1024 = vst [vmem:[%s1715_s23 + $0x50] sm:$0xff] %v1008_v24  ;;  %v993_v11 = vadd.f32 1.0, %v1302_v28 }
 0x1be   : > { %v1007_v14 = vmul.f32 %v991_v30, %v879_v26  ;;  %v1304_v15 = vpop.eup %1303  ;;  %1309 = vtanh.f32 %v965_v31 }
 0x1bf   : > { %v1009_v33 = vmul.f32 %v993_v11, %v881_v47  ;;  %v994_v37 = vadd.f32 1.0, %v1304_v15 }
 0x1c0   : > { %1023 = vst [vmem:[%s1715_s23 + $0x48] sm:$0xff] %v1007_v14 }
 0x1c1   : > { %1025 = vst [vmem:[%s1715_s23 + $0x58] sm:$0xff] %v1009_v33  ;;  %v1010_v1 = vmul.f32 %v994_v37, %v882_v34 }
 0x1c3   : > { %v1306_v38 = vpop.eup %1305  ;;  %1026 = vst [vmem:[%s1715_s23 + $0x60] sm:$0xff] %v1010_v1 }
 0x1c4   : > { %v996_v39 = vadd.f32 1.0, %v1306_v38 }
 0x1c5   : > { %v1308_v18 = vpop.eup %1307 }
 0x1c6   : > { %v1012_v19 = vmul.f32 %v996_v39, %v884_v4  ;;  %v995_v42 = vadd.f32 1.0, %v1308_v18 }
 0x1c8   : > { %1028 = vst [vmem:[%s1715_s23 + $0x70] sm:$0xff] %v1012_v19  ;;  %v1310_v50 = vpop.eup %1309  ;;  %v1011_v35 = vmul.f32 %v995_v42, %v883_v41 }
 0x1c9   : > { %v997_v25 = vadd.f32 1.0, %v1310_v50 }
 0x1ca   : > { %1027 = vst [vmem:[%s1715_s23 + $0x68] sm:$0xff] %v1011_v35 }
 0x1cb   : > { %v1013_v44 = vmul.f32 %v997_v25, %v885_v61 }
 0x1cd   : > { %1029 = vst [vmem:[%s1715_s23 + $0x78] sm:$0xff] %v1013_v44 }
 0x1ce PF: > { %s15_s18 = sadd.s32 1, %s1317_s18  }
 0x1cf   : > { %p12_p4 = scmp.ge.s32.totalorder %s15_s18, 4  }
 0x1d1   :  { %14 = sbr.rel (!%p12_p4) target bundleno = 1 (0x1), region = 70 }

</bundles_post_ra>
